<compile_context>
chip_gen: v6e
topology: v6e:2x2x1
jax: 0.10.0
libtpu: 0.0.40
codegen_flags: <defaults>
</compile_context>

<pallas_src>
import functools
import math

import jax
import jax.numpy as jnp
import numpy as np
from jax import lax
from jax.experimental import pallas as pl
from jax.experimental.pallas import tpu as pltpu

KERNEL_SIZES = (3, 5, 7, 9)
K_MAX = max(KERNEL_SIZES)          # 9
PAD = K_MAX // 2                   # 4
NUM_GROUPS = 4                     # GroupNorm groups == number of conv scales
EPS = 1e-5
NUM_PARAM_COLS = K_MAX + 10        # 9 taps + bias + 2*gn_h + 2*gn_w + 2*gn_c + q,k,v


def _scsa_kernel(x_ref, p_ref, mx_ref, mb_ref, o_ref, *, head_num, H, W):
    """One grid step = `Bt` complete samples of the SCSA_ forward.

    x_ref : (Bt, C, H*W)      input, lane-dense (H*W on the lane axis)
    p_ref : (C, 19)           packed per-channel parameters
    mx_ref: (H*W, Lh+Lw+Np)   static matrices: [padded mean-over-W | padded
                              mean-over-H | avg-pool], applied on the MXU
    mb_ref: (H+W, H*W)        static 0/1 broadcast-back matrices [rows; cols]
    o_ref : (Bt, C, H*W)      output -- written once at the very end
    """
    Bt, C, HW = x_ref.shape
    gc = C // NUM_GROUPS
    hd = C // head_num
    hn = head_num
    Lh = H + 2 * PAD
    Lw = W + 2 * PAD
    Np = mx_ref.shape[1] - Lh - Lw
    scaler = float(hd) ** -0.5

    x = x_ref[...].reshape(Bt * C, HW)          # (Bt*C, HW) register-resident
    p = p_ref[...]                              # (C, 19)
    mx = mx_ref[...]                            # (HW, Lh+Lw+Np)
    mb = mb_ref[...]                            # (H+W, HW)

    w_taps = p[:, 0:K_MAX]                      # (C, 9) centered 9-tap weights
    conv_b = p[:, K_MAX:K_MAX + 1]              # (C, 1)
    gh_g, gh_b = p[:, 10:11], p[:, 11:12]
    gw_g, gw_b = p[:, 12:13], p[:, 13:14]
    gn_g, gn_b = p[:, 14:15], p[:, 15:16]
    wq, wk, wv = p[:, 16:17], p[:, 17:18], p[:, 18:19]

    # ---- 1. x_h / x_w means; conv zero-padding folded into the matrices (MXU)
    xm = jnp.dot(x, mx[:, 0:Lh + Lw], preferred_element_type=jnp.float32)
    x_h_pad = xm[:, 0:Lh].reshape(Bt, C, Lh)            # zero-padded x_h
    x_w_pad = xm[:, Lh:Lh + Lw].reshape(Bt, C, Lw)      # zero-padded x_w

    # ---- 2. multi-scale per-channel depthwise conv, register-resident -------
    def dwconv(ap, L):                                  # ap: (Bt, C, L + 2*PAD)
        acc = w_taps[None, :, 0:1] * ap[:, :, 0:L]
        for d in range(1, K_MAX):
            acc = acc + w_taps[None, :, d:d + 1] * ap[:, :, d:d + L]
        return acc + conv_b[None]                       # (Bt, C, L)

    # ---- 3. GroupNorm(4, C): two-pass stats, only (Bt,C,1) stats reshaped ---
    def gn4(a, gamma, beta):                            # a: (Bt, C, L)
        L = a.shape[-1]
        cnt = float(gc * L)
        s1 = jnp.sum(a, axis=2, keepdims=True)                      # (Bt, C, 1)
        gsum = jnp.sum(s1.reshape(Bt, NUM_GROUPS, gc, 1), axis=2, keepdims=True)
        m_c = jnp.broadcast_to(gsum / cnt,
                               (Bt, NUM_GROUPS, gc, 1)).reshape(Bt, C, 1)
        d = a - m_c
        s2 = jnp.sum(d * d, axis=2, keepdims=True)
        gssq = jnp.sum(s2.reshape(Bt, NUM_GROUPS, gc, 1), axis=2, keepdims=True)
        inv_c = jnp.broadcast_to(lax.rsqrt(gssq / cnt + EPS),
                                 (Bt, NUM_GROUPS, gc, 1)).reshape(Bt, C, 1)
        return d * inv_c * gamma[None] + beta[None]

    h_attn = jax.nn.sigmoid(gn4(dwconv(x_h_pad, H), gh_g, gh_b))    # (Bt, C, H)
    w_attn = jax.nn.sigmoid(gn4(dwconv(x_w_pad, W), gw_g, gw_b))    # (Bt, C, W)

    # ---- 4. broadcast gates back onto the HW lane axis with 0/1 matmuls -----
    h_full = jnp.dot(h_attn.reshape(Bt * C, H), mb[0:H, :],
                     preferred_element_type=jnp.float32)            # (Bt*C, HW)
    w_full = jnp.dot(w_attn.reshape(Bt * C, W), mb[H:H + W, :],
                     preferred_element_type=jnp.float32)            # (Bt*C, HW)
    gated = x * h_full * w_full                 # spatially gated map (register)

    # ---- 5. AvgPool2d(window, stride=window) as one MXU contraction ---------
    y = jnp.dot(gated, mx[:, Lh + Lw:Lh + Lw + Np],
                preferred_element_type=jnp.float32).reshape(Bt, C, Np)

    # ---- 6. GroupNorm(1, C) + depthwise 1x1 q / k / v ------------------------
    cnt = float(C * Np)
    ym = jnp.sum(jnp.sum(y, axis=2, keepdims=True), axis=1, keepdims=True) / cnt
    yd = y - ym
    yv = jnp.sum(jnp.sum(yd * yd, axis=2, keepdims=True),
                 axis=1, keepdims=True) / cnt
    y_n = yd * lax.rsqrt(yv + EPS) * gn_g[None] + gn_b[None]        # (Bt, C, Np)

    q = (y_n * wq[None]).reshape(Bt * hn, hd, Np)
    k = (y_n * wk[None]).reshape(Bt * hn, hd, Np)
    v = (y_n * wv[None]).reshape(Bt * hn, hd, Np)

    # ---- 7. per-head channel attention: batched MXU matmuls + EUP recip -----
    s = jnp.einsum('zdn,zen->zde', q, k,
                   preferred_element_type=jnp.float32) * scaler     # (Bhn,hd,hd)
    s = s - jnp.max(s, axis=-1, keepdims=True)
    e = jnp.exp(s)
    attn = e * pl.reciprocal(jnp.sum(e, axis=-1, keepdims=True), approx=True)
    v_mean = jnp.mean(v, axis=-1, keepdims=True)                    # (Bhn, hd, 1)
    ca = jnp.einsum('zde,zeo->zdo', attn, v_mean,
                    preferred_element_type=jnp.float32)             # (Bhn, hd, 1)
    ca = jax.nn.sigmoid(ca).reshape(Bt * C, 1)                      # channel gate

    # ---- 8. single lane-dense store ------------------------------------------
    o_ref[...] = (gated * ca).reshape(Bt, C, HW)


def _build_static_mats(H, W, window_size):
    """Constant contraction matrices (numpy, baked at trace time)."""
    HW = H * W
    ws = window_size
    Hp, Wp = H // ws, W // ws
    Np = Hp * Wp
    Lh, Lw = H + 2 * PAD, W + 2 * PAD
    n = np.arange(HW)
    hh, ww = n // W, n % W

    m_mean_h = np.zeros((HW, Lh), np.float32)
    m_mean_h[n, hh + PAD] = 1.0 / W            # mean over W -> zero-padded x_h
    m_mean_w = np.zeros((HW, Lw), np.float32)
    m_mean_w[n, ww + PAD] = 1.0 / H            # mean over H -> zero-padded x_w
    m_pool = np.zeros((HW, Np), np.float32)
    sel = (hh < Hp * ws) & (ww < Wp * ws)      # AvgPool2d floor-truncation
    m_pool[n[sel], ((hh // ws) * Wp + (ww // ws))[sel]] = 1.0 / (ws * ws)
    mx = np.concatenate([m_mean_h, m_mean_w, m_pool], axis=1)   # (HW, Lh+Lw+Np)

    m_bh = np.zeros((H, HW), np.float32)
    m_bh[hh, n] = 1.0                          # broadcast h_attn over rows
    m_bw = np.zeros((W, HW), np.float32)
    m_bw[ww, n] = 1.0                          # broadcast w_attn over cols
    mb = np.concatenate([m_bh, m_bw], axis=0)                   # (H+W, HW)
    return jnp.asarray(mx), jnp.asarray(mb)


def scsa_forward(x, params, *, head_num, window_size, batch_tile=1):
    """Full SCSA_ forward: x (B, C, H, W) f32 -> (B, C, H, W) f32."""
    B, C, H, W = x.shape
    assert C % NUM_GROUPS == 0 and C % head_num == 0
    assert window_size > 0 and H >= window_size and W >= window_size
    assert B % batch_tile == 0

    (w_taps, conv_b, gh_g, gh_b, gw_g, gw_b, gn_g, gn_b, wq, wk, wv) = params
    packed = jnp.concatenate(
        [w_taps] + [v.reshape(C, 1) for v in
                    (conv_b, gh_g, gh_b, gw_g, gw_b, gn_g, gn_b, wq, wk, wv)],
        axis=1).astype(jnp.float32)                              # (C, 19)

    mx, mb = _build_static_mats(H, W, window_size)
    HW = H * W
    Lh, Lw = H + 2 * PAD, W + 2 * PAD
    Np = (H // window_size) * (W // window_size)

    kernel = functools.partial(_scsa_kernel, head_num=head_num, H=H, W=W)

    out = pl.pallas_call(
        kernel,
        out_shape=jax.ShapeDtypeStruct((B, C, HW), jnp.float32),
        grid_spec=pltpu.PrefetchScalarGridSpec(
            num_scalar_prefetch=0,
            grid=(B // batch_tile,),
            in_specs=[
                pl.BlockSpec((batch_tile, C, HW), lambda b: (b, 0, 0)),
                pl.BlockSpec((C, NUM_PARAM_COLS), lambda b: (0, 0)),
                pl.BlockSpec((HW, Lh + Lw + Np), lambda b: (0, 0)),
                pl.BlockSpec((H + W, HW), lambda b: (0, 0)),
            ],
            out_specs=pl.BlockSpec((batch_tile, C, HW), lambda b: (b, 0, 0)),
        ),
        compiler_params=pltpu.CompilerParams(
            dimension_semantics=("parallel",),        # megacore on v7x
            vmem_limit_bytes=32 * 1024 * 1024),       # explicit VMEM budget
    )(x.reshape(B, C, HW).astype(jnp.float32), packed, mx, mb)
    return out.reshape(B, C, H, W)


def init_params(C, key):
    """Deterministic synthetic parameters matching the PyTorch module shapes."""
    gc = C // NUM_GROUPS
    keys = jax.random.split(key, 2 * len(KERNEL_SIZES) + 3)
    w_taps = jnp.zeros((C, K_MAX), jnp.float32)
    biases = []
    for s, k in enumerate(KERNEL_SIZES):
        bound = 1.0 / math.sqrt(k)                 # depthwise conv fan_in = k
        w_s = jax.random.uniform(keys[2 * s], (gc, k), jnp.float32, -bound, bound)
        b_s = jax.random.uniform(keys[2 * s + 1], (gc,), jnp.float32, -bound, bound)
        start = (K_MAX - k) // 2
        w_taps = w_taps.at[s * gc:(s + 1) * gc, start:start + k].set(w_s)
        biases.append(b_s)
    conv_b = jnp.concatenate(biases)
    ones = jnp.ones((C,), jnp.float32)             # GroupNorm default affine
    zeros = jnp.zeros((C,), jnp.float32)
    wq = jax.random.uniform(keys[-3], (C,), jnp.float32, -1.0, 1.0)
    wk = jax.random.uniform(keys[-2], (C,), jnp.float32, -1.0, 1.0)
    wv = jax.random.uniform(keys[-1], (C,), jnp.float32, -1.0, 1.0)
    return (w_taps, conv_b, ones, zeros, ones, zeros, ones, zeros, wq, wk, wv)


def _reference_forward(x, params, head_num, window_size):
    """Plain-JAX (XLA) reference of the full SCSA_ forward for validation."""
    (w_taps, conv_b, gh_g, gh_b, gw_g, gw_b, gn_g, gn_b, wq, wk, wv) = params
    B, C, H, W = x.shape
    gc = C // NUM_GROUPS
    hd = C // head_num
    ws = window_size
    HIGH = jax.lax.Precision.HIGHEST

    def dwconv(xl):                                # (B, C, L)
        L = xl.shape[-1]
        xp = jnp.pad(xl, ((0, 0), (0, 0), (PAD, PAD)))
        acc = sum(w_taps[None, :, d:d + 1] * xp[:, :, d:d + L]
                  for d in range(K_MAX))
        return acc + conv_b[None, :, None]

    def gn4(a, gamma, beta):                       # GroupNorm(4, C)
        L = a.shape[-1]
        r = a.reshape(B, NUM_GROUPS, gc, L)
        m = r.mean(axis=(2, 3), keepdims=True)
        v = ((r - m) ** 2).mean(axis=(2, 3), keepdims=True)
        n = ((r - m) / jnp.sqrt(v + EPS)).reshape(B, C, L)
        return n * gamma[None, :, None] + beta[None, :, None]

    x_h = x.mean(axis=3)
    x_w = x.mean(axis=2)
    h_attn = jax.nn.sigmoid(gn4(dwconv(x_h), gh_g, gh_b))
    w_attn = jax.nn.sigmoid(gn4(dwconv(x_w), gw_g, gw_b))
    gated = x * h_attn[:, :, :, None] * w_attn[:, :, None, :]

    Hp, Wp = H // ws, W // ws
    y = gated[:, :, :Hp * ws, :Wp * ws].reshape(
        B, C, Hp, ws, Wp, ws).mean(axis=(3, 5))            # (B, C, Hp, Wp)
    yf = y.reshape(B, -1)
    ym = yf.mean(axis=1).reshape(B, 1, 1, 1)
    yv = ((y - ym) ** 2).reshape(B, -1).mean(axis=1).reshape(B, 1, 1, 1)
    yn = ((y - ym) / jnp.sqrt(yv + EPS)) * gn_g[None, :, None, None] \
        + gn_b[None, :, None, None]

    q = (yn * wq[None, :, None, None]).reshape(B, head_num, hd, Hp * Wp)
    k = (yn * wk[None, :, None, None]).reshape(B, head_num, hd, Hp * Wp)
    v = (yn * wv[None, :, None, None]).reshape(B, head_num, hd, Hp * Wp)
    attn = jnp.einsum('bhdn,bhen->bhde', q, k, precision=HIGH) * (hd ** -0.5)
    attn = jax.nn.softmax(attn, axis=-1)
    o = jnp.einsum('bhde,bhen->bhdn', attn, v, precision=HIGH)
    ca = jax.nn.sigmoid(o.mean(axis=-1).reshape(B, C, 1, 1))
    return ca * gated


if __name__ == "__main__":
    B, C, H, W = 4, 16, 14, 14
    head_num = 4
    window_size = 7

    key = jax.random.PRNGKey(0)
    kx, kp = jax.random.split(key)
    x = jax.random.normal(kx, (B, C, H, W), jnp.float32)
    params = init_params(C, kp)

    # batch_tile=2 -> grid=(2,): amortizes per-step overhead and gives an even
    # parallel grid so both v7x TensorCores get work.
    out = scsa_forward(x, params, head_num=head_num, window_size=window_size,
                       batch_tile=2)
    out = jax.block_until_ready(out)
    assert out.shape == (B, C, H, W), out.shape

    ref = _reference_forward(x, params, head_num, window_size)
    # Tolerance accounts for MXU default-precision (bf16-pass) contractions
    # used for the mean/broadcast/pool/attention matmuls and the EUP
    # approximate reciprocal in the softmax denominator.
    np.testing.assert_allclose(np.asarray(out), np.asarray(ref),
                               rtol=2e-2, atol=2e-3)

    print("KERNEL_OK")
</pallas_src>

<mosaic_0001>
module attributes {stable_mosaic.version = 11 : i64} {
  func.func @_scsa_kernel(%arg0: i32, %arg1: memref<2x16x196xf32, #tpu.memory_space<vmem>>, %arg2: memref<16x19xf32, #tpu.memory_space<vmem>>, %arg3: memref<196x48xf32, #tpu.memory_space<vmem>>, %arg4: memref<28x196xf32, #tpu.memory_space<vmem>>, %arg5: memref<2x16x196xf32, #tpu.memory_space<vmem>>) attributes {dimension_semantics = [#tpu.dimension_semantics<parallel>], iteration_bounds = array<i64: 2>, scalar_prefetch = 0 : i64, scratch_operands = 0 : i64, tpu.core_type = #tpu.core_type<tc>, window_params = [{transform_indices = @transform_0, window_bounds = array<i64: 2, 16, 196>}, {pipeline_mode = #tpu.pipeline_mode<synchronous>, transform_indices = @transform_1, window_bounds = array<i64: 16, 19>}, {pipeline_mode = #tpu.pipeline_mode<synchronous>, transform_indices = @transform_2, window_bounds = array<i64: 196, 48>}, {pipeline_mode = #tpu.pipeline_mode<synchronous>, transform_indices = @transform_3, window_bounds = array<i64: 28, 196>}, {transform_indices = @transform_4, window_bounds = array<i64: 2, 16, 196>}]} {
    %c0 = arith.constant 0 : index
    %c0_0 = arith.constant 0 : index
    %c0_1 = arith.constant 0 : index
    %0 = vector.load %arg1[%c0, %c0_0, %c0_1] : memref<2x16x196xf32, #tpu.memory_space<vmem>>, vector<2x16x196xf32>
    %1 = vector.shape_cast %0 : vector<2x16x196xf32> to vector<32x196xf32>
    %c0_2 = arith.constant 0 : index
    %c0_3 = arith.constant 0 : index
    %2 = vector.load %arg2[%c0_2, %c0_3] : memref<16x19xf32, #tpu.memory_space<vmem>>, vector<16x19xf32>
    %c0_4 = arith.constant 0 : index
    %c0_5 = arith.constant 0 : index
    %3 = vector.load %arg3[%c0_4, %c0_5] : memref<196x48xf32, #tpu.memory_space<vmem>>, vector<196x48xf32>
    %c0_6 = arith.constant 0 : index
    %c0_7 = arith.constant 0 : index
    %4 = vector.load %arg4[%c0_6, %c0_7] : memref<28x196xf32, #tpu.memory_space<vmem>>, vector<28x196xf32>
    %5 = vector.extract_strided_slice %2 {offsets = [0, 0], sizes = [16, 9], strides = [1, 1]} : vector<16x19xf32> to vector<16x9xf32>
    %6 = vector.extract_strided_slice %2 {offsets = [0, 9], sizes = [16, 1], strides = [1, 1]} : vector<16x19xf32> to vector<16x1xf32>
    %7 = vector.extract_strided_slice %2 {offsets = [0, 10], sizes = [16, 1], strides = [1, 1]} : vector<16x19xf32> to vector<16x1xf32>
    %8 = vector.extract_strided_slice %2 {offsets = [0, 11], sizes = [16, 1], strides = [1, 1]} : vector<16x19xf32> to vector<16x1xf32>
    %9 = vector.extract_strided_slice %2 {offsets = [0, 12], sizes = [16, 1], strides = [1, 1]} : vector<16x19xf32> to vector<16x1xf32>
    %10 = vector.extract_strided_slice %2 {offsets = [0, 13], sizes = [16, 1], strides = [1, 1]} : vector<16x19xf32> to vector<16x1xf32>
    %11 = vector.extract_strided_slice %2 {offsets = [0, 14], sizes = [16, 1], strides = [1, 1]} : vector<16x19xf32> to vector<16x1xf32>
    %12 = vector.extract_strided_slice %2 {offsets = [0, 15], sizes = [16, 1], strides = [1, 1]} : vector<16x19xf32> to vector<16x1xf32>
    %13 = vector.extract_strided_slice %2 {offsets = [0, 16], sizes = [16, 1], strides = [1, 1]} : vector<16x19xf32> to vector<16x1xf32>
    %14 = vector.extract_strided_slice %2 {offsets = [0, 17], sizes = [16, 1], strides = [1, 1]} : vector<16x19xf32> to vector<16x1xf32>
    %15 = vector.extract_strided_slice %2 {offsets = [0, 18], sizes = [16, 1], strides = [1, 1]} : vector<16x19xf32> to vector<16x1xf32>
    %16 = vector.extract_strided_slice %3 {offsets = [0, 0], sizes = [196, 44], strides = [1, 1]} : vector<196x48xf32> to vector<196x44xf32>
    %cst = arith.constant dense<0.000000e+00> : vector<32x44xf32>
    %17 = tpu.matmul %1, %16, %cst {dimension_numbers = #tpu.dot_dimension_numbers<[1], [0], [0], [1], [0, 0, 1, 1], [], []>} : vector<32x196xf32>, vector<196x44xf32>, vector<32x44xf32> -> vector<32x44xf32>
    %18 = vector.extract_strided_slice %17 {offsets = [0, 0], sizes = [32, 22], strides = [1, 1]} : vector<32x44xf32> to vector<32x22xf32>
    %19 = vector.shape_cast %18 : vector<32x22xf32> to vector<2x16x22xf32>
    %20 = vector.extract_strided_slice %17 {offsets = [0, 22], sizes = [32, 22], strides = [1, 1]} : vector<32x44xf32> to vector<32x22xf32>
    %21 = vector.shape_cast %20 : vector<32x22xf32> to vector<2x16x22xf32>
    %22 = vector.extract_strided_slice %5 {offsets = [0, 0], sizes = [16, 1], strides = [1, 1]} : vector<16x9xf32> to vector<16x1xf32>
    %23 = vector.shape_cast %22 : vector<16x1xf32> to vector<1x16x1xf32>
    %24 = vector.extract_strided_slice %19 {offsets = [0, 0, 0], sizes = [2, 16, 14], strides = [1, 1, 1]} : vector<2x16x22xf32> to vector<2x16x14xf32>
    %25 = vector.broadcast %23 : vector<1x16x1xf32> to vector<2x16x14xf32>
    %26 = arith.mulf %25, %24 : vector<2x16x14xf32>
    %27 = vector.extract_strided_slice %5 {offsets = [0, 1], sizes = [16, 1], strides = [1, 1]} : vector<16x9xf32> to vector<16x1xf32>
    %28 = vector.shape_cast %27 : vector<16x1xf32> to vector<1x16x1xf32>
    %29 = vector.extract_strided_slice %19 {offsets = [0, 0, 1], sizes = [2, 16, 14], strides = [1, 1, 1]} : vector<2x16x22xf32> to vector<2x16x14xf32>
    %30 = vector.broadcast %28 : vector<1x16x1xf32> to vector<2x16x14xf32>
    %31 = arith.mulf %30, %29 : vector<2x16x14xf32>
    %32 = arith.addf %26, %31 : vector<2x16x14xf32>
    %33 = vector.extract_strided_slice %5 {offsets = [0, 2], sizes = [16, 1], strides = [1, 1]} : vector<16x9xf32> to vector<16x1xf32>
    %34 = vector.shape_cast %33 : vector<16x1xf32> to vector<1x16x1xf32>
    %35 = vector.extract_strided_slice %19 {offsets = [0, 0, 2], sizes = [2, 16, 14], strides = [1, 1, 1]} : vector<2x16x22xf32> to vector<2x16x14xf32>
    %36 = vector.broadcast %34 : vector<1x16x1xf32> to vector<2x16x14xf32>
    %37 = arith.mulf %36, %35 : vector<2x16x14xf32>
    %38 = arith.addf %32, %37 : vector<2x16x14xf32>
    %39 = vector.extract_strided_slice %5 {offsets = [0, 3], sizes = [16, 1], strides = [1, 1]} : vector<16x9xf32> to vector<16x1xf32>
    %40 = vector.shape_cast %39 : vector<16x1xf32> to vector<1x16x1xf32>
    %41 = vector.extract_strided_slice %19 {offsets = [0, 0, 3], sizes = [2, 16, 14], strides = [1, 1, 1]} : vector<2x16x22xf32> to vector<2x16x14xf32>
    %42 = vector.broadcast %40 : vector<1x16x1xf32> to vector<2x16x14xf32>
    %43 = arith.mulf %42, %41 : vector<2x16x14xf32>
    %44 = arith.addf %38, %43 : vector<2x16x14xf32>
    %45 = vector.extract_strided_slice %5 {offsets = [0, 4], sizes = [16, 1], strides = [1, 1]} : vector<16x9xf32> to vector<16x1xf32>
    %46 = vector.shape_cast %45 : vector<16x1xf32> to vector<1x16x1xf32>
    %47 = vector.extract_strided_slice %19 {offsets = [0, 0, 4], sizes = [2, 16, 14], strides = [1, 1, 1]} : vector<2x16x22xf32> to vector<2x16x14xf32>
    %48 = vector.broadcast %46 : vector<1x16x1xf32> to vector<2x16x14xf32>
    %49 = arith.mulf %48, %47 : vector<2x16x14xf32>
    %50 = arith.addf %44, %49 : vector<2x16x14xf32>
    %51 = vector.extract_strided_slice %5 {offsets = [0, 5], sizes = [16, 1], strides = [1, 1]} : vector<16x9xf32> to vector<16x1xf32>
    %52 = vector.shape_cast %51 : vector<16x1xf32> to vector<1x16x1xf32>
    %53 = vector.extract_strided_slice %19 {offsets = [0, 0, 5], sizes = [2, 16, 14], strides = [1, 1, 1]} : vector<2x16x22xf32> to vector<2x16x14xf32>
    %54 = vector.broadcast %52 : vector<1x16x1xf32> to vector<2x16x14xf32>
    %55 = arith.mulf %54, %53 : vector<2x16x14xf32>
    %56 = arith.addf %50, %55 : vector<2x16x14xf32>
    %57 = vector.extract_strided_slice %5 {offsets = [0, 6], sizes = [16, 1], strides = [1, 1]} : vector<16x9xf32> to vector<16x1xf32>
    %58 = vector.shape_cast %57 : vector<16x1xf32> to vector<1x16x1xf32>
    %59 = vector.extract_strided_slice %19 {offsets = [0, 0, 6], sizes = [2, 16, 14], strides = [1, 1, 1]} : vector<2x16x22xf32> to vector<2x16x14xf32>
    %60 = vector.broadcast %58 : vector<1x16x1xf32> to vector<2x16x14xf32>
    %61 = arith.mulf %60, %59 : vector<2x16x14xf32>
    %62 = arith.addf %56, %61 : vector<2x16x14xf32>
    %63 = vector.extract_strided_slice %5 {offsets = [0, 7], sizes = [16, 1], strides = [1, 1]} : vector<16x9xf32> to vector<16x1xf32>
    %64 = vector.shape_cast %63 : vector<16x1xf32> to vector<1x16x1xf32>
    %65 = vector.extract_strided_slice %19 {offsets = [0, 0, 7], sizes = [2, 16, 14], strides = [1, 1, 1]} : vector<2x16x22xf32> to vector<2x16x14xf32>
    %66 = vector.broadcast %64 : vector<1x16x1xf32> to vector<2x16x14xf32>
    %67 = arith.mulf %66, %65 : vector<2x16x14xf32>
    %68 = arith.addf %62, %67 : vector<2x16x14xf32>
    %69 = vector.extract_strided_slice %5 {offsets = [0, 8], sizes = [16, 1], strides = [1, 1]} : vector<16x9xf32> to vector<16x1xf32>
    %70 = vector.shape_cast %69 : vector<16x1xf32> to vector<1x16x1xf32>
    %71 = vector.extract_strided_slice %19 {offsets = [0, 0, 8], sizes = [2, 16, 14], strides = [1, 1, 1]} : vector<2x16x22xf32> to vector<2x16x14xf32>
    %72 = vector.broadcast %70 : vector<1x16x1xf32> to vector<2x16x14xf32>
    %73 = arith.mulf %72, %71 : vector<2x16x14xf32>
    %74 = arith.addf %68, %73 : vector<2x16x14xf32>
    %75 = vector.shape_cast %6 : vector<16x1xf32> to vector<1x16x1xf32>
    %76 = vector.broadcast %75 : vector<1x16x1xf32> to vector<2x16x14xf32>
    %77 = arith.addf %74, %76 : vector<2x16x14xf32>
    %cst_8 = arith.constant dense<0.000000e+00> : vector<2x16xf32>
    %78 = vector.multi_reduction <add>, %77, %cst_8 [2] : vector<2x16x14xf32> to vector<2x16xf32>
    %79 = vector.shape_cast %78 : vector<2x16xf32> to vector<2x16x1xf32>
    %80 = vector.shape_cast %79 : vector<2x16x1xf32> to vector<2x4x4x1xf32>
    %cst_9 = arith.constant dense<0.000000e+00> : vector<2x4x1xf32>
    %81 = vector.multi_reduction <add>, %80, %cst_9 [2] : vector<2x4x4x1xf32> to vector<2x4x1xf32>
    %82 = vector.shape_cast %81 : vector<2x4x1xf32> to vector<2x4x1x1xf32>
    %cst_10 = arith.constant 5.600000e+01 : f32
    %83 = vector.broadcast %cst_10 : f32 to vector<2x4x1x1xf32>
    %84 = arith.divf %82, %83 : vector<2x4x1x1xf32>
    %85 = vector.shape_cast %84 : vector<2x4x1x1xf32> to vector<2x4x1x1xf32>
    %86 = vector.broadcast %85 : vector<2x4x1x1xf32> to vector<2x4x4x1xf32>
    %87 = vector.shape_cast %86 : vector<2x4x4x1xf32> to vector<2x16x1xf32>
    %88 = vector.broadcast %87 : vector<2x16x1xf32> to vector<2x16x14xf32>
    %89 = arith.subf %77, %88 : vector<2x16x14xf32>
    %90 = arith.mulf %89, %89 : vector<2x16x14xf32>
    %cst_11 = arith.constant dense<0.000000e+00> : vector<2x16xf32>
    %91 = vector.multi_reduction <add>, %90, %cst_11 [2] : vector<2x16x14xf32> to vector<2x16xf32>
    %92 = vector.shape_cast %91 : vector<2x16xf32> to vector<2x16x1xf32>
    %93 = vector.shape_cast %92 : vector<2x16x1xf32> to vector<2x4x4x1xf32>
    %cst_12 = arith.constant dense<0.000000e+00> : vector<2x4x1xf32>
    %94 = vector.multi_reduction <add>, %93, %cst_12 [2] : vector<2x4x4x1xf32> to vector<2x4x1xf32>
    %95 = vector.shape_cast %94 : vector<2x4x1xf32> to vector<2x4x1x1xf32>
    %cst_13 = arith.constant 5.600000e+01 : f32
    %96 = vector.broadcast %cst_13 : f32 to vector<2x4x1x1xf32>
    %97 = arith.divf %95, %96 : vector<2x4x1x1xf32>
    %cst_14 = arith.constant 9.99999974E-6 : f32
    %98 = vector.broadcast %cst_14 : f32 to vector<2x4x1x1xf32>
    %99 = arith.addf %97, %98 : vector<2x4x1x1xf32>
    %100 = math.rsqrt %99 : vector<2x4x1x1xf32>
    %101 = vector.shape_cast %100 : vector<2x4x1x1xf32> to vector<2x4x1x1xf32>
    %102 = vector.broadcast %101 : vector<2x4x1x1xf32> to vector<2x4x4x1xf32>
    %103 = vector.shape_cast %102 : vector<2x4x4x1xf32> to vector<2x16x1xf32>
    %104 = vector.broadcast %103 : vector<2x16x1xf32> to vector<2x16x14xf32>
    %105 = arith.mulf %89, %104 : vector<2x16x14xf32>
    %106 = vector.shape_cast %7 : vector<16x1xf32> to vector<1x16x1xf32>
    %107 = vector.broadcast %106 : vector<1x16x1xf32> to vector<2x16x14xf32>
    %108 = arith.mulf %105, %107 : vector<2x16x14xf32>
    %109 = vector.shape_cast %8 : vector<16x1xf32> to vector<1x16x1xf32>
    %110 = vector.broadcast %109 : vector<1x16x1xf32> to vector<2x16x14xf32>
    %111 = arith.addf %108, %110 : vector<2x16x14xf32>
    %112 = arith.negf %111 : vector<2x16x14xf32>
    %113 = math.exp %112 : vector<2x16x14xf32>
    %cst_15 = arith.constant 1.000000e+00 : f32
    %114 = vector.broadcast %cst_15 : f32 to vector<2x16x14xf32>
    %115 = arith.addf %114, %113 : vector<2x16x14xf32>
    %116 = arith.divf %114, %115 : vector<2x16x14xf32>
    %117 = vector.extract_strided_slice %5 {offsets = [0, 0], sizes = [16, 1], strides = [1, 1]} : vector<16x9xf32> to vector<16x1xf32>
    %118 = vector.shape_cast %117 : vector<16x1xf32> to vector<1x16x1xf32>
    %119 = vector.extract_strided_slice %21 {offsets = [0, 0, 0], sizes = [2, 16, 14], strides = [1, 1, 1]} : vector<2x16x22xf32> to vector<2x16x14xf32>
    %120 = vector.broadcast %118 : vector<1x16x1xf32> to vector<2x16x14xf32>
    %121 = arith.mulf %120, %119 : vector<2x16x14xf32>
    %122 = vector.extract_strided_slice %5 {offsets = [0, 1], sizes = [16, 1], strides = [1, 1]} : vector<16x9xf32> to vector<16x1xf32>
    %123 = vector.shape_cast %122 : vector<16x1xf32> to vector<1x16x1xf32>
    %124 = vector.extract_strided_slice %21 {offsets = [0, 0, 1], sizes = [2, 16, 14], strides = [1, 1, 1]} : vector<2x16x22xf32> to vector<2x16x14xf32>
    %125 = vector.broadcast %123 : vector<1x16x1xf32> to vector<2x16x14xf32>
    %126 = arith.mulf %125, %124 : vector<2x16x14xf32>
    %127 = arith.addf %121, %126 : vector<2x16x14xf32>
    %128 = vector.extract_strided_slice %5 {offsets = [0, 2], sizes = [16, 1], strides = [1, 1]} : vector<16x9xf32> to vector<16x1xf32>
    %129 = vector.shape_cast %128 : vector<16x1xf32> to vector<1x16x1xf32>
    %130 = vector.extract_strided_slice %21 {offsets = [0, 0, 2], sizes = [2, 16, 14], strides = [1, 1, 1]} : vector<2x16x22xf32> to vector<2x16x14xf32>
    %131 = vector.broadcast %129 : vector<1x16x1xf32> to vector<2x16x14xf32>
    %132 = arith.mulf %131, %130 : vector<2x16x14xf32>
    %133 = arith.addf %127, %132 : vector<2x16x14xf32>
    %134 = vector.extract_strided_slice %5 {offsets = [0, 3], sizes = [16, 1], strides = [1, 1]} : vector<16x9xf32> to vector<16x1xf32>
    %135 = vector.shape_cast %134 : vector<16x1xf32> to vector<1x16x1xf32>
    %136 = vector.extract_strided_slice %21 {offsets = [0, 0, 3], sizes = [2, 16, 14], strides = [1, 1, 1]} : vector<2x16x22xf32> to vector<2x16x14xf32>
    %137 = vector.broadcast %135 : vector<1x16x1xf32> to vector<2x16x14xf32>
    %138 = arith.mulf %137, %136 : vector<2x16x14xf32>
    %139 = arith.addf %133, %138 : vector<2x16x14xf32>
    %140 = vector.extract_strided_slice %5 {offsets = [0, 4], sizes = [16, 1], strides = [1, 1]} : vector<16x9xf32> to vector<16x1xf32>
    %141 = vector.shape_cast %140 : vector<16x1xf32> to vector<1x16x1xf32>
    %142 = vector.extract_strided_slice %21 {offsets = [0, 0, 4], sizes = [2, 16, 14], strides = [1, 1, 1]} : vector<2x16x22xf32> to vector<2x16x14xf32>
    %143 = vector.broadcast %141 : vector<1x16x1xf32> to vector<2x16x14xf32>
    %144 = arith.mulf %143, %142 : vector<2x16x14xf32>
    %145 = arith.addf %139, %144 : vector<2x16x14xf32>
    %146 = vector.extract_strided_slice %5 {offsets = [0, 5], sizes = [16, 1], strides = [1, 1]} : vector<16x9xf32> to vector<16x1xf32>
    %147 = vector.shape_cast %146 : vector<16x1xf32> to vector<1x16x1xf32>
    %148 = vector.extract_strided_slice %21 {offsets = [0, 0, 5], sizes = [2, 16, 14], strides = [1, 1, 1]} : vector<2x16x22xf32> to vector<2x16x14xf32>
    %149 = vector.broadcast %147 : vector<1x16x1xf32> to vector<2x16x14xf32>
    %150 = arith.mulf %149, %148 : vector<2x16x14xf32>
    %151 = arith.addf %145, %150 : vector<2x16x14xf32>
    %152 = vector.extract_strided_slice %5 {offsets = [0, 6], sizes = [16, 1], strides = [1, 1]} : vector<16x9xf32> to vector<16x1xf32>
    %153 = vector.shape_cast %152 : vector<16x1xf32> to vector<1x16x1xf32>
    %154 = vector.extract_strided_slice %21 {offsets = [0, 0, 6], sizes = [2, 16, 14], strides = [1, 1, 1]} : vector<2x16x22xf32> to vector<2x16x14xf32>
    %155 = vector.broadcast %153 : vector<1x16x1xf32> to vector<2x16x14xf32>
    %156 = arith.mulf %155, %154 : vector<2x16x14xf32>
    %157 = arith.addf %151, %156 : vector<2x16x14xf32>
    %158 = vector.extract_strided_slice %5 {offsets = [0, 7], sizes = [16, 1], strides = [1, 1]} : vector<16x9xf32> to vector<16x1xf32>
    %159 = vector.shape_cast %158 : vector<16x1xf32> to vector<1x16x1xf32>
    %160 = vector.extract_strided_slice %21 {offsets = [0, 0, 7], sizes = [2, 16, 14], strides = [1, 1, 1]} : vector<2x16x22xf32> to vector<2x16x14xf32>
    %161 = vector.broadcast %159 : vector<1x16x1xf32> to vector<2x16x14xf32>
    %162 = arith.mulf %161, %160 : vector<2x16x14xf32>
    %163 = arith.addf %157, %162 : vector<2x16x14xf32>
    %164 = vector.extract_strided_slice %5 {offsets = [0, 8], sizes = [16, 1], strides = [1, 1]} : vector<16x9xf32> to vector<16x1xf32>
    %165 = vector.shape_cast %164 : vector<16x1xf32> to vector<1x16x1xf32>
    %166 = vector.extract_strided_slice %21 {offsets = [0, 0, 8], sizes = [2, 16, 14], strides = [1, 1, 1]} : vector<2x16x22xf32> to vector<2x16x14xf32>
    %167 = vector.broadcast %165 : vector<1x16x1xf32> to vector<2x16x14xf32>
    %168 = arith.mulf %167, %166 : vector<2x16x14xf32>
    %169 = arith.addf %163, %168 : vector<2x16x14xf32>
    %170 = vector.shape_cast %6 : vector<16x1xf32> to vector<1x16x1xf32>
    %171 = vector.broadcast %170 : vector<1x16x1xf32> to vector<2x16x14xf32>
    %172 = arith.addf %169, %171 : vector<2x16x14xf32>
    %cst_16 = arith.constant dense<0.000000e+00> : vector<2x16xf32>
    %173 = vector.multi_reduction <add>, %172, %cst_16 [2] : vector<2x16x14xf32> to vector<2x16xf32>
    %174 = vector.shape_cast %173 : vector<2x16xf32> to vector<2x16x1xf32>
    %175 = vector.shape_cast %174 : vector<2x16x1xf32> to vector<2x4x4x1xf32>
    %cst_17 = arith.constant dense<0.000000e+00> : vector<2x4x1xf32>
    %176 = vector.multi_reduction <add>, %175, %cst_17 [2] : vector<2x4x4x1xf32> to vector<2x4x1xf32>
    %177 = vector.shape_cast %176 : vector<2x4x1xf32> to vector<2x4x1x1xf32>
    %cst_18 = arith.constant 5.600000e+01 : f32
    %178 = vector.broadcast %cst_18 : f32 to vector<2x4x1x1xf32>
    %179 = arith.divf %177, %178 : vector<2x4x1x1xf32>
    %180 = vector.shape_cast %179 : vector<2x4x1x1xf32> to vector<2x4x1x1xf32>
    %181 = vector.broadcast %180 : vector<2x4x1x1xf32> to vector<2x4x4x1xf32>
    %182 = vector.shape_cast %181 : vector<2x4x4x1xf32> to vector<2x16x1xf32>
    %183 = vector.broadcast %182 : vector<2x16x1xf32> to vector<2x16x14xf32>
    %184 = arith.subf %172, %183 : vector<2x16x14xf32>
    %185 = arith.mulf %184, %184 : vector<2x16x14xf32>
    %cst_19 = arith.constant dense<0.000000e+00> : vector<2x16xf32>
    %186 = vector.multi_reduction <add>, %185, %cst_19 [2] : vector<2x16x14xf32> to vector<2x16xf32>
    %187 = vector.shape_cast %186 : vector<2x16xf32> to vector<2x16x1xf32>
    %188 = vector.shape_cast %187 : vector<2x16x1xf32> to vector<2x4x4x1xf32>
    %cst_20 = arith.constant dense<0.000000e+00> : vector<2x4x1xf32>
    %189 = vector.multi_reduction <add>, %188, %cst_20 [2] : vector<2x4x4x1xf32> to vector<2x4x1xf32>
    %190 = vector.shape_cast %189 : vector<2x4x1xf32> to vector<2x4x1x1xf32>
    %cst_21 = arith.constant 5.600000e+01 : f32
    %191 = vector.broadcast %cst_21 : f32 to vector<2x4x1x1xf32>
    %192 = arith.divf %190, %191 : vector<2x4x1x1xf32>
    %cst_22 = arith.constant 9.99999974E-6 : f32
    %193 = vector.broadcast %cst_22 : f32 to vector<2x4x1x1xf32>
    %194 = arith.addf %192, %193 : vector<2x4x1x1xf32>
    %195 = math.rsqrt %194 : vector<2x4x1x1xf32>
    %196 = vector.shape_cast %195 : vector<2x4x1x1xf32> to vector<2x4x1x1xf32>
    %197 = vector.broadcast %196 : vector<2x4x1x1xf32> to vector<2x4x4x1xf32>
    %198 = vector.shape_cast %197 : vector<2x4x4x1xf32> to vector<2x16x1xf32>
    %199 = vector.broadcast %198 : vector<2x16x1xf32> to vector<2x16x14xf32>
    %200 = arith.mulf %184, %199 : vector<2x16x14xf32>
    %201 = vector.shape_cast %9 : vector<16x1xf32> to vector<1x16x1xf32>
    %202 = vector.broadcast %201 : vector<1x16x1xf32> to vector<2x16x14xf32>
    %203 = arith.mulf %200, %202 : vector<2x16x14xf32>
    %204 = vector.shape_cast %10 : vector<16x1xf32> to vector<1x16x1xf32>
    %205 = vector.broadcast %204 : vector<1x16x1xf32> to vector<2x16x14xf32>
    %206 = arith.addf %203, %205 : vector<2x16x14xf32>
    %207 = arith.negf %206 : vector<2x16x14xf32>
    %208 = math.exp %207 : vector<2x16x14xf32>
    %cst_23 = arith.constant 1.000000e+00 : f32
    %209 = vector.broadcast %cst_23 : f32 to vector<2x16x14xf32>
    %210 = arith.addf %209, %208 : vector<2x16x14xf32>
    %211 = arith.divf %209, %210 : vector<2x16x14xf32>
    %212 = vector.shape_cast %116 : vector<2x16x14xf32> to vector<32x14xf32>
    %213 = vector.extract_strided_slice %4 {offsets = [0, 0], sizes = [14, 196], strides = [1, 1]} : vector<28x196xf32> to vector<14x196xf32>
    %cst_24 = arith.constant dense<0.000000e+00> : vector<32x196xf32>
    %214 = tpu.matmul %212, %213, %cst_24 {dimension_numbers = #tpu.dot_dimension_numbers<[1], [0], [0], [1], [0, 0, 1, 1], [], []>} : vector<32x14xf32>, vector<14x196xf32>, vector<32x196xf32> -> vector<32x196xf32>
    %215 = vector.shape_cast %211 : vector<2x16x14xf32> to vector<32x14xf32>
    %216 = vector.extract_strided_slice %4 {offsets = [14, 0], sizes = [14, 196], strides = [1, 1]} : vector<28x196xf32> to vector<14x196xf32>
    %cst_25 = arith.constant dense<0.000000e+00> : vector<32x196xf32>
    %217 = tpu.matmul %215, %216, %cst_25 {dimension_numbers = #tpu.dot_dimension_numbers<[1], [0], [0], [1], [0, 0, 1, 1], [], []>} : vector<32x14xf32>, vector<14x196xf32>, vector<32x196xf32> -> vector<32x196xf32>
    %218 = arith.mulf %1, %214 : vector<32x196xf32>
    %219 = arith.mulf %218, %217 : vector<32x196xf32>
    %220 = vector.extract_strided_slice %3 {offsets = [0, 44], sizes = [196, 4], strides = [1, 1]} : vector<196x48xf32> to vector<196x4xf32>
    %cst_26 = arith.constant dense<0.000000e+00> : vector<32x4xf32>
    %221 = tpu.matmul %219, %220, %cst_26 {dimension_numbers = #tpu.dot_dimension_numbers<[1], [0], [0], [1], [0, 0, 1, 1], [], []>} : vector<32x196xf32>, vector<196x4xf32>, vector<32x4xf32> -> vector<32x4xf32>
    %222 = vector.shape_cast %221 : vector<32x4xf32> to vector<2x16x4xf32>
    %cst_27 = arith.constant dense<0.000000e+00> : vector<2x16xf32>
    %223 = vector.multi_reduction <add>, %222, %cst_27 [2] : vector<2x16x4xf32> to vector<2x16xf32>
    %224 = vector.shape_cast %223 : vector<2x16xf32> to vector<2x16x1xf32>
    %cst_28 = arith.constant dense<0.000000e+00> : vector<2x1xf32>
    %225 = vector.multi_reduction <add>, %224, %cst_28 [1] : vector<2x16x1xf32> to vector<2x1xf32>
    %226 = vector.shape_cast %225 : vector<2x1xf32> to vector<2x1x1xf32>
    %cst_29 = arith.constant 6.400000e+01 : f32
    %227 = vector.broadcast %cst_29 : f32 to vector<2x1x1xf32>
    %228 = arith.divf %226, %227 : vector<2x1x1xf32>
    %229 = vector.broadcast %228 : vector<2x1x1xf32> to vector<2x16x4xf32>
    %230 = arith.subf %222, %229 : vector<2x16x4xf32>
    %231 = arith.mulf %230, %230 : vector<2x16x4xf32>
    %cst_30 = arith.constant dense<0.000000e+00> : vector<2x16xf32>
    %232 = vector.multi_reduction <add>, %231, %cst_30 [2] : vector<2x16x4xf32> to vector<2x16xf32>
    %233 = vector.shape_cast %232 : vector<2x16xf32> to vector<2x16x1xf32>
    %cst_31 = arith.constant dense<0.000000e+00> : vector<2x1xf32>
    %234 = vector.multi_reduction <add>, %233, %cst_31 [1] : vector<2x16x1xf32> to vector<2x1xf32>
    %235 = vector.shape_cast %234 : vector<2x1xf32> to vector<2x1x1xf32>
    %cst_32 = arith.constant 6.400000e+01 : f32
    %236 = vector.broadcast %cst_32 : f32 to vector<2x1x1xf32>
    %237 = arith.divf %235, %236 : vector<2x1x1xf32>
    %cst_33 = arith.constant 9.99999974E-6 : f32
    %238 = vector.broadcast %cst_33 : f32 to vector<2x1x1xf32>
    %239 = arith.addf %237, %238 : vector<2x1x1xf32>
    %240 = math.rsqrt %239 : vector<2x1x1xf32>
    %241 = vector.broadcast %240 : vector<2x1x1xf32> to vector<2x16x4xf32>
    %242 = arith.mulf %230, %241 : vector<2x16x4xf32>
    %243 = vector.shape_cast %11 : vector<16x1xf32> to vector<1x16x1xf32>
    %244 = vector.broadcast %243 : vector<1x16x1xf32> to vector<2x16x4xf32>
    %245 = arith.mulf %242, %244 : vector<2x16x4xf32>
    %246 = vector.shape_cast %12 : vector<16x1xf32> to vector<1x16x1xf32>
    %247 = vector.broadcast %246 : vector<1x16x1xf32> to vector<2x16x4xf32>
    %248 = arith.addf %245, %247 : vector<2x16x4xf32>
    %249 = vector.shape_cast %13 : vector<16x1xf32> to vector<1x16x1xf32>
    %250 = vector.broadcast %249 : vector<1x16x1xf32> to vector<2x16x4xf32>
    %251 = arith.mulf %248, %250 : vector<2x16x4xf32>
    %252 = vector.shape_cast %251 : vector<2x16x4xf32> to vector<8x4x4xf32>
    %253 = vector.shape_cast %14 : vector<16x1xf32> to vector<1x16x1xf32>
    %254 = vector.broadcast %253 : vector<1x16x1xf32> to vector<2x16x4xf32>
    %255 = arith.mulf %248, %254 : vector<2x16x4xf32>
    %256 = vector.shape_cast %255 : vector<2x16x4xf32> to vector<8x4x4xf32>
    %257 = vector.shape_cast %15 : vector<16x1xf32> to vector<1x16x1xf32>
    %258 = vector.broadcast %257 : vector<1x16x1xf32> to vector<2x16x4xf32>
    %259 = arith.mulf %248, %258 : vector<2x16x4xf32>
    %260 = vector.shape_cast %259 : vector<2x16x4xf32> to vector<8x4x4xf32>
    "tpu.trace_start"() <{level = 10 : i32, message = "zdn,zen->zde"}> : () -> ()
    %cst_34 = arith.constant dense<0.000000e+00> : vector<8x4x4xf32>
    %261 = tpu.matmul %252, %256, %cst_34 {dimension_numbers = #tpu.dot_dimension_numbers<[2], [2], [1], [1], [0, 0, 0, 1, 1, 1], [0], [0]>} : vector<8x4x4xf32>, vector<8x4x4xf32>, vector<8x4x4xf32> -> vector<8x4x4xf32>
    "tpu.trace_stop"() : () -> ()
    %cst_35 = arith.constant 5.000000e-01 : f32
    %262 = vector.broadcast %cst_35 : f32 to vector<8x4x4xf32>
    %263 = arith.mulf %261, %262 : vector<8x4x4xf32>
    %cst_36 = arith.constant dense<0xFF800000> : vector<8x4xf32>
    %264 = vector.multi_reduction <maximumf>, %263, %cst_36 [2] : vector<8x4x4xf32> to vector<8x4xf32>
    %265 = vector.shape_cast %264 : vector<8x4xf32> to vector<8x4x1xf32>
    %266 = vector.broadcast %265 : vector<8x4x1xf32> to vector<8x4x4xf32>
    %267 = arith.subf %263, %266 : vector<8x4x4xf32>
    %268 = math.exp %267 : vector<8x4x4xf32>
    %cst_37 = arith.constant dense<0.000000e+00> : vector<8x4xf32>
    %269 = vector.multi_reduction <add>, %268, %cst_37 [2] : vector<8x4x4xf32> to vector<8x4xf32>
    %270 = vector.shape_cast %269 : vector<8x4xf32> to vector<8x4x1xf32>
    %271 = tpu.reciprocal %270 {approx = true} : vector<8x4x1xf32> -> vector<8x4x1xf32>
    %272 = vector.broadcast %271 : vector<8x4x1xf32> to vector<8x4x4xf32>
    %273 = arith.mulf %268, %272 : vector<8x4x4xf32>
    %cst_38 = arith.constant dense<0.000000e+00> : vector<8x4xf32>
    %274 = vector.multi_reduction <add>, %260, %cst_38 [2] : vector<8x4x4xf32> to vector<8x4xf32>
    %275 = vector.shape_cast %274 : vector<8x4xf32> to vector<8x4x1xf32>
    %cst_39 = arith.constant 4.000000e+00 : f32
    %276 = vector.broadcast %cst_39 : f32 to vector<8x4x1xf32>
    %277 = arith.divf %275, %276 : vector<8x4x1xf32>
    "tpu.trace_start"() <{level = 10 : i32, message = "zde,zeo->zdo"}> : () -> ()
    %cst_40 = arith.constant dense<0.000000e+00> : vector<8x4x1xf32>
    %278 = tpu.matmul %273, %277, %cst_40 {dimension_numbers = #tpu.dot_dimension_numbers<[2], [1], [1], [2], [0, 0, 0, 1, 1, 2], [0], [0]>} : vector<8x4x4xf32>, vector<8x4x1xf32>, vector<8x4x1xf32> -> vector<8x4x1xf32>
    "tpu.trace_stop"() : () -> ()
    %279 = arith.negf %278 : vector<8x4x1xf32>
    %280 = math.exp %279 : vector<8x4x1xf32>
    %cst_41 = arith.constant 1.000000e+00 : f32
    %281 = vector.broadcast %cst_41 : f32 to vector<8x4x1xf32>
    %282 = arith.addf %281, %280 : vector<8x4x1xf32>
    %283 = arith.divf %281, %282 : vector<8x4x1xf32>
    %284 = vector.shape_cast %283 : vector<8x4x1xf32> to vector<32x1xf32>
    %285 = vector.broadcast %284 : vector<32x1xf32> to vector<32x196xf32>
    %286 = arith.mulf %219, %285 : vector<32x196xf32>
    %287 = vector.shape_cast %286 : vector<32x196xf32> to vector<2x16x196xf32>
    %c0_42 = arith.constant 0 : index
    %c0_43 = arith.constant 0 : index
    %c0_44 = arith.constant 0 : index
    %288 = vector.load %arg5[%c0_42, %c0_43, %c0_44] : memref<2x16x196xf32, #tpu.memory_space<vmem>>, vector<2x16x196xf32>
    tpu.vector_store %arg5[%c0_42, %c0_43, %c0_44], %287 {strides = array<i32>} : memref<2x16x196xf32, #tpu.memory_space<vmem>>, vector<2x16x196xf32>,
    return
  }
  func.func @transform_0(%arg0: i32) -> (i32, i32, i32) {
    %c0_i32 = arith.constant 0 : i32
    %c0_i32_0 = arith.constant 0 : i32
    %c0_i32_1 = arith.constant 0 : i32
    return %arg0, %c0_i32, %c0_i32_0 : i32, i32, i32
  }
  func.func @transform_1(%arg0: i32) -> (i32, i32) {
    %c0_i32 = arith.constant 0 : i32
    %c0_i32_0 = arith.constant 0 : i32
    %c0_i32_1 = arith.constant 0 : i32
    return %c0_i32, %c0_i32_0 : i32, i32
  }
  func.func @transform_2(%arg0: i32) -> (i32, i32) {
    %c0_i32 = arith.constant 0 : i32
    %c0_i32_0 = arith.constant 0 : i32
    %c0_i32_1 = arith.constant 0 : i32
    return %c0_i32, %c0_i32_0 : i32, i32
  }
  func.func @transform_3(%arg0: i32) -> (i32, i32) {
    %c0_i32 = arith.constant 0 : i32
    %c0_i32_0 = arith.constant 0 : i32
    %c0_i32_1 = arith.constant 0 : i32
    return %c0_i32, %c0_i32_0 : i32, i32
  }
  func.func @transform_4(%arg0: i32) -> (i32, i32, i32) {
    %c0_i32 = arith.constant 0 : i32
    %c0_i32_0 = arith.constant 0 : i32
    %c0_i32_1 = arith.constant 0 : i32
    return %arg0, %c0_i32, %c0_i32_0 : i32, i32, i32
  }
}

</mosaic_0001>

<bundles_post_ra>
// kernel: tpu_custom_call.1
= control target key start
LH: loop header
LB: loop body
LE: loop exit
PB: predicated region body
PF: predicated region fallthrough
CT: control target
= control target key end

     0   :  { %9 = vsyncpa [#allocation3], 0  ;;  %s5337_s0 = inlined_call_operand.vmem [shape: f32[4,16,196], index: 0, kind: input, shape index: {}]   ;;  %s5338_s1 = inlined_call_operand.vmem [shape: f32[16,19], index: 1, kind: input, shape index: {}]   ;;  %s5339_s2 = inlined_call_operand.vmem [shape: f32[196,48], index: 2, kind: input, shape index: {}]   ;;  %s5340_s3 = inlined_call_operand.vmem [shape: f32[28,196], index: 3, kind: input, shape index: {}]   ;;  %s5341_s4 = inlined_call_operand.hbm [shape: f32[4,16,196], index: 4, kind: output, shape index: {}]  }
   0x1   :  { %11 = vsyncpa [#allocation3 + $0x1], 0  ;;  %s4281_s15 = smov 0   ;;  %s4283_s16 = smov 0  }
   0x2   :  { %s4285_s17 = smov 0   ;;  %s4287_s18 = smov 0  }
   0x3 LB: > { %s4302_s19 = sadd.s32 4294967295, %s4217_s18   ;;  %s3675_s20 = sadd.s32 4294967294, %s4217_s18   ;;  %s4217_s18 = sphi %s4287_s18, %s5347_s18   ;;  %s4213_s17 = sphi %s4285_s17, %s5346_s17   ;;  %s4209_s16 = sphi %s4283_s16, %s5345_s16   ;;  %s4205_s15 = sphi %s4281_s15, %s5344_s15  }
   0x4   : > { %s4306_s21 = sadd.s32 1, %s4217_s18   ;;  %s113_s22 = sadd.s32 1, %s4213_s17 }
   0x5   : > { %s110_s23 = ssub.s32 %s4217_s18, %s4306_s21  ;;  %p123_p0 = scmp.ne.s32.totalorder %s4213_s17, %s4209_s16 }
   0x6   : > { %p111_p1 = scmp.eq.s32.totalorder %s110_s23, 0  ;;  %p124_p2 = scmp.eq.s32.totalorder %s4302_s19, 1 }
   0x7   : > { %p129_p3 = scmp.ne.s32.totalorder %s4209_s16, %s4205_s15  ;;  %p130_p4 = scmp.eq.s32.totalorder %s3675_s20, 1 }
   0x8   : > { %s4317_s24 = scalar_select %p111_p1, %s4213_s17, %s113_s22  }
   0x9   : > { %p4319_p5 = por %p124_p2, %p123_p0  ;;  %p4323_p6 = por %p130_p4, %p129_p3 }
   0xa   : > { %p3678_p7 = scmp.ge.s32.totalorder %s4217_s18, 1  ;;  %p167_p8 = scmp.lt.s32.totalorder %s4217_s18, 3 }
   0xc   : > { %p168_p9 = pnand %p3678_p7, %p167_p8 }
   0xd   : > { %s3680_s29 = sshll.u32 (!%p168_p9), %s4302_s19, 1  ;;  %s4230_s11 = smov (!%p168_p9), 126  }
   0xe   : > { %171 = sbr.rel (%p168_p9) target bundleno = 3097 (0xc19), region = 36  ;;  %p195_p10 = scmp.lt.s32.totalorder (!%p168_p9), %s3680_s29, 3 }
   0xf   : > { %s4231_s12 = smov (!%p168_p9), 127   ;;  %s4232_s14 = smov (!%p168_p9), 125  }
  0x10   : > { %s4233_s20 = smov (!%p168_p9), 121   ;;  %s4234_s22 = smov (!%p168_p9), 124  }
  0x11   : > { %s4235_s23 = smov (!%p168_p9), 120   ;;  %s4236_s27 = smov (!%p168_p9), 123  }
  0x12   : > { %s4237_s28 = smov (!%p168_p9), 122   ;;  %s4241_s30 = smov (!%p168_p9), 22  }
  0x13   : > { %v227_v0 = vld [vmem:[%s5339_s2 + $0x78] sm:$0xff]  ;;  %v4219_v1 = vmov 0.0   ;;  %v226_v2 = vld [vmem:[%s5339_s2 + $0x70] sm:$0xff]  ;;  %v4220_v3 = vmov 1   ;;  %v225_v4 = vld [vmem:[%s5339_s2 + $0x68] sm:$0xff]  ;;  %s5349_s29 = smov (!%p195_p10, %s3680_s29), 3 }
  0x14   : > { %262 = vmatprep.subr.mxu0 %v4219_v1  ;;  %1554 = vmatprep.mubr.f32.mxu1 %v4219_v1  ;;  %v224_v5 = vld [vmem:[%s5339_s2 + $0x60] sm:$0xff]  ;;  %s3759_s10 = sshll.u32 %s5349_s29, 5  ;;  %vm245_vm0 = vcmask 556032   ;;  %v223_v6 = vld [vmem:[%s5339_s2 + $0x58] sm:$0xff]  ;;  %v222_v8 = vld [vmem:[%s5339_s2 + $0x50] sm:$0xff]  ;;  %v4221_v14 = vmov 3  }
  0x15   : > { %263 = vmatpush1.msra.mxu0 %v227_v0  ;;  %3951 = vset.pattern.permute.xlu1 %v4220_v3  ;;  %s4349_s13 = scalar_lea.vmem %s5337_s0, %s3759_s10  ;;  %v221_v9 = vld [vmem:[%s5339_s2 + $0x48] sm:$0xff]  ;;  %v4373_v11 = vld [vmem:[%s5338_s1] sm:$0xff]  ;;  %v219_v13 = vld [vmem:[%s5339_s2 + $0x38] sm:$0xff]  ;;  %v4222_v16 = vmov 2   ;;  %v4223_v20 = vmov 4   ;;  %vm258_vm1 = vcmask 1043456  }
  0x16   : > { %264 = vmatprep.subr.mxu0 %v4219_v1  ;;  %3949 = vset.pattern.permute.xlu0 %v4220_v3  ;;  %v203_v7 = vld [vmem:[%s4349_s13 + $0x8] sm:$0xff]  ;;  %v220_v12 = vld [vmem:[%s5339_s2 + $0x40] sm:$0xff]  ;;  %v218_v15 = vld [vmem:[%s5339_s2 + $0x30] sm:$0xff]  ;;  %v4224_v25 = vmov 5   ;;  %v4225_v29 = vmov 6   ;;  %v4226_v30 = vmov 8  }
  0x17   : > { %265 = vmatpush1.msra.mxu0 %v226_v2  ;;  %3684 = vmatprep.mubr.msk.f32.mxu0 %vm245_vm0, %v203_v7  ;;  %v4368_v10 = vld [vmem:[%s5338_s1 + $0x8] sm:$0xff]  ;;  %v216_v18 = vld [vmem:[%s5339_s2 + $0x20] sm:$0xff]  ;;  %v215_v19 = vld [vmem:[%s5339_s2 + $0x18] sm:$0xff]  ;;  %v4227_v34 = vmov 7   ;;  %v4228_v35 = vmov 0   ;;  %v4229_v40 = vmov 9  }
  0x18   : > { %266 = vmatprep.subr.mxu0 %v4219_v1  ;;  %366 = vperm.xlu1 %3951, %v4368_v10   ;;  %v217_v17 = vld [vmem:[%s5339_s2 + $0x28] sm:$0xff]  ;;  %v214_v21 = vld [vmem:[%s5339_s2 + $0x10] sm:$0xff]  ;;  %v212_v23 = vld [vmem:[%s5339_s2] sm:$0xff]  ;;  %s4238_s29 = smov 106   ;;  %vm629_vm2 = vcmask 113664   ;;  %vm1483_vm3 = vcmask 1045504  }
  0x19   : > { %267 = vmatpush1.msra.mxu0 %v225_v4  ;;  %362 = vperm.xlu0 %3949, %v4373_v11   ;;  %v213_v22 = vld [vmem:[%s5339_s2 + $0x8] sm:$0xff]  ;;  %v236_v24 = vld [vmem:[%s5339_s2 + $0xc0] sm:$0xf]  ;;  %v235_v26 = vld [vmem:[%s5339_s2 + $0xb8] sm:$0xff]  ;;  %vm1595_vm4 = vcmask 1041408   ;;  %s4246_s10 = smov 84  }
  0x1a   : > { %268 = vmatprep.subr.mxu0 %v4219_v1  ;;  %v234_v27 = vld [vmem:[%s5339_s2 + $0xb0] sm:$0xff]  ;;  %v233_v28 = vld [vmem:[%s5339_s2 + $0xa8] sm:$0xff]  ;;  %v232_v31 = vld [vmem:[%s5339_s2 + $0xa0] sm:$0xff]  ;;  %vm1922_vm5 = vcmask 31744   ;;  %vm4251_vm6 = vmmov 0   ;;  %vm2684_vm7 = vcmask 27648  }
  0x1b   : > { %269 = vmatpush1.msra.mxu0 %v224_v5  ;;  %v231_v32 = vld [vmem:[%s5339_s2 + $0x98] sm:$0xff]  ;;  %v230_v33 = vld [vmem:[%s5339_s2 + $0x90] sm:$0xff]  ;;  %v229_v36 = vld [vmem:[%s5339_s2 + $0x88] sm:$0xff]  ;;  %s3761_s6 = sshll.u32 %s4302_s19, 10 }
  0x1c   : > { %270 = vmatprep.subr.mxu0 %v4219_v1  ;;  %3952 = vset.pattern.permute.xlu1 %v4221_v14  ;;  %v228_v37 = vld [vmem:[%s5339_s2 + $0x80] sm:$0xff]  ;;  %v205_v39 = vld [vmem:[%s4349_s13 + $0x18] sm:$0xff]  ;;  %v204_v41 = vld [vmem:[%s4349_s13 + $0x10] sm:$0xff] }
  0x1d   : > { %271 = vmatpush1.msra.mxu0 %v223_v6  ;;  %426 = vperm.xlu1 %3952, %v4373_v11   ;;  %v202_v38 = vld [vmem:[%s4349_s13] sm:$0xff]  ;;  %v207_v42 = vld [vmem:[%s4349_s13 + $0x28] sm:$0xff]  ;;  %v209_v44 = vld [vmem:[%s4349_s13 + $0x38] sm:$0xff] }
  0x1e   : > { %272 = vmatprep.subr.mxu0 %v4219_v1  ;;  %3950 = vset.pattern.permute.xlu0 %v4222_v16  ;;  %v206_v43 = vld [vmem:[%s4349_s13 + $0x20] sm:$0xff]  ;;  %v208_v45 = vld [vmem:[%s4349_s13 + $0x30] sm:$0xff] }
  0x1f   : > { %273 = vmatpush1.msra.mxu0 %v222_v8  ;;  %394 = vperm.xlu0 %3950, %v4373_v11  }
  0x20   : > { %274 = vmatprep.subr.mxu0 %v4219_v1 }
  0x21   : > { %275 = vmatpush1.msra.mxu0 %v221_v9  ;;  %3953 = vset.pattern.permute.xlu1 %v4222_v16 }
  0x22   : > { %276 = vmatprep.subr.mxu0 %v4219_v1  ;;  %398 = vperm.xlu1 %3953, %v4368_v10  }
  0x23   : > { %277 = vmatpush1.msra.mxu0 %v220_v12  ;;  %3954 = vset.pattern.permute.xlu0 %v4223_v20 }
  0x24   : > { %278 = vmatprep.subr.mxu0 %v4219_v1  ;;  %458 = vperm.xlu0 %3954, %v4373_v11  }
  0x25   : > { %279 = vmatpush1.msra.mxu0 %v219_v13 }
  0x26   : > { %280 = vmatprep.subr.mxu0 %v4219_v1  ;;  %3955 = vset.pattern.permute.xlu1 %v4221_v14 }
  0x27   : > { %281 = vmatpush1.msra.mxu0 %v218_v15  ;;  %430 = vperm.xlu1 %3955, %v4368_v10  }
  0x28   : > { %282 = vmatprep.subr.mxu0 %v4219_v1  ;;  %462 = vperm.xlu0 %3954, %v4368_v10  }
  0x29   : > { %283 = vmatpush1.msra.mxu0 %v217_v17 }
  0x2a   : > { %284 = vmatprep.subr.mxu0 %v4219_v1 }
  0x2b   : > { %285 = vmatpush1.msra.mxu0 %v216_v18  ;;  %3956 = vset.pattern.permute.xlu1 %v4224_v25 }
  0x2c   : > { %286 = vmatprep.subr.mxu0 %v4219_v1  ;;  %3958 = vset.pattern.permute.xlu0 %v4224_v25 }
  0x2d   : > { %287 = vmatpush1.msra.mxu0 %v215_v19  ;;  %490 = vperm.xlu1 %3956, %v4373_v11  }
  0x2e   : > { %288 = vmatprep.subr.mxu0 %v4219_v1  ;;  %494 = vperm.xlu0 %3958, %v4368_v10  }
  0x2f   : > { %289 = vmatpush1.msra.mxu0 %v214_v21 }
  0x30   : > { %290 = vmatprep.subr.mxu0 %v4219_v1 }
  0x31   : > { %291 = vmatpush1.msra.mxu0 %v213_v22  ;;  %3957 = vset.pattern.permute.xlu1 %v4225_v29 }
  0x32   : > { %292 = vmatprep.subr.mxu0 %v4219_v1  ;;  %3961 = vset.pattern.permute.xlu0 %v4226_v30 }
  0x33   : > { %293 = vmatpush1.msra.mxu0 %v212_v23  ;;  %522 = vperm.xlu1 %3957, %v4373_v11  }
  0x34   : > { %308 = vmatprep.subr.mxu0 %v4219_v1  ;;  %586 = vperm.xlu0 %3961, %v4373_v11  }
  0x35   : > { %3683 = vmatpush2.msk.msra.mxu0 %vm258_vm1, %v236_v24 }
  0x36   : > { %310 = vmatprep.subr.mxu0 %v4219_v1 }
  0x37   : > { %311 = vmatpush2.msra.mxu0 %v235_v26  ;;  %3959 = vset.pattern.permute.xlu1 %v4227_v34 }
  0x38   : > { %312 = vmatprep.subr.mxu0 %v4219_v1  ;;  %3964 = vset.pattern.permute.xlu0 %v4228_v35 }
  0x39   : > { %313 = vmatpush2.msra.mxu0 %v234_v27  ;;  %554 = vperm.xlu1 %3959, %v4373_v11  }
  0x3a   : > { %314 = vmatprep.subr.mxu0 %v4219_v1  ;;  %349 = vperm.xlu0 %3964, %v4373_v11  }
  0x3b   : > { %315 = vmatpush2.msra.mxu0 %v233_v28 }
  0x3c   : > { %316 = vmatprep.subr.mxu0 %v4219_v1 }
  0x3d   : > { %317 = vmatpush2.msra.mxu0 %v232_v31  ;;  %3960 = vset.pattern.permute.xlu1 %v4225_v29 }
  0x3e   : > { %318 = vmatprep.subr.mxu0 %v4219_v1  ;;  %526 = vperm.xlu1 %3960, %v4368_v10  }
  0x3f   : > { %319 = vmatpush2.msra.mxu0 %v231_v32  ;;  %3967 = vset.pattern.permute.xlu0 %v4229_v40 }
  0x40   : > { %320 = vmatprep.subr.mxu0 %v4219_v1  ;;  %622 = vperm.xlu0 %3967, %v4368_v10  }
  0x41   : > { %321 = vmatpush2.msra.mxu0 %v230_v33 }
  0x42   : > { %322 = vmatprep.subr.mxu0 %v4219_v1  ;;  %3962 = vset.pattern.permute.xlu1 %v4227_v34 }
  0x43   : > { %323 = vmatpush2.msra.mxu0 %v229_v36  ;;  %558 = vperm.xlu1 %3962, %v4368_v10  }
  0x44   : > { %324 = vmatprep.subr.mxu0 %v4219_v1 }
  0x45   : > { %325 = vmatpush2.msra.mxu0 %v228_v37 }
  0x46   : > { %327 = vmatmul.mubr.f32.vlgmr.msra.gmra.mxu0 %v202_v38  ;;  %3794 = vmatprep.subr.mxu0 %v4219_v1 }
  0x47   : > { %3685 = vmatprep.mubr.msk.f32.mxu0 %vm245_vm0, %v205_v39  ;;  %3963 = vset.pattern.permute.xlu1 %v4226_v30 }
  0x48   : > { %590 = vperm.xlu1 %3963, %v4368_v10  }
  0x4a   : > { %332 = vmatmul.mubr.f32.gmra.mxu0 %v204_v41 }
  0x4b   : > { %3686 = vmatprep.mubr.msk.f32.mxu0 %vm245_vm0, %v207_v42 }
  0x4c   : > { %3965 = vset.pattern.permute.xlu1 %v4228_v35 }
  0x4d   : > { %354 = vperm.xlu1 %3965, %v4368_v10  }
  0x4e   : > { %337 = vmatmul.mubr.f32.gmra.mxu0 %v206_v43 }
  0x4f   : > { %3687 = vmatprep.mubr.msk.f32.mxu0 %vm245_vm0, %v209_v44 }
  0x51   : > { %3966 = vset.pattern.permute.xlu1 %v4229_v40 }
  0x52   : > { %342 = vmatmul.mubr.f32.gmra.mxu0 %v208_v45  ;;  %618 = vperm.xlu1 %3966, %v4373_v11  }
  0x53   : > { %3796 = vmatprep.mubr.msk.f32.mxu0 %vm4251_vm6, %v4219_v1 }
  0x93   : > { %v4482_v46 = vpop.permute.xlu1 %366 }
  0x94   : > { %v4486_v48 = vpop.permute.xlu0 %362 }
  0x98   : > { %v4484_v47 = vpop.permute.xlu1 %426 }
  0x9a   : > { %v395_v50 = vpop.permute.xlu0 %394 }
  0x9d   : > { %v4488_v49 = vpop.permute.xlu1 %398 }
  0x9f   : > { %v4492_v52 = vpop.permute.xlu0 %458 }
  0xa2   : > { %v4490_v51 = vpop.permute.xlu1 %430 }
  0xa3   : > { %v4496_v54 = vpop.permute.xlu0 %462 }
  0xa8   : > { %v4494_v53 = vpop.permute.xlu1 %490 }
  0xa9   : > { %v4502_v57 = vpop.permute.xlu0 %494 }
  0xae   : > { %v4498_v55 = vpop.permute.xlu1 %522 }
  0xaf   : > { %v4519_v3 = vpop.permute.xlu0 %586 }
  0xb4   : > { %v4507_v60 = vpop.permute.xlu1 %554 }
  0xb5   : > { %v350_v42 = vpop.permute.xlu0 %349 }
  0xb9   : > { %v527_v14 = vpop.permute.xlu1 %526 }
  0xbb   : > { %v4604_v45 = vpop.permute.xlu0 %622 }
  0xbe   : > { %v559_v19 = vpop.permute.xlu1 %558 }
  0xc3   : > { %v591_v23 = vpop.permute.xlu1 %590 }
  0xc8   : > { %v355_v43 = vpop.permute.xlu1 %354 }
  0xcd   : > { %v4602_v44 = vpop.permute.xlu1 %618 }
 0x106   : > { %v4500_v56 = vpop.f32.mrf.mxu0 }
 0x107   : > { %v401_v58 = vmul.f32 %v395_v50, %v4500_v56  ;;  %v369_v59 = vmul.f32 %v4486_v48, %v4500_v56  ;;  %v433_v63 = vmul.f32 %v4484_v47, %v4500_v56  ;;  %v561_v0 = vmul.f32 %v4507_v60, %v4500_v56 }
 0x108   : > { %v330_v61 = vpop.f32.mrf.mxu0  ;;  %v465_v5 = vmul.f32 %v4492_v52, %v4500_v56  ;;  %v593_v6 = vmul.f32 %v4519_v3, %v4500_v56  ;;  %v497_v9 = vmul.f32 %v4494_v53, %v4500_v56  ;;  %v529_v15 = vmul.f32 %v4498_v55, %v4500_v56 }
 0x109   : > { %409 = vrot.lane.b32.xlu0 %v401_v58, %s4230_s11  ;;  %377 = vrot.lane.b32.xlu1 %v369_v59, %s4231_s12 }
 0x10a   : > { %v4511_v62 = vpop.f32.mrf.mxu0 }
 0x10b   : > { %v370_v12 = vmul.f32 %v4482_v46, %v4511_v62  ;;  %v402_v16 = vmul.f32 %v4488_v49, %v4511_v62  ;;  %v498_v17 = vmul.f32 %v4502_v57, %v4511_v62  ;;  %v434_v18 = vmul.f32 %v4490_v51, %v4511_v62 }
 0x10c   : > { %v335_v2 = vpop.f32.mrf.mxu0  ;;  %v530_v20 = vmul.f32 %v527_v14, %v4511_v62  ;;  %v466_v21 = vmul.f32 %v4496_v54, %v4511_v62  ;;  %v562_v22 = vmul.f32 %v559_v19, %v4511_v62  ;;  %v594_v25 = vmul.f32 %v591_v23, %v4511_v62 }
 0x10d   : > { %441 = vrot.lane.b32.xlu0 %v433_v63, %s4232_s14  ;;  %569 = vrot.lane.b32.xlu1 %v561_v0, %s4233_s20  ;;  %v358_v0 = vmul.f32 %v355_v43, %v4511_v62 }
 0x10e   : > { %v4521_v4 = vpop.f32.mrf.mxu0 }
 0x10f   : > { %v403_v24 = vmul.f32 %v395_v50, %v4521_v4  ;;  %v371_v27 = vmul.f32 %v4486_v48, %v4521_v4  ;;  %v435_v29 = vmul.f32 %v4484_v47, %v4521_v4  ;;  %v467_v31 = vmul.f32 %v4492_v52, %v4521_v4 }
 0x110   : > { %v340_v7 = vpop.f32.mrf.mxu0  ;;  %v499_v33 = vmul.f32 %v4494_v53, %v4521_v4  ;;  %v531_v37 = vmul.f32 %v4498_v55, %v4521_v4  ;;  %v563_v39 = vmul.f32 %v4507_v60, %v4521_v4  ;;  %v595_v40 = vmul.f32 %v4519_v3, %v4521_v4 }
 0x111   : > { %473 = vrot.lane.b32.xlu0 %v465_v5, %s4234_s22  ;;  %601 = vrot.lane.b32.xlu1 %v593_v6, %s4235_s23  ;;  %v357_v48 = vmul.f32 %v350_v42, %v4500_v56 }
 0x112   : > { %v4529_v8 = vpop.f32.mrf.mxu0 }
 0x113   : > { %v372_v26 = vmul.f32 %v4482_v46, %v4529_v8  ;;  %v404_v28 = vmul.f32 %v4488_v49, %v4529_v8  ;;  %v436_v30 = vmul.f32 %v4490_v51, %v4529_v8  ;;  %v468_v32 = vmul.f32 %v4496_v54, %v4529_v8 }
 0x114   : > { %v345_v13 = vpop.f32.mrf.mxu0  ;;  %v500_v34 = vmul.f32 %v4502_v57, %v4529_v8  ;;  %v532_v36 = vmul.f32 %v527_v14, %v4529_v8  ;;  %v564_v38 = vmul.f32 %v559_v19, %v4529_v8  ;;  %v596_v41 = vmul.f32 %v591_v23, %v4529_v8 }
 0x115   : > { %505 = vrot.lane.b32.xlu0 %v497_v9, %s4236_s27  ;;  %379 = vrot.lane.b32.xlu1 %v370_v12, %s4231_s12 }
 0x119   : > { %537 = vrot.lane.b32.xlu0 %v529_v15, %s4237_s28  ;;  %411 = vrot.lane.b32.xlu1 %v402_v16, %s4230_s11 }
 0x11d   : > { %507 = vrot.lane.b32.xlu0 %v498_v17, %s4236_s27  ;;  %443 = vrot.lane.b32.xlu1 %v434_v18, %s4232_s14 }
 0x121   : > { %539 = vrot.lane.b32.xlu0 %v530_v20, %s4237_s28  ;;  %475 = vrot.lane.b32.xlu1 %v466_v21, %s4234_s22 }
 0x125   : > { %571 = vrot.lane.b32.xlu1 %v562_v22, %s4233_s20  ;;  %413 = vrot.lane.b32.xlu0 %v403_v24, %s4230_s11 }
 0x129   : > { %603 = vrot.lane.b32.xlu1 %v594_v25, %s4235_s23  ;;  %383 = vrot.lane.b32.xlu0 %v372_v26, %s4231_s12 }
 0x12d   : > { %381 = vrot.lane.b32.xlu1 %v371_v27, %s4231_s12  ;;  %415 = vrot.lane.b32.xlu0 %v404_v28, %s4230_s11  ;;  %s5286_s11 = scalar_lea.hbm %s5341_s4, %s3761_s6 }
 0x131   : > { %445 = vrot.lane.b32.xlu1 %v435_v29, %s4232_s14  ;;  %447 = vrot.lane.b32.xlu0 %v436_v30, %s4232_s14  ;;  %v359_v29 = vmul.f32 %v350_v42, %v4521_v4  ;;  %s4253_s14 = smov [#allocation2]  }
 0x135   : > { %477 = vrot.lane.b32.xlu1 %v467_v31, %s4234_s22  ;;  %479 = vrot.lane.b32.xlu0 %v468_v32, %s4234_s22 }
 0x139   : > { %509 = vrot.lane.b32.xlu1 %v499_v33, %s4236_s27  ;;  %511 = vrot.lane.b32.xlu0 %v500_v34, %s4236_s27 }
 0x13d   : > { %541 = vrot.lane.b32.xlu1 %v531_v37, %s4237_s28  ;;  %543 = vrot.lane.b32.xlu0 %v532_v36, %s4237_s28  ;;  %v360_v37 = vmul.f32 %v355_v43, %v4529_v8 }
 0x141   : > { %573 = vrot.lane.b32.xlu1 %v563_v39, %s4233_s20  ;;  %575 = vrot.lane.b32.xlu0 %v564_v38, %s4233_s20  ;;  %s4161_s20 = sshll.u32 %s4253_s14, 4  ;;  %s4162_s20 = int_to_ptr.vmem [resolvable:$false] %s4161_s20 }
 0x142   : > { %s4163_s22 = scalar_lea.vmem %s4162_s20, 2048 }
 0x145   : > { %605 = vrot.lane.b32.xlu1 %v595_v40, %s4235_s23 }
 0x149   : > { %607 = vrot.lane.b32.xlu1 %v596_v41, %s4235_s23 }
 0x17b   : > { %v410_v46 = vpop.permute.xlu0 %409  ;;  %v378_v47 = vpop.permute.xlu1 %377 }
 0x17c   : > { %v389_v49 = vadd.f32 %v378_v47, %v357_v48 }
 0x17e   : > { %v421_v52 = vadd.f32 %v410_v46, %v389_v49 }
 0x17f   : > { %v442_v50 = vpop.permute.xlu0 %441  ;;  %v570_v51 = vpop.permute.xlu1 %569 }
 0x180   : > { %v453_v55 = vadd.f32 %v442_v50, %v421_v52 }
 0x183   : > { %v474_v53 = vpop.permute.xlu0 %473  ;;  %v602_v54 = vpop.permute.xlu1 %601 }
 0x184   : > { %v485_v59 = vadd.f32 %v474_v53, %v453_v55 }
 0x187   : > { %v506_v57 = vpop.permute.xlu0 %505  ;;  %v380_v58 = vpop.permute.xlu1 %379 }
 0x188   : > { %v517_v60 = vadd.f32 %v506_v57, %v485_v59  ;;  %v390_v3 = vadd.f32 %v380_v58, %v358_v0 }
 0x18b   : > { %v538_v61 = vpop.permute.xlu0 %537  ;;  %v412_v63 = vpop.permute.xlu1 %411 }
 0x18c   : > { %v549_v2 = vadd.f32 %v538_v61, %v517_v60  ;;  %v422_v9 = vadd.f32 %v412_v63, %v390_v3 }
 0x18e   : > { %v581_v5 = vadd.f32 %v570_v51, %v549_v2 }
 0x18f   : > { %v508_v6 = vpop.permute.xlu0 %507  ;;  %v444_v56 = vpop.permute.xlu1 %443 }
 0x190   : > { %v613_v7 = vadd.f32 %v602_v54, %v581_v5  ;;  %v454_v12 = vadd.f32 %v444_v56, %v422_v9  ;;  %v4240_v9 = vmov 1985246804  }
 0x192   : > { %v4609_v13 = vadd.f32 %v4602_v44, %v613_v7  ;;  %v649_v7 = vlaneseq }
 0x193   : > { %v540_v14 = vpop.permute.xlu0 %539  ;;  %v476_v15 = vpop.permute.xlu1 %475 }
 0x194   : > { %v486_v16 = vadd.f32 %v476_v15, %v454_v12  ;;  %1031 = vrot.lane.b32.xlu0 %v4609_v13, %s4238_s29  ;;  %v654_v12 = vunpack.c.l.s4 %v4240_v9  ;;  %v650_v15 = vshrl.u32 %v649_v7, 7 }
 0x196   : > { %v518_v17 = vadd.f32 %v508_v6, %v486_v16  ;;  %v4239_v6 = vmov 839922192   ;;  %v655_v16 = vunpack.c.0.s8 %v654_v12 }
 0x197   : > { %v572_v62 = vpop.permute.xlu1 %571  ;;  %v414_v18 = vpop.permute.xlu0 %413  ;;  %v647_v56 = vunpack.c.l.s4 %v4239_v6 }
 0x198   : > { %v550_v19 = vadd.f32 %v540_v14, %v518_v17 }
 0x199   : > { %v648_v14 = vunpack.c.0.s8 %v647_v56 }
 0x19a   : > { %v582_v20 = vadd.f32 %v572_v62, %v550_v19  ;;  %v4636_v62 = vsub.s32 %v655_v16, %v650_v15 }
 0x19b   : > { %v604_v21 = vpop.permute.xlu1 %603  ;;  %v384_v22 = vpop.permute.xlu0 %383  ;;  %v4634_v17 = vsub.s32 %v648_v14, %v650_v15 }
 0x19c   : > { %v614_v23 = vadd.f32 %v604_v21, %v582_v20  ;;  %v392_v38 = vadd.f32 %v384_v22, %v360_v37 }
 0x19e   : > { %v4614_v24 = vadd.f32 %v4604_v45, %v614_v23 }
 0x19f   : > { %v382_v25 = vpop.permute.xlu1 %381  ;;  %v416_v26 = vpop.permute.xlu0 %415 }
 0x1a0   : > { %1033 = vrot.lane.b32.xlu1 %v4614_v24, %s4238_s29  ;;  %v391_v30 = vadd.f32 %v382_v25, %v359_v29  ;;  %v424_v41 = vadd.f32 %v416_v26, %v392_v38 }
 0x1a2   : > { %v423_v33 = vadd.f32 %v414_v18, %v391_v30 }
 0x1a3   : > { %v446_v27 = vpop.permute.xlu1 %445  ;;  %v448_v28 = vpop.permute.xlu0 %447 }
 0x1a4   : > { %v455_v39 = vadd.f32 %v446_v27, %v423_v33  ;;  %v456_v48 = vadd.f32 %v448_v28, %v424_v41 }
 0x1a7   : > { %v478_v31 = vpop.permute.xlu1 %477  ;;  %v480_v32 = vpop.permute.xlu0 %479 }
 0x1a8   : > { %v487_v46 = vadd.f32 %v478_v31, %v455_v39  ;;  %v488_v51 = vadd.f32 %v480_v32, %v456_v48 }
 0x1ab   : > { %v510_v34 = vpop.permute.xlu1 %509  ;;  %v512_v36 = vpop.permute.xlu0 %511 }
 0x1ac   : > { %v519_v49 = vadd.f32 %v510_v34, %v487_v46  ;;  %v520_v4 = vadd.f32 %v512_v36, %v488_v51 }
 0x1af   : > { %v542_v40 = vpop.permute.xlu1 %541  ;;  %v544_v47 = vpop.permute.xlu0 %543 }
 0x1b0   : > { %v551_v52 = vadd.f32 %v542_v40, %v519_v49  ;;  %v552_v55 = vadd.f32 %v544_v47, %v520_v4 }
 0x1b3   : > { %v574_v50 = vpop.permute.xlu1 %573  ;;  %v576_v53 = vpop.permute.xlu0 %575 }
 0x1b4   : > { %v583_v42 = vadd.f32 %v574_v50, %v551_v52  ;;  %v584_v58 = vadd.f32 %v576_v53, %v552_v55 }
 0x1b7   : > { %v606_v54 = vpop.permute.xlu1 %605 }
 0x1b8   : > { %v615_v57 = vadd.f32 %v606_v54, %v583_v42 }
 0x1ba   : > { %v4621_v8 = vadd.f32 %v4602_v44, %v615_v57 }
 0x1bb   : > { %v608_v43 = vpop.permute.xlu1 %607 }
 0x1bc   : > { %v616_v59 = vadd.f32 %v608_v43, %v584_v58  ;;  %1035 = vrot.lane.b32.xlu0 %v4621_v8, %s4238_s29 }
 0x1be   : > { %v4626_v60 = vadd.f32 %v4604_v45, %v616_v59 }
 0x1c0   : > { %1037 = vrot.lane.b32.xlu1 %v4626_v60, %s4238_s29 }
 0x206   : > { %v1032_v61 = vpop.permute.xlu0 %1031 }
 0x207   : > { %v1043_v63 = vsel %vm629_vm2, %v1032_v61, 0.0 }
 0x208   : > { %1044 = vadd.xlane.f32.xlu0 %v1043_v63 }
 0x212   : > { %v1034_v0 = vpop.permute.xlu1 %1033 }
 0x213   : > { %v1046_v44 = vsel %vm629_vm2, %v1034_v0, 0.0 }
 0x214   : > { %1047 = vadd.xlane.f32.xlu1 %v1046_v44 }
 0x22e   : > { %v1036_v2 = vpop.permute.xlu0 %1035 }
 0x22f   : > { %v1049_v3 = vsel %vm629_vm2, %v1036_v2, 0.0 }
 0x230   : > { %1050 = vadd.xlane.f32.xlu0 %v1049_v3 }
 0x232   : > { %v1038_v5 = vpop.permute.xlu1 %1037 }
 0x233   : > { %v1052_v45 = vsel %vm629_vm2, %v1038_v5, 0.0 }
 0x234   : > { %1053 = vadd.xlane.f32.xlu0 %v1052_v45 }
 0x291   : > { %v1045_v18 = vpop.xlane.xlu0 %1044 }
 0x292   : > { %v1065_v19 = vrot.slane %v1045_v18, %v4634_v17  ;;  %v1072_v20 = vrot.slane %v1045_v18, %v4636_v62 }
 0x294   : > { %v1123_v21 = vsel %vm258_vm1, %v1065_v19, 0.0  ;;  %v1130_v22 = vsel %vm258_vm1, %v1072_v20, 0.0 }
 0x295   : > { %v1124_v23 = vrot.slane %v1123_v21, 4  ;;  %v1131_v25 = vrot.slane %v1130_v22, 4 }
 0x297   : > { %v1125_v26 = vadd.f32 %v1124_v23, %v1123_v21  ;;  %v1132_v27 = vadd.f32 %v1131_v25, %v1130_v22 }
 0x299   : > { %v1126_v28 = vrot.slane %v1125_v26, 2  ;;  %v1133_v29 = vrot.slane %v1132_v27, 2 }
 0x29b   : > { %v1127_v30 = vadd.f32 %v1126_v28, %v1125_v26  ;;  %v1134_v31 = vadd.f32 %v1133_v29, %v1132_v27 }
 0x29d   : > { %v1048_v32 = vpop.xlane.xlu1 %1047  ;;  %v1128_v33 = vrot.slane %v1127_v30, 1  ;;  %v1135_v34 = vrot.slane %v1134_v31, 1 }
 0x29e   : > { %v1079_v36 = vrot.slane %v1048_v32, %v4634_v17  ;;  %v1086_v37 = vrot.slane %v1048_v32, %v4636_v62 }
 0x29f   : > { %v1129_v38 = vadd.f32 %v1128_v33, %v1127_v30  ;;  %v1136_v39 = vadd.f32 %v1135_v34, %v1134_v31 }
 0x2a0   : > { %v1137_v40 = vsel %vm258_vm1, %v1079_v36, 0.0  ;;  %v1144_v41 = vsel %vm258_vm1, %v1086_v37, 0.0 }
 0x2a1   : > { %v1138_v46 = vrot.slane %v1137_v40, 4  ;;  %v1145_v47 = vrot.slane %v1144_v41, 4  ;;  %v1179_v48 = vmul.f32 0.017857144, %v1129_v38  ;;  %v1180_v49 = vmul.f32 0.017857144, %v1136_v39 }
 0x2a3   : > { %v1139_v50 = vadd.f32 %v1138_v46, %v1137_v40  ;;  %v1146_v51 = vadd.f32 %v1145_v47, %v1144_v41  ;;  %v1195_v52 = vcombine.low %v1179_v48, %v1180_v49 }
 0x2a5   : > { %v1140_v4 = vrot.slane %v1139_v50, 2  ;;  %v1147_v42 = vrot.slane %v1146_v51, 2  ;;  %1199 = vrot.lane.b32.xlu1 %v1195_v52, %s4241_s30 }
 0x2a7   : > { %v1141_v53 = vadd.f32 %v1140_v4, %v1139_v50  ;;  %v1148_v54 = vadd.f32 %v1147_v42, %v1146_v51 }
 0x2a9   : > { %v1142_v55 = vrot.slane %v1141_v53, 1  ;;  %v1149_v57 = vrot.slane %v1148_v54, 1 }
 0x2ab   : > { %v1143_v58 = vadd.f32 %v1142_v55, %v1141_v53  ;;  %v1150_v43 = vadd.f32 %v1149_v57, %v1148_v54 }
 0x2ad   : > { %v1181_v59 = vmul.f32 0.017857144, %v1143_v58  ;;  %v1182_v61 = vmul.f32 0.017857144, %v1150_v43 }
 0x2af   : > { %v1196_v63 = vcombine.low %v1181_v59, %v1182_v61 }
 0x2b1   : > { %1201 = vrot.lane.b32.xlu0 %v1196_v63, %s4241_s30 }
 0x2b9   : > { %v1051_v0 = vpop.xlane.xlu0 %1050 }
 0x2ba   : > { %v1093_v44 = vrot.slane %v1051_v0, %v4634_v17  ;;  %v1100_v2 = vrot.slane %v1051_v0, %v4636_v62  ;;  %v630_v0 = vsel %vm629_vm2, %v4609_v13, 0.0 }
 0x2bc   : > { %v1151_v3 = vsel %vm258_vm1, %v1093_v44, 0.0  ;;  %v1158_v5 = vsel %vm258_vm1, %v1100_v2, 0.0  ;;  %v633_v44 = vsel %vm629_vm2, %v4614_v24, 0.0 }
 0x2bd   : > { %v1152_v45 = vrot.slane %v1151_v3, 4  ;;  %v1159_v6 = vrot.slane %v1158_v5, 4  ;;  %v1054_v56 = vpop.xlane.xlu0 %1053 }
 0x2be   : > { %v1107_v7 = vrot.slane %v1054_v56, %v4634_v17  ;;  %v1114_v9 = vrot.slane %v1054_v56, %v4636_v62 }
 0x2bf   : > { %v1153_v12 = vadd.f32 %v1152_v45, %v1151_v3  ;;  %v1160_v14 = vadd.f32 %v1159_v6, %v1158_v5  ;;  %v636_v5 = vsel %vm629_vm2, %v4621_v8, 0.0  ;;  %v639_v45 = vsel %vm629_vm2, %v4626_v60, 0.0 }
 0x2c0   : > { %v1165_v15 = vsel %vm258_vm1, %v1107_v7, 0.0  ;;  %v1172_v16 = vsel %vm258_vm1, %v1114_v9, 0.0  ;;  %v4242_v9 = vmov 12  }
 0x2c1   : > { %v1154_v18 = vrot.slane %v1153_v12, 2  ;;  %v1161_v19 = vrot.slane %v1160_v14, 2  ;;  %v1166_v20 = vrot.slane %v1165_v15, 4  ;;  %v1173_v21 = vrot.slane %v1172_v16, 4  ;;  %3968 = vset.pattern.permute.xlu0 %v4242_v9 }
 0x2c3   : > { %v1155_v22 = vadd.f32 %v1154_v18, %v1153_v12  ;;  %v1162_v23 = vadd.f32 %v1161_v19, %v1160_v14  ;;  %v1167_v25 = vadd.f32 %v1166_v20, %v1165_v15  ;;  %v1174_v26 = vadd.f32 %v1173_v21, %v1172_v16 }
 0x2c4   : > { %v4243_v14 = vmov 13   ;;  %v4244_v15 = vmov 10  }
 0x2c5   : > { %v1168_v27 = vrot.slane %v1167_v25, 2  ;;  %v1175_v28 = vrot.slane %v1174_v26, 2  ;;  %v1156_v29 = vrot.slane %v1155_v22, 1  ;;  %v1163_v30 = vrot.slane %v1162_v23, 1  ;;  %3969 = vset.pattern.permute.xlu1 %v4243_v14 }
 0x2c7   : > { %v1169_v31 = vadd.f32 %v1168_v27, %v1167_v25  ;;  %v1176_v32 = vadd.f32 %v1175_v28, %v1174_v26  ;;  %v1157_v33 = vadd.f32 %v1156_v29, %v1155_v22  ;;  %v1164_v34 = vadd.f32 %v1163_v30, %v1162_v23 }
 0x2c9   : > { %v1183_v36 = vmul.f32 0.017857144, %v1157_v33  ;;  %v1184_v37 = vmul.f32 0.017857144, %v1164_v34  ;;  %v1170_v38 = vrot.slane %v1169_v31, 1  ;;  %v1177_v39 = vrot.slane %v1176_v32, 1 }
 0x2cb   : > { %v1197_v40 = vcombine.low %v1183_v36, %v1184_v37  ;;  %v1171_v41 = vadd.f32 %v1170_v38, %v1169_v31  ;;  %v1178_v46 = vadd.f32 %v1177_v39, %v1176_v32 }
 0x2cd   : > { %1203 = vrot.lane.b32.xlu1 %v1197_v40, %s4241_s30  ;;  %v1185_v47 = vmul.f32 0.017857144, %v1171_v41  ;;  %v1186_v48 = vmul.f32 0.017857144, %v1178_v46 }
 0x2cf   : > { %v1198_v49 = vcombine.low %v1185_v47, %v1186_v48 }
 0x2d1   : > { %1205 = vrot.lane.b32.xlu1 %v1198_v49, %s4241_s30 }
 0x317   : > { %v1200_v50 = vpop.permute.xlu1 %1199 }
 0x318   : > { %v4659_v51 = vsub.f32 %v4609_v13, %v1200_v50 }
 0x31a   : > { %v1215_v52 = vmul.f32 %v4659_v51, %v4659_v51 }
 0x31c   : > { %1223 = vrot.lane.b32.xlu0 %v1215_v52, %s4238_s29 }
 0x323   : > { %v1202_v4 = vpop.permute.xlu0 %1201 }
 0x324   : > { %v4665_v42 = vsub.f32 %v4614_v24, %v1202_v4 }
 0x326   : > { %v1216_v53 = vmul.f32 %v4665_v42, %v4665_v42 }
 0x328   : > { %1225 = vrot.lane.b32.xlu1 %v1216_v53, %s4238_s29 }
 0x33f   : > { %v1204_v54 = vpop.permute.xlu1 %1203 }
 0x340   : > { %v4671_v55 = vsub.f32 %v4621_v8, %v1204_v54 }
 0x342   : > { %v1217_v57 = vmul.f32 %v4671_v55, %v4671_v55 }
 0x343   : > { %v1206_v58 = vpop.permute.xlu1 %1205 }
 0x344   : > { %v4676_v43 = vsub.f32 %v4626_v60, %v1206_v58  ;;  %1227 = vrot.lane.b32.xlu0 %v1217_v57, %s4238_s29 }
 0x346   : > { %v1218_v59 = vmul.f32 %v4676_v43, %v4676_v43 }
 0x348   : > { %1229 = vrot.lane.b32.xlu1 %v1218_v59, %s4238_s29 }
 0x38e   : > { %v1224_v61 = vpop.permute.xlu0 %1223 }
 0x38f   : > { %v1235_v63 = vsel %vm629_vm2, %v1224_v61, 0.0 }
 0x390   : > { %1236 = vadd.xlane.f32.xlu0 %v1235_v63 }
 0x394   : > { %631 = vadd.xlane.f32.xlu0 %v630_v0 }
 0x398   : > { %634 = vadd.xlane.f32.xlu0 %v633_v44 }
 0x39a   : > { %v1226_v2 = vpop.permute.xlu1 %1225 }
 0x39b   : > { %v1238_v3 = vsel %vm629_vm2, %v1226_v2, 0.0 }
 0x39c   : > { %1239 = vadd.xlane.f32.xlu1 %v1238_v3 }
 0x3a0   : > { %637 = vadd.xlane.f32.xlu1 %v636_v5 }
 0x3a4   : > { %640 = vadd.xlane.f32.xlu1 %v639_v45 }
 0x3b6   : > { %v1228_v6 = vpop.permute.xlu0 %1227 }
 0x3b7   : > { %v1241_v56 = vsel %vm629_vm2, %v1228_v6, 0.0 }
 0x3b8   : > { %1242 = vadd.xlane.f32.xlu0 %v1241_v56 }
 0x3ba   : > { %v1230_v7 = vpop.permute.xlu1 %1229 }
 0x3bb   : > { %v1244_v12 = vsel %vm629_vm2, %v1230_v7, 0.0 }
 0x3bc   : > { %1245 = vadd.xlane.f32.xlu0 %v1244_v12 }
 0x3d2   : > { %1424 = vperm.xlu0 %3968, %v4373_v11  }
 0x3d6   : > { %3971 = vset.pattern.permute.xlu0 %v4243_v14 }
 0x3d7   : > { %1440 = vperm.xlu0 %3971, %v4368_v10  }
 0x3db   : > { %3972 = vset.pattern.permute.xlu0 %v4244_v15 }
 0x419   : > { %v1237_v16 = vpop.xlane.xlu0 %1236 }
 0x41a   : > { %v1257_v19 = vrot.slane %v1237_v16, %v4634_v17  ;;  %v1264_v22 = vrot.slane %v1237_v16, %v4636_v62 }
 0x41c   : > { %v1315_v27 = vsel %vm258_vm1, %v1257_v19, 0.0  ;;  %v1322_v32 = vsel %vm258_vm1, %v1264_v22, 0.0 }
 0x41d   : > { %v632_v18 = vpop.xlane.xlu0 %631  ;;  %v1316_v36 = vrot.slane %v1315_v27, 4  ;;  %v1323_v48 = vrot.slane %v1322_v32, 4 }
 0x41e   : > { %v652_v20 = vrot.slane %v632_v18, %v4634_v17  ;;  %v659_v21 = vrot.slane %v632_v18, %v4636_v62 }
 0x41f   : > { %v1317_v57 = vadd.f32 %v1316_v36, %v1315_v27  ;;  %v1324_v2 = vadd.f32 %v1323_v48, %v1322_v32 }
 0x420   : > { %v710_v23 = vsel %vm258_vm1, %v652_v20, 0.0  ;;  %v717_v11 = vsel %vm258_vm1, %v659_v21, 0.0 }
 0x421   : > { %v711_v25 = vrot.slane %v710_v23, 4  ;;  %v718_v26 = vrot.slane %v717_v11, 4  ;;  %v635_v10 = vpop.xlane.xlu0 %634  ;;  %v1318_v56 = vrot.slane %v1317_v57, 2  ;;  %v1325_v20 = vrot.slane %v1324_v2, 2 }
 0x422   : > { %v666_v28 = vrot.slane %v635_v10, %v4634_v17  ;;  %v673_v29 = vrot.slane %v635_v10, %v4636_v62 }
 0x423   : > { %v712_v30 = vadd.f32 %v711_v25, %v710_v23  ;;  %v719_v31 = vadd.f32 %v718_v26, %v717_v11  ;;  %v1319_v10 = vadd.f32 %v1318_v56, %v1317_v57 }
 0x424   : > { %v724_v33 = vsel %vm258_vm1, %v666_v28, 0.0  ;;  %v731_v34 = vsel %vm258_vm1, %v673_v29, 0.0 }
 0x425   : > { %v713_v37 = vrot.slane %v712_v30, 2  ;;  %v720_v38 = vrot.slane %v719_v31, 2  ;;  %v1240_v39 = vpop.xlane.xlu1 %1239  ;;  %v725_v40 = vrot.slane %v724_v33, 4  ;;  %v732_v41 = vrot.slane %v731_v34, 4 }
 0x426   : > { %v1271_v46 = vrot.slane %v1240_v39, %v4634_v17  ;;  %v1278_v47 = vrot.slane %v1240_v39, %v4636_v62 }
 0x427   : > { %v714_v49 = vadd.f32 %v713_v37, %v712_v30  ;;  %v721_v50 = vadd.f32 %v720_v38, %v719_v31  ;;  %v726_v52 = vadd.f32 %v725_v40, %v724_v33  ;;  %v733_v4 = vadd.f32 %v732_v41, %v731_v34 }
 0x428   : > { %v1329_v53 = vsel %vm258_vm1, %v1271_v46, 0.0  ;;  %v1336_v54 = vsel %vm258_vm1, %v1278_v47, 0.0  ;;  %v1326_v31 = vadd.f32 %v1325_v20, %v1324_v2  ;;  %v1320_v37 = vrot.slane %v1319_v10, 1 }
 0x429   : > { %v715_v58 = vrot.slane %v714_v49, 1  ;;  %v722_v59 = vrot.slane %v721_v50, 1  ;;  %v727_v61 = vrot.slane %v726_v52, 2  ;;  %v734_v63 = vrot.slane %v733_v4, 2  ;;  %v638_v25 = vpop.xlane.xlu1 %637 }
 0x42a   : > { %v1330_v0 = vrot.slane %v1329_v53, 4  ;;  %v1337_v44 = vrot.slane %v1336_v54, 4  ;;  %v1327_v47 = vrot.slane %v1326_v31, 1 }
 0x42b   : > { %v728_v3 = vadd.f32 %v727_v61, %v726_v52  ;;  %v735_v5 = vadd.f32 %v734_v63, %v733_v4  ;;  %v716_v7 = vadd.f32 %v715_v58, %v714_v49  ;;  %v723_v12 = vadd.f32 %v722_v59, %v721_v50 }
 0x42c   : > { %v1331_v45 = vadd.f32 %v1330_v0, %v1329_v53  ;;  %v1338_v6 = vadd.f32 %v1337_v44, %v1336_v54  ;;  %v1321_v4 = vadd.f32 %v1320_v37, %v1319_v10  ;;  %v1328_v58 = vadd.f32 %v1327_v47, %v1326_v31 }
 0x42d   : > { %v729_v14 = vrot.slane %v728_v3, 1  ;;  %v736_v16 = vrot.slane %v735_v5, 1  ;;  %v767_v26 = vmul.f32 0.017857144, %v716_v7  ;;  %v768_v28 = vmul.f32 0.017857144, %v723_v12  ;;  %v641_v40 = vpop.xlane.xlu1 %640 }
 0x42e   : > { %v1332_v18 = vrot.slane %v1331_v45, 2  ;;  %v1339_v19 = vrot.slane %v1338_v6, 2  ;;  %v694_v53 = vrot.slane %v641_v40, %v4634_v17  ;;  %v701_v54 = vrot.slane %v641_v40, %v4636_v62 }
 0x42f   : > { %v730_v21 = vadd.f32 %v729_v14, %v728_v3  ;;  %v737_v23 = vadd.f32 %v736_v16, %v735_v5  ;;  %v783_v34 = vcombine.low %v767_v26, %v768_v28  ;;  %v1371_v61 = vmul.f32 0.017857144, %v1321_v4 }
 0x430   : > { %v1333_v22 = vadd.f32 %v1332_v18, %v1331_v45  ;;  %v1340_v11 = vadd.f32 %v1339_v19, %v1338_v6  ;;  %v759_v63 = vsel %vm258_vm1, %v701_v54, 0.0  ;;  %v1372_v0 = vmul.f32 0.017857144, %v1328_v58 }
 0x431   : > { %v769_v30 = vmul.f32 0.017857144, %v730_v21  ;;  %v770_v36 = vmul.f32 0.017857144, %v737_v23  ;;  %v4715_v41 = vsub.f32 %v4609_v13, %v783_v34  ;;  %v760_v2 = vrot.slane %v759_v63, 4  ;;  %v4736_v23 = vld [vmem:[%s5338_s1] sm:$0xff] }
 0x432   : > { %v1334_v27 = vrot.slane %v1333_v22, 1  ;;  %v1341_v29 = vrot.slane %v1340_v11, 1  ;;  %v1379_v3 = vadd.f32 1e-05, %v1371_v61  ;;  %v1380_v5 = vadd.f32 1e-05, %v1372_v0 }
 0x433   : > { %v784_v46 = vcombine.low %v769_v30, %v770_v36  ;;  %v795_v50 = vmul.f32 %v4715_v41, %v4715_v41  ;;  %v761_v6 = vadd.f32 %v760_v2, %v759_v63  ;;  %v680_v18 = vrot.slane %v638_v25, %v4634_v17  ;;  %v4747_v34 = vld [vmem:[%s5338_s1 + $0x8] sm:$0xff] }
 0x434   : > { %v1335_v32 = vadd.f32 %v1334_v27, %v1333_v22  ;;  %v1342_v33 = vadd.f32 %v1341_v29, %v1340_v11  ;;  %v687_v19 = vrot.slane %v638_v25, %v4636_v62  ;;  %v4245_v4 = vmov 11  }
 0x435   : > { %v4720_v52 = vsub.f32 %v4614_v24, %v784_v46  ;;  %v799_v13 = vsel %vm629_vm2, %v795_v50, 0.0  ;;  %v752_v24 = vsel %vm258_vm1, %v694_v53, 0.0  ;;  %v762_v14 = vrot.slane %v761_v6, 2 }
 0x436   : > { %v1373_v38 = vmul.f32 0.017857144, %v1335_v32  ;;  %v1374_v39 = vmul.f32 0.017857144, %v1342_v33  ;;  %800 = vadd.xlane.f32.xlu1 %v799_v13  ;;  %v753_v44 = vrot.slane %v752_v24, 4  ;;  %v738_v11 = vsel %vm258_vm1, %v680_v18, 0.0 }
 0x437   : > { %v796_v57 = vmul.f32 %v4720_v52, %v4720_v52  ;;  %v763_v21 = vadd.f32 %v762_v14, %v761_v6  ;;  %v745_v26 = vsel %vm258_vm1, %v687_v19, 0.0  ;;  %v739_v30 = vrot.slane %v738_v11, 4 }
 0x438   : > { %v1381_v48 = vadd.f32 1e-05, %v1373_v38  ;;  %v1382_v49 = vadd.f32 1e-05, %v1374_v39  ;;  %v754_v45 = vadd.f32 %v753_v44, %v752_v24  ;;  %v746_v25 = vrot.slane %v745_v26, 4 }
 0x439   : > { %v802_v59 = vsel %vm629_vm2, %v796_v57, 0.0  ;;  %v764_v27 = vrot.slane %v763_v21, 1  ;;  %v740_v39 = vadd.f32 %v739_v30, %v738_v11 }
 0x43a   : > { %3988 = vrsqrt.f32 %v1381_v48  ;;  %803 = vadd.xlane.f32.xlu1 %v802_v59  ;;  %v755_v12 = vrot.slane %v754_v45, 2  ;;  %v747_v40 = vadd.f32 %v746_v25, %v745_v26 }
 0x43b   : > { %3990 = vrsqrt.f32 %v1382_v49  ;;  %v765_v37 = vadd.f32 %v764_v27, %v763_v21  ;;  %v741_v54 = vrot.slane %v740_v39, 2 }
 0x43c   : > { %3992 = vrsqrt.f32 %v1379_v3  ;;  %v756_v20 = vadd.f32 %v755_v12, %v754_v45  ;;  %v748_v13 = vrot.slane %v747_v40, 2 }
 0x43d   : > { %3994 = vrsqrt.f32 %v1380_v5  ;;  %v774_v50 = vmul.f32 0.017857144, %v765_v37  ;;  %v742_v0 = vadd.f32 %v741_v54, %v740_v39 }
 0x43e   : > { %v757_v10 = vrot.slane %v756_v20, 1  ;;  %v749_v44 = vadd.f32 %v748_v13, %v747_v40 }
 0x440   : > { %v758_v36 = vadd.f32 %v757_v10, %v756_v20 }
 0x441   : > { %v1243_v22 = vpop.xlane.xlu0 %1242 }
 0x442   : > { %v1285_v31 = vrot.slane %v1243_v22, %v4634_v17  ;;  %v1292_v32 = vrot.slane %v1243_v22, %v4636_v62  ;;  %v773_v49 = vmul.f32 0.017857144, %v758_v36 }
 0x444   : > { %v1343_v46 = vsel %vm258_vm1, %v1285_v31, 0.0  ;;  %v786_v61 = vcombine.low %v773_v49, %v774_v50 }
 0x445   : > { %v1246_v33 = vpop.xlane.xlu0 %1245  ;;  %v1344_v53 = vrot.slane %v1343_v46, 4 }
 0x446   : > { %v1299_v47 = vrot.slane %v1246_v33, %v4634_v17  ;;  %v1306_v48 = vrot.slane %v1246_v33, %v4636_v62  ;;  %v4759_v5 = vsub.f32 %v4626_v60, %v786_v61 }
 0x447   : > { %v3989_v56 = vpop.eup %3988  ;;  %v1345_v24 = vadd.f32 %v1344_v53, %v1343_v46 }
 0x448   : > { %v3991_v7 = vpop.eup %3990  ;;  %v1357_v58 = vsel %vm258_vm1, %v1299_v47, 0.0  ;;  %v1364_v59 = vsel %vm258_vm1, %v1306_v48, 0.0 }
 0x449   : > { %v1404_v16 = vcombine.low %v3989_v56, %v3991_v7  ;;  %v3993_v28 = vpop.eup %3992  ;;  %v1358_v63 = vrot.slane %v1357_v58, 4  ;;  %v1365_v3 = vrot.slane %v1364_v59, 4  ;;  %v1346_v45 = vrot.slane %v1345_v24, 2 }
 0x44a   : > { %v3995_v29 = vpop.eup %3994  ;;  %v743_v56 = vrot.slane %v742_v0, 1  ;;  %v750_v7 = vrot.slane %v749_v44, 1 }
 0x44b   : > { %1409 = vrot.lane.b32.xlu0 %v1404_v16, %s4241_s30  ;;  %1436 = vperm.xlu1 %3969, %v4736_v23   ;;  %v1403_v38 = vcombine.low %v3993_v28, %v3995_v29  ;;  %v1359_v6 = vadd.f32 %v1358_v63, %v1357_v58  ;;  %v1366_v14 = vadd.f32 %v1365_v3, %v1364_v59  ;;  %v240_v63 = vld [vmem:[%s5340_s3 + $0x18] sm:$0xff] }
 0x44c   : > { %v798_v16 = vmul.f32 %v4759_v5, %v4759_v5  ;;  %v1347_v18 = vadd.f32 %v1346_v45, %v1345_v24  ;;  %v744_v22 = vadd.f32 %v743_v56, %v742_v0  ;;  %v751_v11 = vadd.f32 %v750_v7, %v749_v44  ;;  %3696 = vmatprep.subr.msk.mxu1 %vm1483_vm3, %v240_v63  ;;  %v239_v0 = vld [vmem:[%s5340_s3 + $0x10] sm:$0xff] }
 0x44d   : > { %v1360_v19 = vrot.slane %v1359_v6, 2  ;;  %v1367_v21 = vrot.slane %v1366_v14, 2  ;;  %3697 = vmatpush1.msk.msra.mxu1 %vm1483_vm3, %v239_v0 }
 0x44e   : > { %v808_v26 = vsel %vm629_vm2, %v798_v16, 0.0  ;;  %v1348_v60 = vrot.slane %v1347_v18, 1  ;;  %v771_v29 = vmul.f32 0.017857144, %v744_v22  ;;  %v772_v30 = vmul.f32 0.017857144, %v751_v11 }
 0x44f   : > { %3970 = vset.pattern.permute.xlu1 %v4242_v9  ;;  %v1350_v9 = vsel %vm258_vm1, %v1292_v32, 0.0  ;;  %v1361_v10 = vadd.f32 %v1360_v19, %v1359_v6  ;;  %v1368_v28 = vadd.f32 %v1367_v21, %v1366_v14  ;;  %v1599_v21 = vrot.slane %v240_v63, 6  ;;  %v4815_v11 = vld [vmem:[%s5340_s3 + $0x20] sm:$0xff] }
 0x450   : > { %1428 = vperm.xlu1 %3970, %v4747_v34   ;;  %v1351_v57 = vrot.slane %v1350_v9, 4  ;;  %v1349_v25 = vadd.f32 %v1348_v60, %v1347_v18  ;;  %v785_v36 = vcombine.low %v771_v29, %v772_v30  ;;  %v1596_v22 = vrot.slane %v239_v0, 6 }
 0x451   : > { %v1362_v31 = vrot.slane %v1361_v10, 1  ;;  %v1369_v33 = vrot.slane %v1368_v28, 1 }
 0x452   : > { %v1352_v2 = vadd.f32 %v1351_v57, %v1350_v9  ;;  %v1375_v37 = vmul.f32 0.017857144, %v1349_v25  ;;  %v4765_v46 = vsub.f32 %v4621_v8, %v785_v36 }
 0x453   : > { %v1370_v40 = vadd.f32 %v1369_v33, %v1368_v28  ;;  %v1597_v28 = vrot.slane %v4815_v11, 6 }
 0x454   : > { %1407 = vrot.lane.b32.xlu1 %v1403_v38, %s4241_s30  ;;  %v1353_v12 = vrot.slane %v1352_v2, 2  ;;  %v1363_v38 = vadd.f32 %v1362_v31, %v1361_v10  ;;  %v1383_v47 = vadd.f32 1e-05, %v1375_v37  ;;  %v797_v50 = vmul.f32 %v4765_v46, %v4765_v46 }
 0x455   : > { %3973 = vset.pattern.permute.xlu1 %v4245_v4  ;;  %v1378_v49 = vmul.f32 0.017857144, %v1370_v40  ;;  %v4830_v33 = vsel %vm1595_vm4, %v1596_v22, %v1597_v28 }
 0x456   : > { %v1354_v20 = vadd.f32 %v1353_v12, %v1352_v2  ;;  %v1377_v9 = vmul.f32 0.017857144, %v1363_v38  ;;  %3996 = vrsqrt.f32 %v1383_v47  ;;  %v805_v13 = vsel %vm629_vm2, %v797_v50, 0.0 }
 0x457   : > { %v1386_v54 = vadd.f32 1e-05, %v1378_v49 }
 0x458   : > { %v1355_v27 = vrot.slane %v1354_v20, 1  ;;  %v1385_v53 = vadd.f32 1e-05, %v1377_v9 }
 0x45a   : > { %v1356_v32 = vadd.f32 %v1355_v27, %v1354_v20  ;;  %v242_v20 = vld [vmem:[%s5340_s3 + $0x28] sm:$0xff] }
 0x45b   : > { %v1600_v60 = vrot.slane %v242_v20, 6 }
 0x45c   : > { %v1376_v39 = vmul.f32 0.017857144, %v1356_v32 }
 0x45d   : > { %v4825_v32 = vsel %vm1595_vm4, %v1599_v21, %v1600_v60  ;;  %v4122_v21 = vld [vmem:[%s5339_s2 + $0x58] sm:$0xff] }
 0x45e   : > { %v1384_v48 = vadd.f32 1e-05, %v1376_v39 }
 0x460   : > { %3998 = vrsqrt.f32 %v1384_v48 }
 0x461   : > { %4000 = vrsqrt.f32 %v1385_v53 }
 0x462   : > { %4002 = vrsqrt.f32 %v1386_v54 }
 0x463   : > { %v3997_v8 = vpop.eup %3996 }
 0x46a   : > { %809 = vadd.xlane.f32.xlu0 %v808_v26 }
 0x46d   : > { %v3999_v57 = vpop.eup %3998 }
 0x46e   : > { %v4001_v58 = vpop.eup %4000  ;;  %v1405_v59 = vcombine.low %v3997_v8, %v3999_v57 }
 0x46f   : > { %v4003_v61 = vpop.eup %4002 }
 0x470   : > { %v1406_v24 = vcombine.low %v4001_v58, %v4003_v61 }
 0x478   : > { %806 = vadd.xlane.f32.xlu1 %v805_v13 }
 0x480   : > { %980 = vperm.xlu0 %3972, %v4736_v23  }
 0x484   : > { %1771 = vrot.lane.b32.xlu0 %v4122_v21, %s4246_s10 }
 0x489   : > { %1411 = vrot.lane.b32.xlu1 %v1405_v59, %s4241_s30 }
 0x48d   : > { %1413 = vrot.lane.b32.xlu1 %v1406_v24, %s4241_s30  ;;  %s191_s30 = sand.u32 1, %s4209_s16  }
 0x48e   : > { %s3679_s5 = sshll.u32 %s191_s30, 6  ;;  %s5297_s19 = scalar_lea.sflag [#allocation3], %s191_s30 }
 0x491   : > { %992 = vperm.xlu1 %3973, %v4736_v23   ;;  %v237_v23 = vld [vmem:[%s5340_s3] sm:$0xff] }
 0x495   : > { %3974 = vset.pattern.permute.xlu1 %v4244_v15  ;;  %v238_v15 = vld [vmem:[%s5340_s3 + $0x8] sm:$0xff] }
 0x496   : > { %984 = vperm.xlu1 %3974, %v4747_v34   ;;  %1520 = vmatprep.subr.mxu1 %v238_v15 }
 0x497   : > { %1521 = vmatpush1.msra.mxu1 %v237_v23 }
 0x49a   : > { %3975 = vset.pattern.permute.xlu1 %v4245_v4 }
 0x49b   : > { %996 = vperm.xlu1 %3975, %v4747_v34   ;;  %v4792_v34 = vpop.permute.xlu0 %1424 }
 0x49f   : > { %v4794_v44 = vpop.permute.xlu0 %1440 }
 0x4bd   : > { %v1410_v3 = vpop.permute.xlu0 %1409 }
 0x4be   : > { %v1420_v6 = vmul.f32 %v1410_v3, %v4665_v42  ;;  %v244_v42 = vld [vmem:[%s5340_s3 + $0x38] sm:$0xf] }
 0x4bf   : > { %v801_v4 = vpop.xlane.xlu1 %800  ;;  %v1604_v10 = vrot.slane %v244_v42, 6 }
 0x4c0   : > { %v821_v12 = vrot.slane %v801_v4, %v4634_v17  ;;  %v828_v14 = vrot.slane %v801_v4, %v4636_v62 }
 0x4c1   : > { %v1605_v25 = vsel %vm1595_vm4, %v1600_v60, %v1604_v10 }
 0x4c2   : > { %v879_v26 = vsel %vm258_vm1, %v821_v12, 0.0  ;;  %v886_v27 = vsel %vm258_vm1, %v828_v14, 0.0  ;;  %3702 = vmatprep.subr.msk.mxu1 %vm1483_vm3, %v1605_v25  ;;  %v4123_v25 = vld [vmem:[%s5339_s2 + $0x48] sm:$0xff] }
 0x4c3   : > { %v804_v2 = vpop.xlane.xlu1 %803  ;;  %v880_v31 = vrot.slane %v879_v26, 4  ;;  %v887_v36 = vrot.slane %v886_v27, 4  ;;  %1767 = vrot.lane.b32.xlu0 %v4123_v25, %s4246_s10 }
 0x4c4   : > { %v835_v38 = vrot.slane %v804_v2, %v4634_v17  ;;  %v842_v39 = vrot.slane %v804_v2, %v4636_v62 }
 0x4c5   : > { %v881_v40 = vadd.f32 %v880_v31, %v879_v26  ;;  %v888_v47 = vadd.f32 %v887_v36, %v886_v27 }
 0x4c6   : > { %v893_v9 = vsel %vm258_vm1, %v835_v38, 0.0  ;;  %v900_v48 = vsel %vm258_vm1, %v842_v39, 0.0 }
 0x4c7   : > { %v4796_v45 = vpop.permute.xlu1 %1436  ;;  %v882_v49 = vrot.slane %v881_v40, 2  ;;  %v889_v50 = vrot.slane %v888_v47, 2  ;;  %v894_v53 = vrot.slane %v893_v9, 4  ;;  %v901_v54 = vrot.slane %v900_v48, 4 }
 0x4c9   : > { %v883_v13 = vadd.f32 %v882_v49, %v881_v40  ;;  %v890_v8 = vadd.f32 %v889_v50, %v888_v47  ;;  %v895_v57 = vadd.f32 %v894_v53, %v893_v9  ;;  %v902_v58 = vadd.f32 %v901_v54, %v900_v48  ;;  %v4124_v9 = vld [vmem:[%s5339_s2 + $0x38] sm:$0xff] }
 0x4ca   : > { %1763 = vrot.lane.b32.xlu0 %v4124_v9, %s4246_s10 }
 0x4cb   : > { %v4799_v56 = vpop.permute.xlu1 %1428  ;;  %v884_v61 = vrot.slane %v883_v13, 1  ;;  %v891_v63 = vrot.slane %v890_v8, 1  ;;  %v896_v0 = vrot.slane %v895_v57, 2  ;;  %v903_v15 = vrot.slane %v902_v58, 2 }
 0x4cc   : > { %v1432_v7 = vmul.f32 %v4799_v56, %v1420_v6 }
 0x4cd   : > { %v885_v4 = vadd.f32 %v884_v61, %v883_v13  ;;  %v892_v3 = vadd.f32 %v891_v63, %v890_v8  ;;  %v897_v6 = vadd.f32 %v896_v0, %v895_v57  ;;  %v4125_v57 = vld [vmem:[%s5339_s2 + $0x28] sm:$0xff]  ;;  %v4126_v61 = vld [vmem:[%s5339_s2 + $0x18] sm:$0xff] }
 0x4ce   : > { %v1444_v18 = vadd.f32 %v4794_v44, %v1432_v7  ;;  %v904_v7 = vadd.f32 %v903_v15, %v902_v58  ;;  %1759 = vrot.lane.b32.xlu0 %v4125_v57, %s4246_s10 }
 0x4cf   : > { %v1408_v16 = vpop.permute.xlu1 %1407  ;;  %v935_v12 = vmul.f32 0.017857144, %v885_v4  ;;  %v936_v14 = vmul.f32 0.017857144, %v892_v3  ;;  %v4127_v3 = vld [vmem:[%s5339_s2 + $0x8] sm:$0xff] }
 0x4d0   : > { %v1419_v19 = vmul.f32 %v1408_v16, %v4659_v51  ;;  %v3693_v29 = vmul.f32 -1.442695, %v1444_v18  ;;  %v898_v16 = vrot.slane %v897_v6, 1 }
 0x4d1   : > { %v943_v22 = vadd.f32 1e-05, %v935_v12  ;;  %v944_v60 = vadd.f32 1e-05, %v936_v14 }
 0x4d2   : > { %v1431_v51 = vmul.f32 %v4792_v34, %v1419_v19  ;;  %4004 = vpow2.f32 %v3693_v29  ;;  %v905_v19 = vrot.slane %v904_v7, 1  ;;  %v899_v10 = vadd.f32 %v898_v16, %v897_v6  ;;  %1755 = vrot.lane.b32.xlu0 %v4126_v61, %s4246_s10  ;;  %v4131_v61 = vld [vmem:[%s5339_s2 + $0x90] sm:$0xff] }
 0x4d4   : > { %v1443_v30 = vadd.f32 %v4796_v45, %v1431_v51  ;;  %v937_v38 = vmul.f32 0.017857144, %v899_v10 }
 0x4d6   : > { %v3692_v37 = vmul.f32 -1.442695, %v1443_v30  ;;  %v906_v30 = vadd.f32 %v905_v19, %v904_v7  ;;  %v945_v53 = vadd.f32 1e-05, %v937_v38  ;;  %1751 = vrot.lane.b32.xlu0 %v4127_v3, %s4246_s10 }
 0x4d8   : > { %4006 = vpow2.f32 %v3692_v37  ;;  %v938_v47 = vmul.f32 0.017857144, %v906_v30 }
 0x4da   : > { %v946_v8 = vadd.f32 1e-05, %v938_v47 }
 0x4df   : > { %v4005_v59 = vpop.eup %4004 }
 0x4e0   : > { %v1460_v2 = vadd.f32 1.0, %v4005_v59 }
 0x4e5   : > { %v4007_v24 = vpop.eup %4006 }
 0x4e6   : > { %v1459_v23 = vadd.f32 1.0, %v4007_v24 }
 0x4e8   : > { %4008 = vrcp.f32 %v1459_v23 }
 0x4e9   : > { %4010 = vrcp.f32 %v1460_v2 }
 0x4ea   : > { %4012 = vrsqrt.f32 %v943_v22  ;;  %v4128_v22 = vld [vmem:[%s5339_s2 + $0xc0] sm:$0xf] }
 0x4eb   : > { %4014 = vrsqrt.f32 %v944_v60  ;;  %1797 = vrot.lane.b32.xlu0 %v4128_v22, %s4246_s10 }
 0x4ec   : > { %4016 = vrsqrt.f32 %v945_v53  ;;  %v4130_v53 = vld [vmem:[%s5339_s2 + $0xa0] sm:$0xff] }
 0x4ed   : > { %4018 = vrsqrt.f32 %v946_v8 }
 0x4f3   : > { %v810_v18 = vpop.xlane.xlu0 %809 }
 0x4f4   : > { %v863_v20 = vrot.slane %v810_v18, %v4634_v17  ;;  %v870_v42 = vrot.slane %v810_v18, %v4636_v62 }
 0x4f5   : > { %v4009_v37 = vpop.eup %4008 }
 0x4f6   : > { %v921_v26 = vsel %vm258_vm1, %v863_v20, 0.0  ;;  %v928_v51 = vsel %vm258_vm1, %v870_v42, 0.0  ;;  %1583 = vrot.lane.b32.xlu1 %v4009_v37, %s4238_s29  ;;  %v4011_v50 = vpop.eup %4010  ;;  %v4129_v37 = vld [vmem:[%s5339_s2 + $0xb0] sm:$0xff] }
 0x4f7   : > { %v922_v27 = vrot.slane %v921_v26, 4  ;;  %v929_v29 = vrot.slane %v928_v51, 4  ;;  %v4013_v15 = vpop.eup %4012  ;;  %1793 = vrot.lane.b32.xlu0 %v4129_v37, %s4246_s10 }
 0x4f8   : > { %v4015_v2 = vpop.eup %4014 }
 0x4f9   : > { %v923_v31 = vadd.f32 %v922_v27, %v921_v26  ;;  %v930_v36 = vadd.f32 %v929_v29, %v928_v51  ;;  %v967_v20 = vcombine.low %v4013_v15, %v4015_v2  ;;  %v4017_v25 = vpop.eup %4016 }
 0x4fa   : > { %1585 = vrot.lane.b32.xlu1 %v4011_v50, %s4238_s29 }
 0x4fb   : > { %v924_v39 = vrot.slane %v923_v31, 2  ;;  %v931_v40 = vrot.slane %v930_v36, 2  ;;  %v4876_v51 = vpop.permute.xlu0 %980  ;;  %v975_v29 = vmul.f32 %v967_v20, %v4715_v41  ;;  %1789 = vrot.lane.b32.xlu0 %v4130_v53, %s4246_s10  ;;  %v4144_v53 = vld [vmem:[%s5339_s2 + $0xa8] sm:$0xff] }
 0x4fd   : > { %v925_v48 = vadd.f32 %v924_v39, %v923_v31  ;;  %v932_v49 = vadd.f32 %v931_v40, %v930_v36  ;;  %v987_v38 = vmul.f32 %v4876_v51, %v975_v29 }
 0x4ff   : > { %v926_v54 = vrot.slane %v925_v48, 1  ;;  %v933_v13 = vrot.slane %v932_v49, 1  ;;  %1785 = vrot.lane.b32.xlu0 %v4131_v61, %s4246_s10 }
 0x501   : > { %v927_v58 = vadd.f32 %v926_v54, %v925_v48  ;;  %v934_v59 = vadd.f32 %v933_v13, %v932_v49  ;;  %v807_v0 = vpop.xlane.xlu1 %806 }
 0x502   : > { %v849_v23 = vrot.slane %v807_v0, %v4634_v17  ;;  %v856_v4 = vrot.slane %v807_v0, %v4636_v62 }
 0x503   : > { %v941_v24 = vmul.f32 0.017857144, %v927_v58  ;;  %v942_v63 = vmul.f32 0.017857144, %v934_v59 }
 0x504   : > { %v907_v7 = vsel %vm258_vm1, %v849_v23, 0.0  ;;  %v914_v12 = vsel %vm258_vm1, %v856_v4, 0.0  ;;  %v4132_v4 = vld [vmem:[%s5339_s2 + $0x80] sm:$0xff] }
 0x505   : > { %v949_v6 = vadd.f32 1e-05, %v941_v24  ;;  %v950_v14 = vadd.f32 1e-05, %v942_v63  ;;  %v908_v16 = vrot.slane %v907_v7, 4  ;;  %v915_v18 = vrot.slane %v914_v12, 4  ;;  %v1412_v19 = vpop.permute.xlu1 %1411  ;;  %1781 = vrot.lane.b32.xlu0 %v4132_v4, %s4246_s10 }
 0x506   : > { %v1421_v42 = vmul.f32 %v1412_v19, %v4671_v55 }
 0x507   : > { %v909_v62 = vadd.f32 %v908_v16, %v907_v7  ;;  %v916_v21 = vadd.f32 %v915_v18, %v914_v12  ;;  %4020 = vrsqrt.f32 %v949_v6 }
 0x508   : > { %v1433_v26 = vmul.f32 %v4792_v34, %v1421_v42  ;;  %4022 = vrsqrt.f32 %v950_v14  ;;  %v4019_v34 = vpop.eup %4018 }
 0x509   : > { %v910_v60 = vrot.slane %v909_v62, 2  ;;  %v917_v10 = vrot.slane %v916_v21, 2  ;;  %v1414_v27 = vpop.permute.xlu1 %1413  ;;  %v968_v50 = vcombine.low %v4017_v25, %v4019_v34  ;;  %v4135_v34 = vld [vmem:[%s5339_s2 + $0x68] sm:$0xff] }
 0x50a   : > { %v1445_v55 = vadd.f32 %v4796_v45, %v1433_v26  ;;  %v1422_v30 = vmul.f32 %v1414_v27, %v4676_v43 }
 0x50b   : > { %v911_v31 = vadd.f32 %v910_v60, %v909_v62  ;;  %v918_v36 = vadd.f32 %v917_v10, %v916_v21 }
 0x50c   : > { %v3694_v39 = vmul.f32 -1.442695, %v1445_v55  ;;  %v1434_v40 = vmul.f32 %v4799_v56, %v1422_v30 }
 0x50d   : > { %v912_v41 = vrot.slane %v911_v31, 1  ;;  %v919_v47 = vrot.slane %v918_v36, 1  ;;  %v993_v45 = vpop.permute.xlu1 %992 }
 0x50e   : > { %4024 = vpow2.f32 %v3694_v39  ;;  %v1446_v43 = vadd.f32 %v4794_v44, %v1434_v40  ;;  %v999_v9 = vadd.f32 %v993_v45, %v987_v38  ;;  %v976_v44 = vmul.f32 %v968_v50, %v4720_v52  ;;  %v4136_v39 = vld [vmem:[%s5339_s2 + $0x60] sm:$0xff]  ;;  %v4137_v40 = vld [vmem:[%s5339_s2 + $0x50] sm:$0xff]  ;;  %v4143_v50 = vld [vmem:[%s5339_s2 + $0xb8] sm:$0xff] }
 0x50f   : > { %v913_v48 = vadd.f32 %v912_v41, %v911_v31  ;;  %v920_v49 = vadd.f32 %v919_v47, %v918_v36  ;;  %v4133_v36 = vld [vmem:[%s5339_s2 + $0x78] sm:$0xff]  ;;  %v4138_v41 = vld [vmem:[%s5339_s2 + $0x40] sm:$0xff] }
 0x510   : > { %v3695_v54 = vmul.f32 -1.442695, %v1446_v43  ;;  %v3688_v13 = vmul.f32 -1.442695, %v999_v9  ;;  %v4140_v9 = vld [vmem:[%s5339_s2 + $0x20] sm:$0xff] }
 0x511   : > { %v939_v8 = vmul.f32 0.017857144, %v913_v48  ;;  %v940_v56 = vmul.f32 0.017857144, %v920_v49  ;;  %v985_v57 = vpop.permute.xlu1 %984  ;;  %v4141_v48 = vld [vmem:[%s5339_s2 + $0x10] sm:$0xff]  ;;  %v4142_v49 = vld [vmem:[%s5339_s2] sm:$0xff] }
 0x512   : > { %4026 = vpow2.f32 %v3695_v54  ;;  %v988_v63 = vmul.f32 %v985_v57, %v976_v44  ;;  %v4145_v54 = vld [vmem:[%s5339_s2 + $0x98] sm:$0xff] }
 0x513   : > { %v947_v58 = vadd.f32 1e-05, %v939_v8  ;;  %v948_v59 = vadd.f32 1e-05, %v940_v56  ;;  %4028 = vpow2.f32 %v3688_v13  ;;  %v4146_v13 = vld [vmem:[%s5339_s2 + $0x88] sm:$0xff] }
 0x514   : > { %v4021_v24 = vpop.eup %4020 }
 0x515   : > { %4030 = vrsqrt.f32 %v947_v58  ;;  %v4023_v0 = vpop.eup %4022  ;;  %v1772_v58 = vpop.permute.xlu0 %1771 }
 0x516   : > { %4032 = vrsqrt.f32 %v948_v59  ;;  %v997_v15 = vpop.permute.xlu1 %996  ;;  %v970_v52 = vcombine.low %v4021_v24, %v4023_v0 }
 0x517   : > { %v1000_v23 = vadd.f32 %v997_v15, %v988_v63 }
 0x518   : > { %v978_v7 = vmul.f32 %v970_v52, %v4759_v5  ;;  %v243_v5 = vld [vmem:[%s5340_s3 + $0x30] sm:$0xf] }
 0x519   : > { %v3689_v2 = vmul.f32 -1.442695, %v1000_v23  ;;  %v1602_v30 = vrot.slane %v243_v5, 6 }
 0x51a   : > { %v990_v19 = vmul.f32 %v985_v57, %v978_v7 }
 0x51b   : > { %v4025_v3 = vpop.eup %4024  ;;  %4034 = vpow2.f32 %v3689_v2 }
 0x51c   : > { %v1461_v6 = vadd.f32 1.0, %v4025_v3  ;;  %v1002_v21 = vadd.f32 %v997_v15, %v990_v19 }
 0x51e   : > { %4036 = vrcp.f32 %v1461_v6  ;;  %v3691_v10 = vmul.f32 -1.442695, %v1002_v21 }
 0x51f   : > { %v4027_v12 = vpop.eup %4026 }
 0x520   : > { %v4029_v14 = vpop.eup %4028  ;;  %v1462_v16 = vadd.f32 1.0, %v4027_v12 }
 0x521   : > { %v1015_v18 = vadd.f32 1.0, %v4029_v14 }
 0x522   : > { %v4031_v20 = vpop.eup %4030  ;;  %4038 = vrcp.f32 %v1462_v16 }
 0x523   : > { %v4033_v42 = vpop.eup %4032  ;;  %4040 = vrcp.f32 %v1015_v18 }
 0x524   : > { %v969_v62 = vcombine.low %v4031_v20, %v4033_v42 }
 0x526   : > { %v977_v22 = vmul.f32 %v969_v62, %v4765_v46  ;;  %v1603_v46 = vsel %vm1595_vm4, %v1597_v28, %v1602_v30  ;;  %v4134_v28 = vld [vmem:[%s5339_s2 + $0x70] sm:$0xff] }
 0x528   : > { %v4035_v26 = vpop.eup %4034  ;;  %v989_v60 = vmul.f32 %v4876_v51, %v977_v22 }
 0x529   : > { %v1016_v27 = vadd.f32 1.0, %v4035_v26 }
 0x52a   : > { %v1001_v29 = vadd.f32 %v993_v45, %v989_v60  ;;  %v4139_v45 = vld [vmem:[%s5339_s2 + $0x30] sm:$0xff] }
 0x52b   : > { %v4037_v55 = vpop.eup %4036  ;;  %4042 = vrcp.f32 %v1016_v27 }
 0x52c   : > { %v3690_v25 = vmul.f32 -1.442695, %v1001_v29  ;;  %1587 = vrot.lane.b32.xlu1 %v4037_v55, %s4238_s29  ;;  %4044 = vpow2.f32 %v3691_v10 }
 0x52e   : > { %4046 = vpow2.f32 %v3690_v25 }
 0x52f   : > { %v4039_v31 = vpop.eup %4038 }
 0x530   : > { %v4041_v51 = vpop.eup %4040  ;;  %1589 = vrot.lane.b32.xlu1 %v4039_v31, %s4238_s29  ;;  %s5260_s29 = scalar_lea.vmem [#allocation2], %s3679_s5 }
 0x531   : > { %3698 = vmatmul.mubr.msk.f32.vlgmr.msra.gmra.mxu1 %vm629_vm2, %v4041_v51  ;;  %s3613_s7 = sshll.u32 %s5260_s29, 4  ;;  %s5288_s7 = int_to_ptr.vmem [resolvable:$true] %s3613_s7 }
 0x532   : > { %1560 = vmatprep.mubr.f32.mxu1 %v4219_v1  ;;  %3703 = vmatpush1.msk.msra.mxu1 %vm1483_vm3, %v1603_v46  ;;  %v4147_v46 = vld [vmem:[%s4349_s13 + $0x8] sm:$0xff]  ;;  %s4157_s12 = scalar_lea.vmem %s5288_s7, 1024  ;;  %p4164_p0 = scmp.lt.s32.totalorder %s5288_s7, %s4162_s20 }
 0x533   : > { %1650 = vmatprep.subr.mxu1 %v4825_v32  ;;  %p4158_p11 = scmp.ne.s32.totalorder %s5288_s7, %s4157_s12  ;;  %p4165_p1 = scmp.lt.s32.totalorder %s4163_s22, %s4157_s12 }
 0x534   : > { %1651 = vmatpush1.msra.mxu1 %v4830_v33  ;;  %1779 = vrot.lane.b32.xlu1 %v4133_v36, %s4246_s10  ;;  %v4148_v36 = vld [vmem:[%s4349_s13] sm:$0xff] }
 0x535   : > { %1837 = vmatprep.subr.mxu1 %v4219_v1  ;;  %v1768_v44 = vpop.permute.xlu0 %1767  ;;  %p4159_p12 = pnand %p4158_p11, %p4319_p5  ;;  %p4166_p2 = por %p4165_p1, %p4164_p0 }
 0x537   : > { %p4160_p13 = pneg %p4159_p12 }
 0x538   : > { %v4043_v11 = vpop.eup %4042  ;;  %1777 = vrot.lane.b32.xlu1 %v4134_v28, %s4246_s10 }
 0x539   : > { %3699 = vmatmul.mubr.msk.f32.gmra.mxu1 %vm629_vm2, %v4043_v11  ;;  %v4045_v32 = vpop.eup %4044  ;;  %p4167_p3 = pnand %p4166_p2, %p4160_p13 }
 0x53a   : > { %1566 = vmatprep.mubr.f32.mxu1 %v4219_v1  ;;  %v1018_v38 = vadd.f32 1.0, %v4045_v32 }
 0x53b   : > { %v4047_v33 = vpop.eup %4046 }
 0x53c   : > { %v1017_v37 = vadd.f32 1.0, %v4047_v33  ;;  %1775 = vrot.lane.b32.xlu1 %v4135_v34, %s4246_s10  ;;  %v1764_v63 = vpop.permute.xlu0 %1763  ;;  %v4149_v34 = vld [vmem:[%s4349_s13 + $0x18] sm:$0xff] }
 0x53e   : > { %4048 = vrcp.f32 %v1017_v37 }
 0x53f   : > { %4050 = vrcp.f32 %v1018_v38 }
 0x540   : > { %1773 = vrot.lane.b32.xlu1 %v4136_v39, %s4246_s10  ;;  %v1760_v15 = vpop.permute.xlu0 %1759  ;;  %v4150_v39 = vld [vmem:[%s4349_s13 + $0x10] sm:$0xff] }
 0x544   : > { %1769 = vrot.lane.b32.xlu1 %v4137_v40, %s4246_s10  ;;  %v1756_v52 = vpop.permute.xlu0 %1755 }
 0x548   : > { %1765 = vrot.lane.b32.xlu1 %v4138_v41, %s4246_s10  ;;  %v1752_v3 = vpop.permute.xlu0 %1751 }
 0x54b   : > { %v4049_v47 = vpop.eup %4048 }
 0x54c   : > { %3700 = vmatmul.mubr.msk.f32.gmra.mxu1 %vm629_vm2, %v4049_v47  ;;  %1761 = vrot.lane.b32.xlu1 %v4139_v45, %s4246_s10  ;;  %v4051_v43 = vpop.eup %4050 }
 0x54d   : > { %1572 = vmatprep.mubr.f32.mxu1 %v4219_v1 }
 0x550   : > { %3701 = vmatmul.mubr.msk.f32.gmra.mxu1 %vm629_vm2, %v4051_v43  ;;  %1757 = vrot.lane.b32.xlu1 %v4140_v9, %s4246_s10  ;;  %v4151_v9 = vld [vmem:[%s4349_s13 + $0x28] sm:$0xff] }
 0x551   : > { %1684 = vmatprep.mubr.f32.mxu1 %v4219_v1 }
 0x554   : > { %1753 = vrot.lane.b32.xlu1 %v4141_v48, %s4246_s10 }
 0x558   : > { %1749 = vrot.lane.b32.xlu1 %v4142_v49, %s4246_s10  ;;  %v4152_v49 = vld [vmem:[%s4349_s13 + $0x20] sm:$0xff] }
 0x55c   : > { %1795 = vrot.lane.b32.xlu1 %v4143_v50, %s4246_s10 }
 0x55d   : > { %v1798_v12 = vpop.permute.xlu0 %1797 }
 0x560   : > { %1791 = vrot.lane.b32.xlu1 %v4144_v53, %s4246_s10 }
 0x564   : > { %1787 = vrot.lane.b32.xlu1 %v4145_v54, %s4246_s10 }
 0x568   : > { %1783 = vrot.lane.b32.xlu1 %v4146_v13, %s4246_s10  ;;  %v1584_v8 = vpop.permute.xlu1 %1583 }
 0x569   : > { %3704 = vmatmul.mubr.msk.f32.vlgmr.msra.gmra.mxu1 %vm629_vm2, %v1584_v8  ;;  %v1794_v16 = vpop.permute.xlu0 %1793 }
 0x56a   : > { %1690 = vmatprep.mubr.f32.mxu1 %v4219_v1 }
 0x56c   : > { %v1586_v56 = vpop.permute.xlu1 %1585 }
 0x56d   : > { %3705 = vmatmul.mubr.msk.f32.gmra.mxu1 %vm629_vm2, %v1586_v56  ;;  %v1790_v20 = vpop.permute.xlu0 %1789  ;;  %v4153_v56 = vld [vmem:[%s4349_s13 + $0x38] sm:$0xff] }
 0x56e   : > { %1696 = vmatprep.mubr.f32.mxu1 %v4219_v1 }
 0x571   : > { %v1786_v62 = vpop.permute.xlu0 %1785 }
 0x577   : > { %v1782_v26 = vpop.permute.xlu0 %1781 }
 0x59e   : > { %v1588_v57 = vpop.permute.xlu1 %1587 }
 0x59f   : > { %3706 = vmatmul.mubr.msk.f32.gmra.mxu1 %vm629_vm2, %v1588_v57 }
 0x5a0   : > { %1702 = vmatprep.mubr.f32.mxu1 %v4219_v1 }
 0x5a2   : > { %v1590_v59 = vpop.permute.xlu1 %1589 }
 0x5a3   : > { %3707 = vmatmul.mubr.msk.f32.gmra.mxu1 %vm629_vm2, %v1590_v59 }
 0x5a6   : > { %v1780_v61 = vpop.permute.xlu1 %1779 }
 0x5a7   : > { %1838 = vmatpush1.msra.mxu1 %v1780_v61 }
 0x5a8   : > { %1839 = vmatprep.subr.mxu1 %v4219_v1 }
 0x5aa   : > { %v1778_v24 = vpop.permute.xlu1 %1777 }
 0x5ab   : > { %1840 = vmatpush1.msra.mxu1 %v1778_v24 }
 0x5ac   : > { %1841 = vmatprep.subr.mxu1 %v4219_v1 }
 0x5ae   : > { %v1776_v0 = vpop.permute.xlu1 %1775 }
 0x5af   : > { %1842 = vmatpush1.msra.mxu1 %v1776_v0 }
 0x5b0   : > { %1843 = vmatprep.subr.mxu1 %v4219_v1 }
 0x5b2   : > { %v1774_v23 = vpop.permute.xlu1 %1773 }
 0x5b3   : > { %1844 = vmatpush1.msra.mxu1 %v1774_v23 }
 0x5b4   : > { %1845 = vmatprep.subr.mxu1 %v4219_v1 }
 0x5b5   : > { %1846 = vmatpush1.msra.mxu1 %v1772_v58  ;;  %v4154_v58 = vld [vmem:[%s4349_s13 + $0x30] sm:$0xff] }
 0x5b6   : > { %1847 = vmatprep.subr.mxu1 %v4219_v1  ;;  %v1770_v4 = vpop.permute.xlu1 %1769 }
 0x5b7   : > { %1848 = vmatpush1.msra.mxu1 %v1770_v4 }
 0x5b8   : > { %1849 = vmatprep.subr.mxu1 %v4219_v1 }
 0x5b9   : > { %1850 = vmatpush1.msra.mxu1 %v1768_v44 }
 0x5ba   : > { %1851 = vmatprep.subr.mxu1 %v4219_v1  ;;  %v1766_v2 = vpop.permute.xlu1 %1765 }
 0x5bb   : > { %1852 = vmatpush1.msra.mxu1 %v1766_v2  ;;  %v4247_v2 = vmov 15  }
 0x5bc   : > { %1853 = vmatprep.subr.mxu1 %v4219_v1  ;;  %3977 = vset.pattern.permute.xlu1 %v4247_v2 }
 0x5bd   : > { %1854 = vmatpush1.msra.mxu1 %v1764_v63 }
 0x5be   : > { %1855 = vmatprep.subr.mxu1 %v4219_v1  ;;  %v1762_v6 = vpop.permute.xlu1 %1761 }
 0x5bf   : > { %1856 = vmatpush1.msra.mxu1 %v1762_v6 }
 0x5c0   : > { %1857 = vmatprep.subr.mxu1 %v4219_v1 }
 0x5c1   : > { %1858 = vmatpush1.msra.mxu1 %v1760_v15 }
 0x5c2   : > { %1859 = vmatprep.subr.mxu1 %v4219_v1  ;;  %v1758_v7 = vpop.permute.xlu1 %1757 }
 0x5c3   : > { %1860 = vmatpush1.msra.mxu1 %v1758_v7 }
 0x5c4   : > { %1861 = vmatprep.subr.mxu1 %v4219_v1 }
 0x5c5   : > { %1862 = vmatpush1.msra.mxu1 %v1756_v52 }
 0x5c6   : > { %1863 = vmatprep.subr.mxu1 %v4219_v1  ;;  %v1754_v14 = vpop.permute.xlu1 %1753 }
 0x5c7   : > { %1864 = vmatpush1.msra.mxu1 %v1754_v14 }
 0x5c8   : > { %1865 = vmatprep.subr.mxu1 %v4219_v1 }
 0x5c9   : > { %1866 = vmatpush1.msra.mxu1 %v1752_v3 }
 0x5ca   : > { %1867 = vmatprep.subr.mxu1 %v4219_v1  ;;  %v1750_v18 = vpop.permute.xlu1 %1749 }
 0x5cb   : > { %1868 = vmatpush1.msra.mxu1 %v1750_v18  ;;  %v4248_v18 = vmov 14  }
 0x5cc   : > { %1883 = vmatprep.subr.mxu1 %v4219_v1  ;;  %3976 = vset.pattern.permute.xlu0 %v4248_v18 }
 0x5cd   : > { %3708 = vmatpush2.msk.msra.mxu1 %vm258_vm1, %v1798_v12 }
 0x5ce   : > { %1885 = vmatprep.subr.mxu1 %v4219_v1  ;;  %v1796_v19 = vpop.permute.xlu1 %1795 }
 0x5cf   : > { %1886 = vmatpush2.msra.mxu1 %v1796_v19 }
 0x5d0   : > { %1887 = vmatprep.subr.mxu1 %v4219_v1 }
 0x5d1   : > { %1888 = vmatpush2.msra.mxu1 %v1794_v16 }
 0x5d2   : > { %1889 = vmatprep.subr.mxu1 %v4219_v1  ;;  %v1792_v42 = vpop.permute.xlu1 %1791 }
 0x5d3   : > { %1890 = vmatpush2.msra.mxu1 %v1792_v42 }
 0x5d4   : > { %1891 = vmatprep.subr.mxu1 %v4219_v1 }
 0x5d5   : > { %1892 = vmatpush2.msra.mxu1 %v1790_v20 }
 0x5d6   : > { %1893 = vmatprep.subr.mxu1 %v4219_v1  ;;  %v1788_v21 = vpop.permute.xlu1 %1787 }
 0x5d7   : > { %1894 = vmatpush2.msra.mxu1 %v1788_v21 }
 0x5d8   : > { %1895 = vmatprep.subr.mxu1 %v4219_v1 }
 0x5d9   : > { %1896 = vmatpush2.msra.mxu1 %v1786_v62 }
 0x5da   : > { %1897 = vmatprep.subr.mxu1 %v4219_v1  ;;  %v1784_v22 = vpop.permute.xlu1 %1783 }
 0x5db   : > { %1898 = vmatpush2.msra.mxu1 %v1784_v22 }
 0x5dc   : > { %1899 = vmatprep.subr.mxu1 %v4219_v1 }
 0x5dd   : > { %1900 = vmatpush2.msra.mxu1 %v1782_v26 }
 0x5de   : > { %3824 = vmatprep.subr.mxu1 %v4219_v1 }
 0x5f1   : > { %v1556_v60 = vpop.f32.mrf.mxu1 }
 0x5f2   : > { %v1709_v11 = vmul.f32 %v4148_v36, %v1556_v60  ;;  %v4250_v36 = vmov 16  }
 0x5f3   : > { %v1558_v5 = vpop.f32.mrf.mxu1 }
 0x5f4   : > { %v1710_v51 = vmul.f32 %v4147_v46, %v1558_v5  ;;  %v5066_v46 = vld [vmem:[%s5338_s1] sm:$0xff] }
 0x5f9   : > { %v1562_v10 = vpop.f32.mrf.mxu1 }
 0x5fa   : > { %v1711_v40 = vmul.f32 %v4150_v39, %v1562_v10 }
 0x5fb   : > { %v1564_v27 = vpop.f32.mrf.mxu1 }
 0x5fc   : > { %v1712_v38 = vmul.f32 %v4149_v34, %v1564_v27 }
 0x60c   : > { %v1568_v29 = vpop.f32.mrf.mxu1 }
 0x60d   : > { %v1713_v50 = vmul.f32 %v4152_v49, %v1568_v29 }
 0x60e   : > { %v1570_v55 = vpop.f32.mrf.mxu1 }
 0x60f   : > { %v1714_v48 = vmul.f32 %v4151_v9, %v1570_v55 }
 0x610   : > { %v1574_v30 = vpop.f32.mrf.mxu1 }
 0x611   : > { %v1715_v59 = vmul.f32 %v4154_v58, %v1574_v30 }
 0x612   : > { %v1576_v25 = vpop.f32.mrf.mxu1 }
 0x613   : > { %v1716_v57 = vmul.f32 %v4153_v56, %v1576_v25 }
 0x629   : > { %v1686_v31 = vpop.f32.mrf.mxu1 }
 0x62a   : > { %v5017_v33 = vmul.f32 %v1709_v11, %v1686_v31 }
 0x62b   : > { %v1688_v28 = vpop.f32.mrf.mxu1 }
 0x62c   : > { %v5015_v32 = vmul.f32 %v1710_v51, %v1688_v28  ;;  %v4249_v51 = vmov 17  }
 0x62d   : > { %v1692_v37 = vpop.f32.mrf.mxu1 }
 0x62e   : > { %3709 = vmatprep.mubr.msk.f32.mxu1 %vm245_vm0, %v5015_v32  ;;  %v5026_v45 = vmul.f32 %v1711_v40, %v1692_v37  ;;  %v5074_v37 = vld [vmem:[%s5338_s1 + $0x8] sm:$0xff] }
 0x62f   : > { %v1694_v41 = vpop.f32.mrf.mxu1  ;;  %1902 = vmatmul.mubr.f32.vlgmr.msra.gmra.mxu1 %v5017_v33 }
 0x630   : > { %v5024_v47 = vmul.f32 %v1712_v38, %v1694_v41 }
 0x632   : > { %3710 = vmatprep.mubr.msk.f32.mxu1 %vm245_vm0, %v5024_v47 }
 0x633   : > { %1907 = vmatmul.mubr.f32.gmra.mxu1 %v5026_v45 }
 0x65f   : > { %v1698_v43 = vpop.f32.mrf.mxu1 }
 0x660   : > { %v5035_v13 = vmul.f32 %v1713_v50, %v1698_v43 }
 0x661   : > { %v1700_v53 = vpop.f32.mrf.mxu1 }
 0x662   : > { %v5033_v54 = vmul.f32 %v1714_v48, %v1700_v53 }
 0x663   : > { %v1704_v8 = vpop.f32.mrf.mxu1 }
 0x664   : > { %3711 = vmatprep.mubr.msk.f32.mxu1 %vm245_vm0, %v5033_v54  ;;  %v5044_v24 = vmul.f32 %v1715_v59, %v1704_v8 }
 0x665   : > { %v1706_v44 = vpop.f32.mrf.mxu1  ;;  %1912 = vmatmul.mubr.f32.gmra.mxu1 %v5035_v13 }
 0x666   : > { %v5042_v61 = vmul.f32 %v1716_v57, %v1706_v44 }
 0x668   : > { %3712 = vmatprep.mubr.msk.f32.mxu1 %vm245_vm0, %v5042_v61 }
 0x669   : > { %1917 = vmatmul.mubr.f32.gmra.mxu1 %v5044_v24 }
 0x66a   : > { %3826 = vmatprep.mubr.msk.f32.mxu1 %vm4251_vm6, %v4219_v1 }
 0x6ef   : > { %v1903_v63 = vpop.f32.mrf.mxu1 }
 0x6f0   : > { %v1923_v0 = vsel %vm1922_vm5, %v1903_v63, 0.0 }
 0x6f1   : > { %1924 = vadd.xlane.f32.xlu1 %v1923_v0  ;;  %v1905_v15 = vpop.f32.mrf.mxu1 }
 0x6f3   : > { %v1908_v23 = vpop.f32.mrf.mxu1 }
 0x6f4   : > { %v1926_v4 = vsel %vm1922_vm5, %v1908_v23, 0.0 }
 0x6f5   : > { %1927 = vadd.xlane.f32.xlu0 %v1926_v4  ;;  %v1910_v52 = vpop.f32.mrf.mxu1 }
 0x725   : > { %v1913_v3 = vpop.f32.mrf.mxu1 }
 0x726   : > { %v1929_v6 = vsel %vm1922_vm5, %v1913_v3, 0.0 }
 0x727   : > { %1930 = vadd.xlane.f32.xlu0 %v1929_v6  ;;  %v1915_v7 = vpop.f32.mrf.mxu1 }
 0x729   : > { %v1918_v12 = vpop.f32.mrf.mxu1 }
 0x72a   : > { %v1932_v14 = vsel %vm1922_vm5, %v1918_v12, 0.0 }
 0x72b   : > { %1933 = vadd.xlane.f32.xlu1 %v1932_v14  ;;  %v1920_v16 = vpop.f32.mrf.mxu1 }
 0x77a   : > { %v1925_v19 = vpop.xlane.xlu1 %1924 }
 0x77e   : > { %v1928_v20 = vpop.xlane.xlu0 %1927 }
 0x77f   : > { %v1935_v42 = vadd.f32 %v1928_v20, %v1925_v19 }
 0x781   : > { %v1936_v62 = vrot.slane %v1935_v42, 4 }
 0x783   : > { %v1937_v21 = vadd.f32 %v1936_v62, %v1935_v42 }
 0x785   : > { %v1938_v22 = vrot.slane %v1937_v21, 2 }
 0x787   : > { %v1939_v26 = vadd.f32 %v1938_v22, %v1937_v21 }
 0x789   : > { %v1940_v60 = vrot.slane %v1939_v26, 1 }
 0x78b   : > { %v1941_v5 = vadd.f32 %v1940_v60, %v1939_v26 }
 0x78d   : > { %v1950_v10 = vmul.f32 0.015625, %v1941_v5 }
 0x78f   : > { %v5053_v27 = vsub.f32 %v1903_v63, %v1950_v10  ;;  %v5055_v29 = vsub.f32 %v1908_v23, %v1950_v10 }
 0x791   : > { %v1956_v55 = vmul.f32 %v5053_v27, %v5053_v27  ;;  %v1957_v30 = vmul.f32 %v5055_v29, %v5055_v29 }
 0x793   : > { %v1960_v25 = vsel %vm1922_vm5, %v1956_v55, 0.0  ;;  %v1963_v31 = vsel %vm1922_vm5, %v1957_v30, 0.0 }
 0x794   : > { %1961 = vadd.xlane.f32.xlu0 %v1960_v25  ;;  %1964 = vadd.xlane.f32.xlu1 %v1963_v31 }
 0x7a5   : > { %2009 = vperm.xlu1 %3977, %v5066_v46  }
 0x7a9   : > { %3978 = vset.pattern.permute.xlu1 %v4249_v51 }
 0x7aa   : > { %2041 = vperm.xlu1 %3978, %v5066_v46  }
 0x7ae   : > { %3979 = vset.pattern.permute.xlu1 %v4250_v36 }
 0x7af   : > { %2021 = vperm.xlu1 %3979, %v5066_v46  }
 0x7b0   : > { %v1931_v11 = vpop.xlane.xlu0 %1930 }
 0x7b3   : > { %3980 = vset.pattern.permute.xlu1 %v4248_v18 }
 0x7b4   : > { %v1934_v28 = vpop.xlane.xlu1 %1933  ;;  %2001 = vperm.xlu1 %3980, %v5074_v37  }
 0x7b5   : > { %v1942_v34 = vadd.f32 %v1934_v28, %v1931_v11 }
 0x7b7   : > { %v1943_v38 = vrot.slane %v1942_v34, 4 }
 0x7b8   : > { %3981 = vset.pattern.permute.xlu1 %v4247_v2 }
 0x7b9   : > { %v1944_v39 = vadd.f32 %v1943_v38, %v1942_v34  ;;  %2013 = vperm.xlu1 %3981, %v5074_v37  }
 0x7bb   : > { %v1945_v40 = vrot.slane %v1944_v39, 2 }
 0x7bd   : > { %v1946_v41 = vadd.f32 %v1945_v40, %v1944_v39  ;;  %3982 = vset.pattern.permute.xlu1 %v4249_v51 }
 0x7bf   : > { %v1947_v43 = vrot.slane %v1946_v41, 1 }
 0x7c1   : > { %v1948_v9 = vadd.f32 %v1947_v43, %v1946_v41 }
 0x7c3   : > { %v1951_v48 = vmul.f32 0.015625, %v1948_v9 }
 0x7c5   : > { %v5078_v49 = vsub.f32 %v1913_v3, %v1951_v48  ;;  %v5083_v8 = vsub.f32 %v1918_v12, %v1951_v48 }
 0x7c7   : > { %v1958_v50 = vmul.f32 %v5078_v49, %v5078_v49  ;;  %v1959_v56 = vmul.f32 %v5083_v8, %v5083_v8 }
 0x7c9   : > { %v1966_v53 = vsel %vm1922_vm5, %v1958_v50, 0.0  ;;  %v1969_v57 = vsel %vm1922_vm5, %v1959_v56, 0.0 }
 0x7ca   : > { %1967 = vadd.xlane.f32.xlu0 %v1966_v53 }
 0x7dd   : > { %1970 = vadd.xlane.f32.xlu1 %v1969_v57 }
 0x7e0   : > { %1997 = vperm.xlu0 %3976, %v5066_v46  }
 0x7ee   : > { %2045 = vperm.xlu1 %3982, %v5074_v37  }
 0x7f2   : > { %3983 = vset.pattern.permute.xlu1 %v4250_v36 }
 0x7f3   : > { %2025 = vperm.xlu1 %3983, %v5074_v37  }
 0x81d   : > { %v1962_v58 = vpop.xlane.xlu0 %1961  ;;  %v1965_v59 = vpop.xlane.xlu1 %1964 }
 0x81e   : > { %v1972_v44 = vadd.f32 %v1965_v59, %v1962_v58 }
 0x820   : > { %v1973_v63 = vrot.slane %v1972_v44, 4 }
 0x821   : > { %v2010_v6 = vpop.permute.xlu1 %2009 }
 0x822   : > { %v1974_v0 = vadd.f32 %v1973_v63, %v1972_v44 }
 0x824   : > { %v1975_v15 = vrot.slane %v1974_v0, 2 }
 0x825   : > { %v2042_v7 = vpop.permute.xlu1 %2041 }
 0x826   : > { %v1976_v23 = vadd.f32 %v1975_v15, %v1974_v0 }
 0x828   : > { %v1977_v4 = vrot.slane %v1976_v23, 1 }
 0x82a   : > { %v1978_v52 = vadd.f32 %v1977_v4, %v1976_v23  ;;  %v2022_v14 = vpop.permute.xlu1 %2021 }
 0x82c   : > { %v1986_v2 = vmul.f32 0.015625, %v1978_v52 }
 0x82e   : > { %v1988_v3 = vadd.f32 1e-05, %v1986_v2  ;;  %v4252_v2 = vmov 18  }
 0x82f   : > { %v2002_v42 = vpop.permute.xlu1 %2001  ;;  %3985 = vset.pattern.permute.xlu1 %v4252_v2  ;;  %3984 = vset.pattern.permute.xlu0 %v4252_v2 }
 0x830   : > { %4052 = vrsqrt.f32 %v1988_v3 }
 0x834   : > { %v2014_v26 = vpop.permute.xlu1 %2013 }
 0x83d   : > { %v4053_v12 = vpop.eup %4052 }
 0x83e   : > { %v1992_v18 = vmul.f32 %v4053_v12, %v5053_v27  ;;  %v1993_v22 = vmul.f32 %v4053_v12, %v5055_v29 }
 0x840   : > { %v2005_v10 = vmul.f32 %v2002_v42, %v1993_v22 }
 0x842   : > { %v5109_v30 = vadd.f32 %v2014_v26, %v2005_v10 }
 0x853   : > { %v1968_v16 = vpop.xlane.xlu0 %1967 }
 0x85b   : > { %v1998_v19 = vpop.permute.xlu0 %1997 }
 0x85c   : > { %v2004_v20 = vmul.f32 %v1998_v19, %v1992_v18 }
 0x85e   : > { %v5096_v62 = vadd.f32 %v2010_v6, %v2004_v20 }
 0x860   : > { %v2048_v21 = vmul.f32 %v2042_v7, %v5096_v62  ;;  %v2028_v60 = vmul.f32 %v2022_v14, %v5096_v62 }
 0x862   : > { %3795 = vmatpush3.xpose.msk.msra.mxu0 %vm1922_vm5, %v2048_v21  ;;  %v2056_v5 = vcombine.high %v2048_v21, %v2048_v21  ;;  %v2036_v27 = vcombine.high %v2028_v60, %v2028_v60 }
 0x863   : > { %3799 = vmatprep.subr.mxu0 %v4219_v1 }
 0x865   : > { %3797 = vmatmul.mubr.msk.f32.vlgmr.msra.gmra.mxu0 %vm1922_vm5, %v2028_v60 }
 0x866   : > { %3800 = vmatpush3.xpose.msk.msra.mxu0 %vm1922_vm5, %v2056_v5  ;;  %3801 = vmatprep.mubr.msk.f32.mxu0 %vm4251_vm6, %v4219_v1  ;;  %v1971_v55 = vpop.xlane.xlu1 %1970 }
 0x867   : > { %3804 = vmatprep.subr.mxu0 %v4219_v1  ;;  %v1979_v29 = vadd.f32 %v1971_v55, %v1968_v16 }
 0x869   : > { %3802 = vmatmul.mubr.msk.f32.vlgmr.msra.gmra.mxu0 %vm1922_vm5, %v2036_v27  ;;  %v1980_v25 = vrot.slane %v1979_v29, 4 }
 0x86a   : > { %3806 = vmatprep.mubr.msk.f32.mxu0 %vm4251_vm6, %v4219_v1  ;;  %v2046_v31 = vpop.permute.xlu1 %2045 }
 0x86b   : > { %v1981_v51 = vadd.f32 %v1980_v25, %v1979_v29  ;;  %v2049_v36 = vmul.f32 %v2046_v31, %v5109_v30 }
 0x86d   : > { %v1982_v11 = vrot.slane %v1981_v51, 2  ;;  %3805 = vmatpush3.xpose.msk.msra.mxu0 %vm1922_vm5, %v2049_v36  ;;  %v2057_v39 = vcombine.high %v2049_v36, %v2049_v36 }
 0x86e   : > { %v2026_v28 = vpop.permute.xlu1 %2025  ;;  %3809 = vmatprep.subr.mxu0 %v4219_v1 }
 0x86f   : > { %v1983_v34 = vadd.f32 %v1982_v11, %v1981_v51  ;;  %v2029_v38 = vmul.f32 %v2026_v28, %v5109_v30 }
 0x871   : > { %v1984_v40 = vrot.slane %v1983_v34, 1  ;;  %3807 = vmatmul.mubr.msk.f32.vlgmr.msra.gmra.mxu0 %vm1922_vm5, %v2029_v38  ;;  %v2037_v43 = vcombine.high %v2029_v38, %v2029_v38 }
 0x872   : > { %3810 = vmatpush3.xpose.msk.msra.mxu0 %vm1922_vm5, %v2057_v39  ;;  %3811 = vmatprep.mubr.msk.f32.mxu0 %vm4251_vm6, %v4219_v1 }
 0x873   : > { %v1985_v41 = vadd.f32 %v1984_v40, %v1983_v34  ;;  %3814 = vmatprep.subr.mxu0 %v4219_v1 }
 0x875   : > { %v1987_v9 = vmul.f32 0.015625, %v1985_v41  ;;  %3812 = vmatmul.mubr.msk.f32.vlgmr.msra.gmra.mxu0 %vm1922_vm5, %v2037_v43 }
 0x876   : > { %3816 = vmatprep.mubr.msk.f32.mxu0 %vm4251_vm6, %v4219_v1 }
 0x877   : > { %v1989_v48 = vadd.f32 1e-05, %v1987_v9 }
 0x879   : > { %4054 = vrsqrt.f32 %v1989_v48 }
 0x886   : > { %v4055_v50 = vpop.eup %4054 }
 0x887   : > { %v1995_v53 = vmul.f32 %v4055_v50, %v5083_v8  ;;  %v1994_v56 = vmul.f32 %v4055_v50, %v5078_v49 }
 0x889   : > { %v2007_v57 = vmul.f32 %v2002_v42, %v1995_v53  ;;  %v2006_v58 = vmul.f32 %v1998_v19, %v1994_v56 }
 0x88b   : > { %v5127_v59 = vadd.f32 %v2014_v26, %v2007_v57  ;;  %v5129_v44 = vadd.f32 %v2010_v6, %v2006_v58 }
 0x88d   : > { %v2051_v63 = vmul.f32 %v2046_v31, %v5127_v59  ;;  %v2050_v0 = vmul.f32 %v2042_v7, %v5129_v44  ;;  %v2031_v15 = vmul.f32 %v2026_v28, %v5127_v59  ;;  %v2030_v8 = vmul.f32 %v2022_v14, %v5129_v44 }
 0x88f   : > { %3815 = vmatpush3.xpose.msk.msra.mxu0 %vm1922_vm5, %v2050_v0  ;;  %3825 = vmatpush3.xpose.msk.msra.mxu1 %vm1922_vm5, %v2051_v63  ;;  %v2058_v49 = vcombine.high %v2050_v0, %v2050_v0  ;;  %v2038_v23 = vcombine.high %v2030_v8, %v2030_v8  ;;  %v2059_v4 = vcombine.high %v2051_v63, %v2051_v63 }
 0x890   : > { %3819 = vmatprep.subr.mxu0 %v4219_v1  ;;  %3834 = vmatprep.subr.mxu1 %v4219_v1  ;;  %v2039_v52 = vcombine.high %v2031_v15, %v2031_v15 }
 0x892   : > { %3817 = vmatmul.mubr.msk.f32.vlgmr.msra.gmra.mxu0 %vm1922_vm5, %v2030_v8  ;;  %3827 = vmatmul.mubr.msk.f32.vlgmr.msra.gmra.mxu1 %vm1922_vm5, %v2031_v15 }
 0x893   : > { %3820 = vmatpush3.xpose.msk.msra.mxu0 %vm1922_vm5, %v2058_v49  ;;  %3821 = vmatprep.mubr.msk.f32.mxu0 %vm4251_vm6, %v4219_v1 }
 0x894   : > { %3829 = vmatprep.subr.mxu0 %v4219_v1  ;;  %3836 = vmatprep.mubr.msk.f32.mxu1 %vm4251_vm6, %v4219_v1 }
 0x896   : > { %3822 = vmatmul.mubr.msk.f32.vlgmr.msra.gmra.mxu0 %vm1922_vm5, %v2038_v23 }
 0x897   : > { %3830 = vmatpush3.xpose.msk.msra.mxu0 %vm1922_vm5, %v2059_v4  ;;  %3831 = vmatprep.mubr.msk.f32.mxu0 %vm4251_vm6, %v4219_v1 }
 0x898   : > { %3839 = vmatprep.subr.mxu0 %v4219_v1 }
 0x89a   : > { %3832 = vmatmul.mubr.msk.f32.vlgmr.msra.gmra.mxu0 %vm1922_vm5, %v2039_v52 }
 0x89b   : > { %3841 = vmatprep.mubr.msk.f32.mxu0 %vm4251_vm6, %v4219_v1 }
 0x925   : > { %v2154_v3 = vpop.f32.mrf.mxu0 }
 0x926   : > { %v2676_v6 = vmul.f32 0.5, %v2154_v3 }
 0x927   : > { %v3798_v7 = vpop.f32.mrf.mxu0 }
 0x928   : > { %v2685_v12 = vsel %vm2684_vm7, %v2676_v6, -inf }
 0x929   : > { %2686 = vmax.xlane.f32.xlu1 %v2685_v12  ;;  %v2228_v14 = vpop.f32.mrf.mxu0 }
 0x92a   : > { %v2677_v16 = vmul.f32 0.5, %v2228_v14 }
 0x92b   : > { %v3803_v18 = vpop.f32.mrf.mxu0 }
 0x92c   : > { %v2688_v19 = vsel %vm2684_vm7, %v2677_v16, -inf }
 0x92d   : > { %2689 = vmax.xlane.f32.xlu0 %v2688_v19 }
 0x931   : > { %v2302_v20 = vpop.f32.mrf.mxu0 }
 0x932   : > { %v2678_v42 = vmul.f32 0.5, %v2302_v20 }
 0x933   : > { %v3808_v21 = vpop.f32.mrf.mxu0 }
 0x934   : > { %v2691_v22 = vsel %vm2684_vm7, %v2678_v42, -inf }
 0x935   : > { %2692 = vmax.xlane.f32.xlu0 %v2691_v22  ;;  %v2376_v26 = vpop.f32.mrf.mxu0 }
 0x936   : > { %v2679_v60 = vmul.f32 0.5, %v2376_v26 }
 0x937   : > { %v3813_v5 = vpop.f32.mrf.mxu0 }
 0x938   : > { %v2694_v10 = vsel %vm2684_vm7, %v2679_v60, -inf }
 0x939   : > { %2695 = vmax.xlane.f32.xlu1 %v2694_v10 }
 0x952   : > { %v2450_v27 = vpop.f32.mrf.mxu0  ;;  %v2598_v55 = vpop.f32.mrf.mxu1 }
 0x953   : > { %v2682_v29 = vmul.f32 0.5, %v2598_v55  ;;  %v2680_v51 = vmul.f32 0.5, %v2450_v27 }
 0x954   : > { %v3818_v25 = vpop.f32.mrf.mxu0  ;;  %v3828_v31 = vpop.f32.mrf.mxu1 }
 0x955   : > { %v2703_v36 = vsel %vm2684_vm7, %v2682_v29, -inf  ;;  %v2697_v38 = vsel %vm2684_vm7, %v2680_v51, -inf }
 0x956   : > { %2704 = vmax.xlane.f32.xlu0 %v2703_v36  ;;  %v2524_v11 = vpop.f32.mrf.mxu0 }
 0x957   : > { %v2681_v28 = vmul.f32 0.5, %v2524_v11 }
 0x958   : > { %v3823_v34 = vpop.f32.mrf.mxu0 }
 0x959   : > { %v2700_v39 = vsel %vm2684_vm7, %v2681_v28, -inf }
 0x95a   : > { %2698 = vmax.xlane.f32.xlu0 %v2697_v38  ;;  %2701 = vmax.xlane.f32.xlu1 %v2700_v39  ;;  %v2672_v40 = vpop.f32.mrf.mxu0 }
 0x95b   : > { %v2683_v41 = vmul.f32 0.5, %v2672_v40 }
 0x95c   : > { %v3833_v43 = vpop.f32.mrf.mxu0 }
 0x95d   : > { %v2706_v9 = vsel %vm2684_vm7, %v2683_v41, -inf }
 0x95e   : > { %2707 = vmax.xlane.f32.xlu1 %v2706_v9 }
 0x96f   : > { %2065 = vperm.xlu1 %3985, %v5074_v37  }
 0x970   : > { %2061 = vperm.xlu0 %3984, %v5066_v46  }
 0x973   : > { %3986 = vset.pattern.permute.xlu1 %v4228_v35 }
 0x974   : > { %3987 = vset.pattern.permute.xlu0 %v4228_v35 }
 0x9b2   : > { %v2687_v48 = vpop.xlane.xlu1 %2686 }
 0x9b3   : > { %v2709_v50 = vsub.f32 %v2676_v6, %v2687_v48 }
 0x9b5   : > { %v2717_v53 = vmul.f32 1.442695, %v2709_v50 }
 0x9b6   : > { %v2690_v56 = vpop.xlane.xlu0 %2689 }
 0x9b7   : > { %4056 = vpow2.f32 %v2717_v53  ;;  %v2710_v57 = vsub.f32 %v2677_v16, %v2690_v56 }
 0x9b9   : > { %v2719_v58 = vmul.f32 1.442695, %v2710_v57 }
 0x9bb   : > { %4058 = vpow2.f32 %v2719_v58 }
 0x9be   : > { %v2693_v63 = vpop.xlane.xlu0 %2692 }
 0x9bf   : > { %v2711_v0 = vsub.f32 %v2678_v42, %v2693_v63 }
 0x9c1   : > { %v2721_v15 = vmul.f32 1.442695, %v2711_v0 }
 0x9c2   : > { %v2696_v8 = vpop.xlane.xlu1 %2695 }
 0x9c3   : > { %4060 = vpow2.f32 %v2721_v15  ;;  %v2712_v46 = vsub.f32 %v2679_v60, %v2696_v8 }
 0x9c4   : > { %v5167_v49 = vpop.eup %4056 }
 0x9c5   : > { %v2733_v37 = vsel %vm2684_vm7, %v5167_v49, 0.0  ;;  %v2723_v35 = vmul.f32 1.442695, %v2712_v46 }
 0x9c6   : > { %2734 = vadd.xlane.f32.xlu1 %v2733_v37 }
 0x9c7   : > { %4062 = vpow2.f32 %v2723_v35 }
 0x9c8   : > { %v5171_v23 = vpop.eup %4058 }
 0x9c9   : > { %v2736_v4 = vsel %vm2684_vm7, %v5171_v23, 0.0 }
 0x9ca   : > { %2737 = vadd.xlane.f32.xlu0 %v2736_v4 }
 0x9d0   : > { %v5175_v52 = vpop.eup %4060 }
 0x9d1   : > { %v2739_v2 = vsel %vm2684_vm7, %v5175_v52, 0.0 }
 0x9d2   : > { %2740 = vadd.xlane.f32.xlu1 %v2739_v2 }
 0x9d4   : > { %v5179_v3 = vpop.eup %4062 }
 0x9d5   : > { %v2742_v6 = vsel %vm2684_vm7, %v5179_v3, 0.0 }
 0x9d6   : > { %2743 = vadd.xlane.f32.xlu1 %v2742_v6 }
 0x9df   : > { %v2705_v7 = vpop.xlane.xlu0 %2704 }
 0x9e0   : > { %v2715_v19 = vsub.f32 %v2682_v29, %v2705_v7 }
 0x9e2   : > { %v2729_v26 = vmul.f32 1.442695, %v2715_v19 }
 0x9e3   : > { %v2699_v12 = vpop.xlane.xlu0 %2698  ;;  %v2702_v14 = vpop.xlane.xlu1 %2701 }
 0x9e4   : > { %v2713_v16 = vsub.f32 %v2680_v51, %v2699_v12  ;;  %v2714_v18 = vsub.f32 %v2681_v28, %v2702_v14 }
 0x9e6   : > { %v2725_v20 = vmul.f32 1.442695, %v2713_v16  ;;  %v2727_v42 = vmul.f32 1.442695, %v2714_v18 }
 0x9e7   : > { %v2708_v21 = vpop.xlane.xlu1 %2707 }
 0x9e8   : > { %4064 = vpow2.f32 %v2725_v20  ;;  %v2716_v22 = vsub.f32 %v2683_v41, %v2708_v21 }
 0x9e9   : > { %4066 = vpow2.f32 %v2727_v42 }
 0x9ea   : > { %v2731_v60 = vmul.f32 1.442695, %v2716_v22 }
 0x9eb   : > { %v2062_v5 = vpop.permute.xlu0 %2061  ;;  %v2066_v29 = vpop.permute.xlu1 %2065 }
 0x9ec   : > { %4068 = vpow2.f32 %v2731_v60  ;;  %v2068_v27 = vmul.f32 %v2062_v5, %v5096_v62  ;;  %v2069_v51 = vmul.f32 %v2066_v29, %v5109_v30  ;;  %v2070_v62 = vmul.f32 %v2062_v5, %v5129_v44 }
 0x9ed   : > { %4070 = vpow2.f32 %v2729_v26  ;;  %v2071_v30 = vmul.f32 %v2066_v29, %v5127_v59 }
 0x9ee   : > { %v2076_v28 = vcombine.high %v2068_v27, %v2068_v27  ;;  %v2077_v40 = vcombine.high %v2069_v51, %v2069_v51  ;;  %v2773_v41 = vsel %vm2684_vm7, %v2068_v27, 0.0  ;;  %v2078_v9 = vcombine.high %v2070_v62, %v2070_v62 }
 0x9ef   : > { %v2779_v48 = vsel %vm2684_vm7, %v2069_v51, 0.0  ;;  %v2079_v50 = vcombine.high %v2071_v30, %v2071_v30  ;;  %v2785_v53 = vsel %vm2684_vm7, %v2070_v62, 0.0  ;;  %v2791_v59 = vsel %vm2684_vm7, %v2071_v30, 0.0 }
 0x9f0   : > { %v2776_v39 = vsel %vm2684_vm7, %v2076_v28, 0.0  ;;  %v2782_v43 = vsel %vm2684_vm7, %v2077_v40, 0.0  ;;  %v2788_v44 = vsel %vm2684_vm7, %v2078_v9, 0.0 }
 0x9f1   : > { %v2794_v56 = vsel %vm2684_vm7, %v2079_v50, 0.0 }
 0x9f5   : > { %v5183_v10 = vpop.eup %4064 }
 0x9f6   : > { %v2745_v55 = vsel %vm2684_vm7, %v5183_v10, 0.0  ;;  %v5188_v25 = vpop.eup %4066 }
 0x9f7   : > { %2746 = vadd.xlane.f32.xlu1 %v2745_v55  ;;  %v2748_v36 = vsel %vm2684_vm7, %v5188_v25, 0.0 }
 0x9f9   : > { %v5190_v31 = vpop.eup %4068 }
 0x9fa   : > { %v2754_v11 = vsel %vm2684_vm7, %v5190_v31, 0.0  ;;  %v5197_v34 = vpop.eup %4070 }
 0x9fb   : > { %2749 = vadd.xlane.f32.xlu1 %v2748_v36  ;;  %2755 = vadd.xlane.f32.xlu0 %v2754_v11  ;;  %v2751_v38 = vsel %vm2684_vm7, %v5197_v34, 0.0 }
 0x9ff   : > { %2752 = vadd.xlane.f32.xlu1 %v2751_v38  ;;  %2777 = vadd.xlane.f32.xlu0 %v2776_v39 }
 0xa03   : > { %2774 = vadd.xlane.f32.xlu1 %v2773_v41  ;;  %2783 = vadd.xlane.f32.xlu0 %v2782_v43 }
 0xa07   : > { %2780 = vadd.xlane.f32.xlu1 %v2779_v48  ;;  %2789 = vadd.xlane.f32.xlu0 %v2788_v44 }
 0xa0b   : > { %2786 = vadd.xlane.f32.xlu1 %v2785_v53  ;;  %2795 = vadd.xlane.f32.xlu0 %v2794_v56 }
 0xa0f   : > { %2792 = vadd.xlane.f32.xlu1 %v2791_v59 }
 0xa4f   : > { %v2735_v57 = vpop.xlane.xlu1 %2734 }
 0xa53   : > { %v2738_v63 = vpop.xlane.xlu0 %2737 }
 0xa54   : > { %4072 = vrcp.f32 %v2738_v63 }
 0xa55   : > { %4074 = vrcp.f32 %v2735_v57 }
 0xa5b   : > { %v2741_v58 = vpop.xlane.xlu1 %2740 }
 0xa5f   : > { %v2744_v0 = vpop.xlane.xlu1 %2743 }
 0xa60   : > { %4076 = vrcp.f32 %v2744_v0 }
 0xa61   : > { %4078 = vrcp.f32 %v2741_v58  ;;  %v4073_v37 = vpop.eup %4072 }
 0xa62   : > { %v4075_v6 = vpop.eup %4074  ;;  %v2766_v7 = vmul.f32 %v4073_v37, %v5171_v23 }
 0xa63   : > { %v2765_v20 = vmul.f32 %v4075_v6, %v5167_v49 }
 0xa6d   : > { %v4077_v12 = vpop.eup %4076 }
 0xa6e   : > { %v2768_v42 = vmul.f32 %v4077_v12, %v5179_v3  ;;  %v4079_v21 = vpop.eup %4078 }
 0xa6f   : > { %v2767_v3 = vmul.f32 %v4079_v21, %v5175_v52 }
 0xa80   : > { %v2747_v15 = vpop.xlane.xlu1 %2746 }
 0xa81   : > { %4080 = vrcp.f32 %v2747_v15 }
 0xa84   : > { %v2756_v8 = vpop.xlane.xlu0 %2755  ;;  %v2750_v46 = vpop.xlane.xlu1 %2749 }
 0xa85   : > { %4082 = vrcp.f32 %v2750_v46 }
 0xa86   : > { %4084 = vrcp.f32 %v2756_v8 }
 0xa88   : > { %v2778_v35 = vpop.xlane.xlu0 %2777  ;;  %v2753_v4 = vpop.xlane.xlu1 %2752 }
 0xa89   : > { %v2799_v2 = vmul.f32 0.25, %v2778_v35  ;;  %4086 = vrcp.f32 %v2753_v4 }
 0xa8b   : > { %3840 = vmatpush3.msk.msra.mxu0 %vm258_vm1, %v2799_v2 }
 0xa8c   : > { %3842 = vmatmul.mubr.msk.f32.vlgmr.msra.gmra.mxu0 %vm1922_vm5, %v2766_v7  ;;  %v2784_v14 = vpop.xlane.xlu0 %2783  ;;  %v2775_v16 = vpop.xlane.xlu1 %2774  ;;  %3849 = vmatprep.subr.mxu0 %v4219_v1 }
 0xa8d   : > { %v2801_v18 = vmul.f32 0.25, %v2784_v14  ;;  %v2798_v19 = vmul.f32 0.25, %v2775_v16  ;;  %3851 = vmatprep.mubr.msk.f32.mxu0 %vm4251_vm6, %v4219_v1 }
 0xa8e   : > { %v4081_v49 = vpop.eup %4080 }
 0xa8f   : > { %3835 = vmatpush3.msk.msra.mxu1 %vm258_vm1, %v2798_v19  ;;  %3850 = vmatpush3.msk.msra.mxu0 %vm258_vm1, %v2801_v18  ;;  %v2769_v52 = vmul.f32 %v4081_v49, %v5183_v10 }
 0xa90   : > { %v2790_v23 = vpop.xlane.xlu0 %2789  ;;  %3837 = vmatmul.mubr.msk.f32.vlgmr.msra.gmra.mxu1 %vm1922_vm5, %v2765_v20  ;;  %3852 = vmatmul.mubr.msk.f32.vlgmr.msra.gmra.mxu0 %vm1922_vm5, %v2768_v42  ;;  %v2781_v22 = vpop.xlane.xlu1 %2780 }
 0xa91   : > { %v2803_v26 = vmul.f32 0.25, %v2790_v23  ;;  %v2800_v60 = vmul.f32 0.25, %v2781_v22  ;;  %3844 = vmatprep.subr.mxu1 %v4219_v1  ;;  %3859 = vmatprep.subr.mxu0 %v4219_v1 }
 0xa92   : > { %3846 = vmatprep.mubr.msk.f32.mxu1 %vm4251_vm6, %v4219_v1  ;;  %3861 = vmatprep.mubr.msk.f32.mxu0 %vm4251_vm6, %v4219_v1  ;;  %v4083_v5 = vpop.eup %4082 }
 0xa93   : > { %3845 = vmatpush3.msk.msra.mxu1 %vm258_vm1, %v2800_v60  ;;  %3860 = vmatpush3.msk.msra.mxu0 %vm258_vm1, %v2803_v26  ;;  %v2770_v29 = vmul.f32 %v4083_v5, %v5188_v25  ;;  %v4085_v51 = vpop.eup %4084 }
 0xa94   : > { %v2796_v27 = vpop.xlane.xlu0 %2795  ;;  %3847 = vmatmul.mubr.msk.f32.vlgmr.msra.gmra.mxu1 %vm1922_vm5, %v2767_v3  ;;  %v2787_v55 = vpop.xlane.xlu1 %2786  ;;  %3854 = vmatprep.subr.mxu1 %v4219_v1  ;;  %v2772_v62 = vmul.f32 %v4085_v51, %v5190_v31 }
 0xa95   : > { %v2805_v36 = vmul.f32 0.25, %v2796_v27  ;;  %v2802_v11 = vmul.f32 0.25, %v2787_v55  ;;  %3869 = vmatprep.subr.mxu0 %v4219_v1  ;;  %3856 = vmatprep.mubr.msk.f32.mxu1 %vm4251_vm6, %v4219_v1 }
 0xa96   : > { %3862 = vmatmul.mubr.msk.f32.vlgmr.msra.gmra.mxu0 %vm1922_vm5, %v2770_v29  ;;  %v4087_v28 = vpop.eup %4086 }
 0xa97   : > { %3855 = vmatpush3.msk.msra.mxu1 %vm258_vm1, %v2802_v11  ;;  %3870 = vmatpush3.msk.msra.mxu0 %vm258_vm1, %v2805_v36  ;;  %v2771_v10 = vmul.f32 %v4087_v28, %v5197_v34 }
 0xa98   : > { %3857 = vmatmul.mubr.msk.f32.vlgmr.msra.gmra.mxu1 %vm1922_vm5, %v2769_v52  ;;  %3871 = vmatprep.mubr.msk.f32.mxu0 %vm4251_vm6, %v4219_v1  ;;  %v2793_v25 = vpop.xlane.xlu1 %2792 }
 0xa99   : > { %v2804_v38 = vmul.f32 0.25, %v2793_v25  ;;  %3864 = vmatprep.subr.mxu1 %v4219_v1  ;;  %3866 = vmatprep.mubr.msk.f32.mxu1 %vm4251_vm6, %v4219_v1 }
 0xa9a   : > { %3872 = vmatmul.mubr.msk.f32.vlgmr.msra.gmra.mxu0 %vm1922_vm5, %v2772_v62 }
 0xa9b   : > { %3865 = vmatpush3.msk.msra.mxu1 %vm258_vm1, %v2804_v38 }
 0xa9c   : > { %3867 = vmatmul.mubr.msk.f32.vlgmr.msra.gmra.mxu1 %vm1922_vm5, %v2771_v10 }
 0xb4c   : > { %v2954_v39 = vpop.f32.mrf.mxu0 }
 0xb4d   : > { %v3746_v40 = vmul.f32 -1.442695, %v2954_v39 }
 0xb4e   : > { %v3843_v30 = vpop.f32.mrf.mxu0 }
 0xb4f   : > { %4088 = vpow2.f32 %v3746_v40 }
 0xb50   : > { %v2878_v41 = vpop.f32.mrf.mxu1  ;;  %v3106_v31 = vpop.f32.mrf.mxu0 }
 0xb51   : > { %v3745_v43 = vmul.f32 -1.442695, %v2878_v41  ;;  %v3748_v9 = vmul.f32 -1.442695, %v3106_v31 }
 0xb52   : > { %v3838_v48 = vpop.f32.mrf.mxu1  ;;  %v3853_v44 = vpop.f32.mrf.mxu0 }
 0xb53   : > { %4090 = vpow2.f32 %v3745_v43 }
 0xb54   : > { %v3030_v1 = vpop.f32.mrf.mxu1  ;;  %4092 = vpow2.f32 %v3748_v9 }
 0xb55   : > { %v3747_v50 = vmul.f32 -1.442695, %v3030_v1 }
 0xb56   : > { %v3258_v53 = vpop.f32.mrf.mxu0  ;;  %v3848_v34 = vpop.f32.mrf.mxu1 }
 0xb57   : > { %4094 = vpow2.f32 %v3747_v50  ;;  %v3750_v58 = vmul.f32 -1.442695, %v3258_v53 }
 0xb58   : > { %v3863_v56 = vpop.f32.mrf.mxu0  ;;  %v3182_v59 = vpop.f32.mrf.mxu1 }
 0xb59   : > { %v3749_v57 = vmul.f32 -1.442695, %v3182_v59 }
 0xb5a   : > { %v3410_v63 = vpop.f32.mrf.mxu0  ;;  %v3858_v0 = vpop.f32.mrf.mxu1 }
 0xb5b   : > { %4096 = vpow2.f32 %v3749_v57  ;;  %v3752_v7 = vmul.f32 -1.442695, %v3410_v63 }
 0xb5c   : > { %v4089_v15 = vpop.eup %4088  ;;  %v3873_v8 = vpop.f32.mrf.mxu0  ;;  %4098 = vpow2.f32 %v3750_v58 }
 0xb5d   : > { %v3334_v46 = vpop.f32.mrf.mxu1  ;;  %v3439_v37 = vadd.f32 1.0, %v4089_v15 }
 0xb5e   : > { %v3751_v35 = vmul.f32 -1.442695, %v3334_v46 }
 0xb5f   : > { %v3868_v4 = vpop.f32.mrf.mxu1  ;;  %4100 = vrcp.f32 %v3439_v37 }
 0xb60   : > { %v4091_v2 = vpop.eup %4090  ;;  %4102 = vpow2.f32 %v3751_v35 }
 0xb61   : > { %v3438_v6 = vadd.f32 1.0, %v4091_v2  ;;  %v4093_v12 = vpop.eup %4092 }
 0xb62   : > { %v3441_v18 = vadd.f32 1.0, %v4093_v12 }
 0xb63   : > { %4104 = vrcp.f32 %v3438_v6 }
 0xb64   : > { %v4095_v14 = vpop.eup %4094  ;;  %4106 = vpow2.f32 %v3752_v7 }
 0xb65   : > { %v3440_v16 = vadd.f32 1.0, %v4095_v14 }
 0xb67   : > { %4108 = vrcp.f32 %v3440_v16 }
 0xb68   : > { %v4097_v19 = vpop.eup %4096  ;;  %4110 = vrcp.f32 %v3441_v18 }
 0xb69   : > { %v4099_v20 = vpop.eup %4098  ;;  %v3442_v42 = vadd.f32 1.0, %v4097_v19 }
 0xb6a   : > { %v3443_v22 = vadd.f32 1.0, %v4099_v20 }
 0xb6b   : > { %4112 = vrcp.f32 %v3442_v42 }
 0xb6c   : > { %v4101_v21 = vpop.eup %4100  ;;  %4114 = vrcp.f32 %v3443_v22 }
 0xb6d   : > { %3476 = vperm.xlu0 %3987, %v4101_v21   ;;  %v4103_v23 = vpop.eup %4102 }
 0xb6e   : > { %v3444_v49 = vadd.f32 1.0, %v4103_v23 }
 0xb70   : > { %v4105_v26 = vpop.eup %4104  ;;  %4116 = vrcp.f32 %v3444_v49 }
 0xb71   : > { %3464 = vperm.xlu1 %3986, %v4105_v26   ;;  %v4107_v60 = vpop.eup %4106 }
 0xb72   : > { %v3445_v5 = vadd.f32 1.0, %v4107_v60 }
 0xb74   : > { %v4109_v3 = vpop.eup %4108  ;;  %4118 = vrcp.f32 %v3445_v5 }
 0xb75   : > { %3488 = vperm.xlu1 %3986, %v4109_v3   ;;  %v4111_v27 = vpop.eup %4110 }
 0xb78   : > { %v4113_v55 = vpop.eup %4112 }
 0xb79   : > { %3500 = vperm.xlu1 %3986, %v4111_v27   ;;  %v4115_v29 = vpop.eup %4114 }
 0xb7d   : > { %3512 = vperm.xlu1 %3986, %v4113_v55   ;;  %v4117_v51 = vpop.eup %4116 }
 0xb81   : > { %3524 = vperm.xlu1 %3986, %v4115_v29   ;;  %v4119_v36 = vpop.eup %4118 }
 0xb85   : > { %3536 = vperm.xlu1 %3986, %v4117_v51  }
 0xb89   : > { %3548 = vperm.xlu1 %3986, %v4119_v36  }
 0xbe8   : > { %v3477_v11 = vpop.permute.xlu0 %3476 }
 0xbe9   : > { %v3485_v28 = vrot.slane %v3477_v11, %v4634_v17 }
 0xbec   : > { %v3465_v52 = vpop.permute.xlu1 %3464 }
 0xbed   : > { %v3473_v25 = vrot.slane %v3465_v52, %v4634_v17 }
 0xbef   : > { %v3566_v62 = vcombine.low %v3473_v25, %v3485_v28  ;;  %v3567_v38 = vcombine.high %v3473_v25, %v3485_v28 }
 0xbf0   : > { %v3489_v10 = vpop.permute.xlu1 %3488 }
 0xbf1   : > { %v3582_v39 = vmul.f32 %v3566_v62, %v5017_v33  ;;  %v3583_v40 = vmul.f32 %v3567_v38, %v5015_v32  ;;  %v3497_v41 = vrot.slane %v3489_v10, %v4634_v17 }
 0xbf3   : > { %3590 = vst [vmem:[%s5260_s29] sm:$0xff] %v3582_v39  ;;  %3591 = vst.msk [vmem:[%s5260_s29 + $0x8] sm:$0xff] %vm245_vm0, %v3583_v40 }
 0xbf4   : > { %v3501_v30 = vpop.permute.xlu1 %3500 }
 0xbf5   : > { %v3509_v31 = vrot.slane %v3501_v30, %v4634_v17 }
 0xbf7   : > { %v3568_v43 = vcombine.low %v3497_v41, %v3509_v31  ;;  %v3569_v33 = vcombine.high %v3497_v41, %v3509_v31 }
 0xbf8   : > { %v3513_v9 = vpop.permute.xlu1 %3512 }
 0xbf9   : > { %v3584_v32 = vmul.f32 %v3568_v43, %v5026_v45  ;;  %v3585_v48 = vmul.f32 %v3569_v33, %v5024_v47  ;;  %v3521_v1 = vrot.slane %v3513_v9, %v4634_v17 }
 0xbfb   : > { %3592 = vst [vmem:[%s5260_s29 + $0x10] sm:$0xff] %v3584_v32  ;;  %3593 = vst.msk [vmem:[%s5260_s29 + $0x18] sm:$0xff] %vm245_vm0, %v3585_v48 }
 0xbfc   : > { %v3525_v44 = vpop.permute.xlu1 %3524 }
 0xbfd   : > { %v3533_v50 = vrot.slane %v3525_v44, %v4634_v17 }
 0xbff   : > { %v3570_v53 = vcombine.low %v3521_v1, %v3533_v50  ;;  %v3571_v34 = vcombine.high %v3521_v1, %v3533_v50 }
 0xc00   : > { %v3537_v56 = vpop.permute.xlu1 %3536 }
 0xc01   : > { %v3586_v59 = vmul.f32 %v3570_v53, %v5035_v13  ;;  %v3587_v45 = vmul.f32 %v3571_v34, %v5033_v54  ;;  %v3545_v57 = vrot.slane %v3537_v56, %v4634_v17 }
 0xc03   : > { %3594 = vst [vmem:[%s5260_s29 + $0x20] sm:$0xff] %v3586_v59  ;;  %3595 = vst.msk [vmem:[%s5260_s29 + $0x28] sm:$0xff] %vm245_vm0, %v3587_v45 }
 0xc04   : > { %v3549_v47 = vpop.permute.xlu1 %3548 }
 0xc05   : > { %v3557_v58 = vrot.slane %v3549_v47, %v4634_v17 }
 0xc07   : > { %v3572_v63 = vcombine.low %v3545_v57, %v3557_v58  ;;  %v3573_v0 = vcombine.high %v3545_v57, %v3557_v58 }
 0xc09   : > { %v3588_v54 = vmul.f32 %v3572_v63, %v5044_v24  ;;  %v3589_v13 = vmul.f32 %v3573_v0, %v5042_v61 }
 0xc0b   : > { %3596 = vst [vmem:[%s5260_s29 + $0x30] sm:$0xff] %v3588_v54  ;;  %3597 = vst.msk [vmem:[%s5260_s29 + $0x38] sm:$0xff] %vm245_vm0, %v3589_v13 }
 0xc0c   : > { %4170 = shalt.err (!%p4167_p3)
}
 0xc0d   : > { %s4171_s23 = scalar_lea.hbm %s5286_s11, 1024  ;;  %s4175_s27 = scalar_lea.hbm %s5341_s4, 2048 }
 0xc0e   : > { %p4172_p4 = scmp.ne.s32.totalorder %s5286_s11, %s4171_s23  ;;  %p4176_p9 = scmp.lt.s32.totalorder %s5286_s11, %s5341_s4 }
 0xc0f   : > { %p4177_p10 = scmp.lt.s32.totalorder %s4175_s27, %s4171_s23 }
 0xc10   : > { %p4173_p7 = pnand %p4172_p4, %p4319_p5 }
 0xc11   : > { %p4178_p11 = por %p4177_p10, %p4176_p9 }
 0xc12   : > { %p4174_p8 = pneg %p4173_p7 }
 0xc14   : > { %p4179_p12 = pnand %p4178_p11, %p4174_p8 }
 0xc16   : > { %4182 = shalt.err (!%p4179_p12)
}
 0xc17   : > { %s4254_s5 = smov 256   ;;  %s4255_s29 = smov 16  }
 0xc18   : > { %3874 = dma.vmem_to_hbm [thread:$0]  (%p4319_p5), %s5288_s7, 1024, %s5286_s11, %s5297_s19, %s4254_s5, %s4254_s5, %s4255_s29  }
 0xc19 PF: > { %p3880_p13 = scmp.ge.s32.totalorder %s4217_s18, 2  ;;  %s3628_s6 = sand.u32 1, %s4205_s15  }
 0xc1a   : > { %s3629_s8 = scalar_lea.sflag [#allocation3], %s3628_s6 }
 0xc1b   : > { %p3877_p0 = pnand %p3880_p13, %p4323_p6 }
 0xc1d   : > { %p3878_p1 = pneg %p3877_p0 }
 0xc1f   : > { %4200 = dma.done.wait (%p3878_p1), %s3629_s8, 1024  }
 0xc20   : > { %4202 = vsyncadd (%p3878_p1), %s3629_s8, 4294966272  ;;  %p14_p2 = scmp.ge.s32.totalorder %s4306_s21, 4   ;;  %s5344_s15 = smov %s4209_s16 }
 0xc21   : > { %s5345_s16 = smov %s4213_s17  ;;  %s5346_s17 = smov %s4317_s24 }
 0xc22   : > { %s5347_s18 = smov %s4306_s21  ;;  %16 = sbr.rel (!%p14_p2) target bundleno = 3 (0x3), region = 71 }
 0xc27   :  { %3634 = vsyncpa [#allocation3], 1 }
 0xc28   :  { %3636 = vsyncpa [#allocation3 + $0x1], 1 }

</bundles_post_ra>
